<compile_context>
chip_gen: v7x
topology: tpu7x:2x2x1
jax: 0.10.0
libtpu: 0.0.40
codegen_flags: <defaults>
</compile_context>

<pallas_src>
import jax
import jax.numpy as jnp
from jax.experimental import pallas as pl
from jax.experimental.pallas import tpu as pltpu


# --------------------------- Pallas kernels ---------------------------------

def _conv3x3_flat(src_ref, w_ref, scale, bias, dst_ref, dst_off, n_rows, wp2,
                  row_chunk=128):
    """3x3 conv (+ folded-BN affine + ReLU) over a flat zero-padded buffer.

    src_ref : ((Ho+2)*wp2, Cin) flat zero-padded activation, row-major with padded
              width wp2 = Wo + 2; pixel (h, w) lives at flat row (h+1)*wp2 + (w+1).
    w_ref   : (3, 3, Cin, Cout) conv weights (HWIO).
    scale   : (1, Cout)  gamma / sqrt(running_var + eps)
    bias    : (1, Cout)  beta + (conv_bias - running_mean) * scale
    dst_ref : flat destination; rows [dst_off, dst_off + n_rows) get the result.
              Result row r corresponds to padded source position r + wp2 + 1, so
              output pixel (h, w) lands at result row h*wp2 + w.
    """
    cout = w_ref.shape[-1]
    # Chunk the flattened spatial rows to bound vreg live ranges; each chunk is one
    # (cl, Cin) x (Cin, Cout) matmul per tap and one lane-dense bulk store.
    for c0 in range(0, n_rows, row_chunk):
        cl = min(row_chunk, n_rows - c0)
        acc = jnp.zeros((cl, cout), jnp.float32)
        for dy in range(3):
            for dx in range(3):
                acc = acc + jnp.dot(
                    src_ref[pl.ds(dy * wp2 + dx + c0, cl), :],
                    w_ref[dy, dx],
                    preferred_element_type=jnp.float32)
        dst_ref[pl.ds(dst_off + c0, cl), :] = jnp.maximum(acc * scale + bias, 0.0)


def _double_conv_kernel(x_ref, w1_ref, s1_ref, b1_ref, w2_ref, s2_ref, b2_ref,
                        o_ref, xp_ref, mid_ref, yb_ref):
    """Fused DoubleConv for one batch element.

    x_ref  : (1, Ho, Wo, Cin)   stage input (already pooled for DownConv stages)
    w*/s*/b*: conv weights + folded-BN affine for the two convs
    o_ref  : (1, Ho, Wo, Cout)  stage output
    xp_ref : ((Ho+2)*(Wo+2), Cin)   flat zero-padded conv-1 input   (VMEM scratch)
    mid_ref: ((Ho+2)*(Wo+2), Cmid)  flat zero-padded intermediate   (VMEM scratch)
    yb_ref : (Ho*(Wo+2)-2, Cout)    flat conv-2 result              (VMEM scratch)
    """
    _, Ho, Wo, _ = x_ref.shape
    Cmid = w1_ref.shape[-1]
    wp2 = Wo + 2
    L = Ho * wp2 - 2          # flattened rows covering all valid output pixels

    # Zero the padded flat buffers (the zero border IS the conv padding).
    xp_ref[...] = jnp.zeros(xp_ref.shape, xp_ref.dtype)
    mid_ref[...] = jnp.zeros(mid_ref.shape, mid_ref.dtype)

    # Stage the input rows into the flat padded buffer (valid cols 1..Wo).
    # NOTE: static unroll is fine for small Ho; use lax.fori_loop / an H grid
    # axis when Ho grows beyond ~32.
    for h in range(Ho):
        xp_ref[pl.ds((h + 1) * wp2 + 1, Wo), :] = x_ref[0, h]

    # conv1 + BN + ReLU -> mid (same flat padded layout as xp).
    _conv3x3_flat(xp_ref, w1_ref, s1_ref[...], b1_ref[...],
                  mid_ref, wp2 + 1, L, wp2)
    # The bulk stores above also wrote the interior left/right padding columns of
    # `mid` (two adjacent flat rows per image row); re-zero them before conv2.
    for i in range(1, Ho):
        mid_ref[pl.ds(i * wp2 + Wo + 1, 2), :] = jnp.zeros((2, Cmid), jnp.float32)

    # conv2 + BN + ReLU -> yb (flat; row h*wp2 + w holds output pixel (h, w)).
    _conv3x3_flat(mid_ref, w2_ref, s2_ref[...], b2_ref[...],
                  yb_ref, 0, L, wp2)

    # Extract the Wo valid columns of every row into the NHWC output block.
    for h in range(Ho):
        o_ref[0, h] = yb_ref[pl.ds(h * wp2, Wo), :]


# ------------------------------ wrappers -------------------------------------

def double_conv_bn_relu(x_nhwc, p1, p2):
    """Fused DoubleConv: [3x3 conv + BN(eval) + ReLU] x 2 in one pallas_call."""
    w1, s1, b1 = p1
    w2, s2, b2 = p2
    N, Ho, Wo, Cin = x_nhwc.shape
    Cmid = w1.shape[-1]
    Cout = w2.shape[-1]
    wp2 = Wo + 2
    R = (Ho + 2) * wp2
    L = Ho * wp2 - 2
    return pl.pallas_call(
        _double_conv_kernel,
        out_shape=jax.ShapeDtypeStruct((N, Ho, Wo, Cout), jnp.float32),
        grid=(N,),
        in_specs=[
            pl.BlockSpec((1, Ho, Wo, Cin), lambda n: (n, 0, 0, 0)),
            pl.BlockSpec((3, 3, Cin, Cmid), lambda n: (0, 0, 0, 0)),
            pl.BlockSpec((1, Cmid), lambda n: (0, 0)),
            pl.BlockSpec((1, Cmid), lambda n: (0, 0)),
            pl.BlockSpec((3, 3, Cmid, Cout), lambda n: (0, 0, 0, 0)),
            pl.BlockSpec((1, Cout), lambda n: (0, 0)),
            pl.BlockSpec((1, Cout), lambda n: (0, 0)),
        ],
        out_specs=pl.BlockSpec((1, Ho, Wo, Cout), lambda n: (n, 0, 0, 0)),
        scratch_shapes=[
            pltpu.VMEM((R, Cin), jnp.float32),    # flat padded conv-1 input
            pltpu.VMEM((R, Cmid), jnp.float32),   # flat padded intermediate
            pltpu.VMEM((L, Cout), jnp.float32),   # flat conv-2 result
        ],
        compiler_params=pltpu.CompilerParams(
            dimension_semantics=("parallel",)),
    )(x_nhwc, w1, s1, b1, w2, s2, b2)


def maxpool2x2(x_nhwc):
    """nn.MaxPool2d(2): single fused XLA reduce (no materialized window planes)."""
    N, H, W, C = x_nhwc.shape
    assert H % 2 == 0 and W % 2 == 0, (H, W)
    return x_nhwc.reshape(N, H // 2, 2, W // 2, 2, C).max(axis=(2, 4))


# ------------------------- parameters / model --------------------------------

def _make_conv_bn_params(key, cin, cout, eps=1e-5):
    """Deterministic conv(3x3, bias) + BatchNorm2d(eval) params, BN folded."""
    kw, kb, kg, kbe, km, kv = jax.random.split(key, 6)
    bound = 1.0 / (9 * cin) ** 0.5
    w = jax.random.uniform(kw, (3, 3, cin, cout), jnp.float32, -bound, bound)
    b = jax.random.uniform(kb, (cout,), jnp.float32, -bound, bound)
    gamma = jax.random.uniform(kg, (cout,), jnp.float32, 0.8, 1.2)
    beta = jax.random.uniform(kbe, (cout,), jnp.float32, -0.1, 0.1)
    mean = jax.random.uniform(km, (cout,), jnp.float32, -0.1, 0.1)
    var = jax.random.uniform(kv, (cout,), jnp.float32, 0.8, 1.2)
    scale = gamma / jnp.sqrt(var + eps)
    bias = beta + (b - mean) * scale
    return w, scale[None, :], bias[None, :]


class TuneableUNetEncoderPallas:
    """Pallas port of TuneableUNetEncoder (InConv + `deep` DownConv stages)."""

    def __init__(self, in_chan, start_feat=64, deep=4, key=None):
        self.in_chan = in_chan
        self.start_feat = start_feat
        self.deep = deep
        self.out_chan = start_feat * 8
        self.chan = self._generate_chan()
        self.last_chan = self.chan[-1][-1]
        key = jax.random.PRNGKey(0) if key is None else key
        keys = jax.random.split(key, 2 * (deep + 1))
        layer_io = [(in_chan, start_feat)] + list(self.chan)   # DoubleConv (in, out)
        self.params = []
        for i, (ci, co) in enumerate(layer_io):
            p1 = _make_conv_bn_params(keys[2 * i], ci, co)
            p2 = _make_conv_bn_params(keys[2 * i + 1], co, co)
            self.params.append((p1, p2))

    def _generate_chan(self):
        chan = []
        for d in range(self.deep):
            c1, c2 = 2 ** d, 2 ** (d + 1)
            if d + 1 != self.deep:
                chan.append((self.start_feat * c1, self.start_feat * c2))
            else:
                chan.append((self.start_feat * c1, self.start_feat * c1))
        return chan

    def __call__(self, x_nchw):
        x = jnp.transpose(x_nchw, (0, 2, 3, 1)).astype(jnp.float32)  # NCHW -> NHWC
        outs = []
        for d in range(self.deep + 1):
            if d > 0:                      # DownConv = MaxPool2d(2) + DoubleConv
                x = maxpool2x2(x)
            p1, p2 = self.params[d]
            x = double_conv_bn_relu(x, p1, p2)
            outs.append(x)
        # back to NCHW so outputs match the PyTorch module exactly
        return [jnp.transpose(o, (0, 3, 1, 2)) for o in outs]


# ---------------------------- pure-JAX reference -----------------------------

def reference_forward(model, x_nchw):
    x = x_nchw.astype(jnp.float32)
    outs = []
    for d in range(model.deep + 1):
        if d > 0:
            N, C, H, W = x.shape
            x = x.reshape(N, C, H // 2, 2, W // 2, 2).max(axis=(3, 5))
        for (w, scale, bias) in model.params[d]:
            y = jax.lax.conv_general_dilated(
                x, w, (1, 1), "SAME",
                dimension_numbers=("NCHW", "HWIO", "NCHW"),
                precision=jax.lax.Precision.HIGHEST)
            y = y * scale[0][None, :, None, None] + bias[0][None, :, None, None]
            x = jnp.maximum(y, 0.0)
        outs.append(x)
    return outs


# --------------------------------- main ---------------------------------------

if __name__ == "__main__":
    # small shapes: batch=2, in_chan=4, spatial=16, start_feat=8, deep=3
    model = TuneableUNetEncoderPallas(in_chan=4, start_feat=8, deep=3,
                                      key=jax.random.PRNGKey(1))
    x = jax.random.normal(jax.random.PRNGKey(0), (2, 4, 16, 16), jnp.float32)  # NCHW

    outs = jax.block_until_ready(model(x))

    refs = reference_forward(model, x)
    expected_shapes = [(2, 8, 16, 16), (2, 16, 8, 8), (2, 32, 4, 4), (2, 32, 2, 2)]
    assert len(outs) == model.deep + 1
    for o, r, es in zip(outs, refs, expected_shapes):
        assert o.shape == es, (o.shape, es)
        assert o.shape == r.shape
        assert jnp.allclose(o, r, atol=2e-3, rtol=2e-3), \
            float(jnp.max(jnp.abs(o - r)))

    print("KERNEL_OK")
</pallas_src>

<mosaic_0001>
module attributes {stable_mosaic.version = 11 : i64} {
  func.func @_double_conv_kernel(%arg0: i32, %arg1: memref<1x16x16x4xf32, #tpu.memory_space<vmem>>, %arg2: memref<3x3x4x8xf32, #tpu.memory_space<vmem>>, %arg3: memref<1x8xf32, #tpu.memory_space<vmem>>, %arg4: memref<1x8xf32, #tpu.memory_space<vmem>>, %arg5: memref<3x3x8x8xf32, #tpu.memory_space<vmem>>, %arg6: memref<1x8xf32, #tpu.memory_space<vmem>>, %arg7: memref<1x8xf32, #tpu.memory_space<vmem>>, %arg8: memref<1x16x16x8xf32, #tpu.memory_space<vmem>>, %arg9: memref<324x4xf32, #tpu.memory_space<vmem>>, %arg10: memref<324x8xf32, #tpu.memory_space<vmem>>, %arg11: memref<286x8xf32, #tpu.memory_space<vmem>>) attributes {dimension_semantics = [#tpu.dimension_semantics<parallel>], iteration_bounds = array<i64: 2>, scalar_prefetch = 0 : i64, scratch_operands = 3 : i64, tpu.core_type = #tpu.core_type<tc>, window_params = [{transform_indices = @transform_0, window_bounds = array<i64: 1, 16, 16, 4>}, {pipeline_mode = #tpu.pipeline_mode<synchronous>, transform_indices = @transform_1, window_bounds = array<i64: 3, 3, 4, 8>}, {pipeline_mode = #tpu.pipeline_mode<synchronous>, transform_indices = @transform_2, window_bounds = array<i64: 1, 8>}, {pipeline_mode = #tpu.pipeline_mode<synchronous>, transform_indices = @transform_3, window_bounds = array<i64: 1, 8>}, {pipeline_mode = #tpu.pipeline_mode<synchronous>, transform_indices = @transform_4, window_bounds = array<i64: 3, 3, 8, 8>}, {pipeline_mode = #tpu.pipeline_mode<synchronous>, transform_indices = @transform_5, window_bounds = array<i64: 1, 8>}, {pipeline_mode = #tpu.pipeline_mode<synchronous>, transform_indices = @transform_6, window_bounds = array<i64: 1, 8>}, {transform_indices = @transform_7, window_bounds = array<i64: 1, 16, 16, 8>}]} {
    %cst = arith.constant 0.000000e+00 : f32
    %0 = vector.broadcast %cst : f32 to vector<324x4xf32>
    %c0 = arith.constant 0 : index
    %c0_0 = arith.constant 0 : index
    %1 = vector.load %arg9[%c0, %c0_0] : memref<324x4xf32, #tpu.memory_space<vmem>>, vector<324x4xf32>
    tpu.vector_store %arg9[%c0, %c0_0], %0 {strides = array<i32>} : memref<324x4xf32, #tpu.memory_space<vmem>>, vector<324x4xf32>,
    %cst_1 = arith.constant 0.000000e+00 : f32
    %2 = vector.broadcast %cst_1 : f32 to vector<324x8xf32>
    %c0_2 = arith.constant 0 : index
    %c0_3 = arith.constant 0 : index
    %3 = vector.load %arg10[%c0_2, %c0_3] : memref<324x8xf32, #tpu.memory_space<vmem>>, vector<324x8xf32>
    tpu.vector_store %arg10[%c0_2, %c0_3], %2 {strides = array<i32>} : memref<324x8xf32, #tpu.memory_space<vmem>>, vector<324x8xf32>,
    %c0_4 = arith.constant 0 : index
    %c0_5 = arith.constant 0 : index
    %c0_6 = arith.constant 0 : index
    %c0_7 = arith.constant 0 : index
    %4 = vector.load %arg1[%c0_4, %c0_5, %c0_6, %c0_7] : memref<1x16x16x4xf32, #tpu.memory_space<vmem>>, vector<1x1x16x4xf32>
    %5 = vector.shape_cast %4 : vector<1x1x16x4xf32> to vector<16x4xf32>
    %c19 = arith.constant 19 : index
    %c0_8 = arith.constant 0 : index
    %6 = vector.load %arg9[%c19, %c0_8] : memref<324x4xf32, #tpu.memory_space<vmem>>, vector<16x4xf32>
    tpu.vector_store %arg9[%c19, %c0_8], %5 {strides = array<i32>} : memref<324x4xf32, #tpu.memory_space<vmem>>, vector<16x4xf32>,
    %c0_9 = arith.constant 0 : index
    %c1 = arith.constant 1 : index
    %c0_10 = arith.constant 0 : index
    %c0_11 = arith.constant 0 : index
    %7 = vector.load %arg1[%c0_9, %c1, %c0_10, %c0_11] : memref<1x16x16x4xf32, #tpu.memory_space<vmem>>, vector<1x1x16x4xf32>
    %8 = vector.shape_cast %7 : vector<1x1x16x4xf32> to vector<16x4xf32>
    %c37 = arith.constant 37 : index
    %c0_12 = arith.constant 0 : index
    %9 = vector.load %arg9[%c37, %c0_12] : memref<324x4xf32, #tpu.memory_space<vmem>>, vector<16x4xf32>
    tpu.vector_store %arg9[%c37, %c0_12], %8 {strides = array<i32>} : memref<324x4xf32, #tpu.memory_space<vmem>>, vector<16x4xf32>,
    %c0_13 = arith.constant 0 : index
    %c2 = arith.constant 2 : index
    %c0_14 = arith.constant 0 : index
    %c0_15 = arith.constant 0 : index
    %10 = vector.load %arg1[%c0_13, %c2, %c0_14, %c0_15] : memref<1x16x16x4xf32, #tpu.memory_space<vmem>>, vector<1x1x16x4xf32>
    %11 = vector.shape_cast %10 : vector<1x1x16x4xf32> to vector<16x4xf32>
    %c55 = arith.constant 55 : index
    %c0_16 = arith.constant 0 : index
    %12 = vector.load %arg9[%c55, %c0_16] : memref<324x4xf32, #tpu.memory_space<vmem>>, vector<16x4xf32>
    tpu.vector_store %arg9[%c55, %c0_16], %11 {strides = array<i32>} : memref<324x4xf32, #tpu.memory_space<vmem>>, vector<16x4xf32>,
    %c0_17 = arith.constant 0 : index
    %c3 = arith.constant 3 : index
    %c0_18 = arith.constant 0 : index
    %c0_19 = arith.constant 0 : index
    %13 = vector.load %arg1[%c0_17, %c3, %c0_18, %c0_19] : memref<1x16x16x4xf32, #tpu.memory_space<vmem>>, vector<1x1x16x4xf32>
    %14 = vector.shape_cast %13 : vector<1x1x16x4xf32> to vector<16x4xf32>
    %c73 = arith.constant 73 : index
    %c0_20 = arith.constant 0 : index
    %15 = vector.load %arg9[%c73, %c0_20] : memref<324x4xf32, #tpu.memory_space<vmem>>, vector<16x4xf32>
    tpu.vector_store %arg9[%c73, %c0_20], %14 {strides = array<i32>} : memref<324x4xf32, #tpu.memory_space<vmem>>, vector<16x4xf32>,
    %c0_21 = arith.constant 0 : index
    %c4 = arith.constant 4 : index
    %c0_22 = arith.constant 0 : index
    %c0_23 = arith.constant 0 : index
    %16 = vector.load %arg1[%c0_21, %c4, %c0_22, %c0_23] : memref<1x16x16x4xf32, #tpu.memory_space<vmem>>, vector<1x1x16x4xf32>
    %17 = vector.shape_cast %16 : vector<1x1x16x4xf32> to vector<16x4xf32>
    %c91 = arith.constant 91 : index
    %c0_24 = arith.constant 0 : index
    %18 = vector.load %arg9[%c91, %c0_24] : memref<324x4xf32, #tpu.memory_space<vmem>>, vector<16x4xf32>
    tpu.vector_store %arg9[%c91, %c0_24], %17 {strides = array<i32>} : memref<324x4xf32, #tpu.memory_space<vmem>>, vector<16x4xf32>,
    %c0_25 = arith.constant 0 : index
    %c5 = arith.constant 5 : index
    %c0_26 = arith.constant 0 : index
    %c0_27 = arith.constant 0 : index
    %19 = vector.load %arg1[%c0_25, %c5, %c0_26, %c0_27] : memref<1x16x16x4xf32, #tpu.memory_space<vmem>>, vector<1x1x16x4xf32>
    %20 = vector.shape_cast %19 : vector<1x1x16x4xf32> to vector<16x4xf32>
    %c109 = arith.constant 109 : index
    %c0_28 = arith.constant 0 : index
    %21 = vector.load %arg9[%c109, %c0_28] : memref<324x4xf32, #tpu.memory_space<vmem>>, vector<16x4xf32>
    tpu.vector_store %arg9[%c109, %c0_28], %20 {strides = array<i32>} : memref<324x4xf32, #tpu.memory_space<vmem>>, vector<16x4xf32>,
    %c0_29 = arith.constant 0 : index
    %c6 = arith.constant 6 : index
    %c0_30 = arith.constant 0 : index
    %c0_31 = arith.constant 0 : index
    %22 = vector.load %arg1[%c0_29, %c6, %c0_30, %c0_31] : memref<1x16x16x4xf32, #tpu.memory_space<vmem>>, vector<1x1x16x4xf32>
    %23 = vector.shape_cast %22 : vector<1x1x16x4xf32> to vector<16x4xf32>
    %c127 = arith.constant 127 : index
    %c0_32 = arith.constant 0 : index
    %24 = vector.load %arg9[%c127, %c0_32] : memref<324x4xf32, #tpu.memory_space<vmem>>, vector<16x4xf32>
    tpu.vector_store %arg9[%c127, %c0_32], %23 {strides = array<i32>} : memref<324x4xf32, #tpu.memory_space<vmem>>, vector<16x4xf32>,
    %c0_33 = arith.constant 0 : index
    %c7 = arith.constant 7 : index
    %c0_34 = arith.constant 0 : index
    %c0_35 = arith.constant 0 : index
    %25 = vector.load %arg1[%c0_33, %c7, %c0_34, %c0_35] : memref<1x16x16x4xf32, #tpu.memory_space<vmem>>, vector<1x1x16x4xf32>
    %26 = vector.shape_cast %25 : vector<1x1x16x4xf32> to vector<16x4xf32>
    %c145 = arith.constant 145 : index
    %c0_36 = arith.constant 0 : index
    %27 = vector.load %arg9[%c145, %c0_36] : memref<324x4xf32, #tpu.memory_space<vmem>>, vector<16x4xf32>
    tpu.vector_store %arg9[%c145, %c0_36], %26 {strides = array<i32>} : memref<324x4xf32, #tpu.memory_space<vmem>>, vector<16x4xf32>,
    %c0_37 = arith.constant 0 : index
    %c8 = arith.constant 8 : index
    %c0_38 = arith.constant 0 : index
    %c0_39 = arith.constant 0 : index
    %28 = vector.load %arg1[%c0_37, %c8, %c0_38, %c0_39] : memref<1x16x16x4xf32, #tpu.memory_space<vmem>>, vector<1x1x16x4xf32>
    %29 = vector.shape_cast %28 : vector<1x1x16x4xf32> to vector<16x4xf32>
    %c163 = arith.constant 163 : index
    %c0_40 = arith.constant 0 : index
    %30 = vector.load %arg9[%c163, %c0_40] : memref<324x4xf32, #tpu.memory_space<vmem>>, vector<16x4xf32>
    tpu.vector_store %arg9[%c163, %c0_40], %29 {strides = array<i32>} : memref<324x4xf32, #tpu.memory_space<vmem>>, vector<16x4xf32>,
    %c0_41 = arith.constant 0 : index
    %c9 = arith.constant 9 : index
    %c0_42 = arith.constant 0 : index
    %c0_43 = arith.constant 0 : index
    %31 = vector.load %arg1[%c0_41, %c9, %c0_42, %c0_43] : memref<1x16x16x4xf32, #tpu.memory_space<vmem>>, vector<1x1x16x4xf32>
    %32 = vector.shape_cast %31 : vector<1x1x16x4xf32> to vector<16x4xf32>
    %c181 = arith.constant 181 : index
    %c0_44 = arith.constant 0 : index
    %33 = vector.load %arg9[%c181, %c0_44] : memref<324x4xf32, #tpu.memory_space<vmem>>, vector<16x4xf32>
    tpu.vector_store %arg9[%c181, %c0_44], %32 {strides = array<i32>} : memref<324x4xf32, #tpu.memory_space<vmem>>, vector<16x4xf32>,
    %c0_45 = arith.constant 0 : index
    %c10 = arith.constant 10 : index
    %c0_46 = arith.constant 0 : index
    %c0_47 = arith.constant 0 : index
    %34 = vector.load %arg1[%c0_45, %c10, %c0_46, %c0_47] : memref<1x16x16x4xf32, #tpu.memory_space<vmem>>, vector<1x1x16x4xf32>
    %35 = vector.shape_cast %34 : vector<1x1x16x4xf32> to vector<16x4xf32>
    %c199 = arith.constant 199 : index
    %c0_48 = arith.constant 0 : index
    %36 = vector.load %arg9[%c199, %c0_48] : memref<324x4xf32, #tpu.memory_space<vmem>>, vector<16x4xf32>
    tpu.vector_store %arg9[%c199, %c0_48], %35 {strides = array<i32>} : memref<324x4xf32, #tpu.memory_space<vmem>>, vector<16x4xf32>,
    %c0_49 = arith.constant 0 : index
    %c11 = arith.constant 11 : index
    %c0_50 = arith.constant 0 : index
    %c0_51 = arith.constant 0 : index
    %37 = vector.load %arg1[%c0_49, %c11, %c0_50, %c0_51] : memref<1x16x16x4xf32, #tpu.memory_space<vmem>>, vector<1x1x16x4xf32>
    %38 = vector.shape_cast %37 : vector<1x1x16x4xf32> to vector<16x4xf32>
    %c217 = arith.constant 217 : index
    %c0_52 = arith.constant 0 : index
    %39 = vector.load %arg9[%c217, %c0_52] : memref<324x4xf32, #tpu.memory_space<vmem>>, vector<16x4xf32>
    tpu.vector_store %arg9[%c217, %c0_52], %38 {strides = array<i32>} : memref<324x4xf32, #tpu.memory_space<vmem>>, vector<16x4xf32>,
    %c0_53 = arith.constant 0 : index
    %c12 = arith.constant 12 : index
    %c0_54 = arith.constant 0 : index
    %c0_55 = arith.constant 0 : index
    %40 = vector.load %arg1[%c0_53, %c12, %c0_54, %c0_55] : memref<1x16x16x4xf32, #tpu.memory_space<vmem>>, vector<1x1x16x4xf32>
    %41 = vector.shape_cast %40 : vector<1x1x16x4xf32> to vector<16x4xf32>
    %c235 = arith.constant 235 : index
    %c0_56 = arith.constant 0 : index
    %42 = vector.load %arg9[%c235, %c0_56] : memref<324x4xf32, #tpu.memory_space<vmem>>, vector<16x4xf32>
    tpu.vector_store %arg9[%c235, %c0_56], %41 {strides = array<i32>} : memref<324x4xf32, #tpu.memory_space<vmem>>, vector<16x4xf32>,
    %c0_57 = arith.constant 0 : index
    %c13 = arith.constant 13 : index
    %c0_58 = arith.constant 0 : index
    %c0_59 = arith.constant 0 : index
    %43 = vector.load %arg1[%c0_57, %c13, %c0_58, %c0_59] : memref<1x16x16x4xf32, #tpu.memory_space<vmem>>, vector<1x1x16x4xf32>
    %44 = vector.shape_cast %43 : vector<1x1x16x4xf32> to vector<16x4xf32>
    %c253 = arith.constant 253 : index
    %c0_60 = arith.constant 0 : index
    %45 = vector.load %arg9[%c253, %c0_60] : memref<324x4xf32, #tpu.memory_space<vmem>>, vector<16x4xf32>
    tpu.vector_store %arg9[%c253, %c0_60], %44 {strides = array<i32>} : memref<324x4xf32, #tpu.memory_space<vmem>>, vector<16x4xf32>,
    %c0_61 = arith.constant 0 : index
    %c14 = arith.constant 14 : index
    %c0_62 = arith.constant 0 : index
    %c0_63 = arith.constant 0 : index
    %46 = vector.load %arg1[%c0_61, %c14, %c0_62, %c0_63] : memref<1x16x16x4xf32, #tpu.memory_space<vmem>>, vector<1x1x16x4xf32>
    %47 = vector.shape_cast %46 : vector<1x1x16x4xf32> to vector<16x4xf32>
    %c271 = arith.constant 271 : index
    %c0_64 = arith.constant 0 : index
    %48 = vector.load %arg9[%c271, %c0_64] : memref<324x4xf32, #tpu.memory_space<vmem>>, vector<16x4xf32>
    tpu.vector_store %arg9[%c271, %c0_64], %47 {strides = array<i32>} : memref<324x4xf32, #tpu.memory_space<vmem>>, vector<16x4xf32>,
    %c0_65 = arith.constant 0 : index
    %c15 = arith.constant 15 : index
    %c0_66 = arith.constant 0 : index
    %c0_67 = arith.constant 0 : index
    %49 = vector.load %arg1[%c0_65, %c15, %c0_66, %c0_67] : memref<1x16x16x4xf32, #tpu.memory_space<vmem>>, vector<1x1x16x4xf32>
    %50 = vector.shape_cast %49 : vector<1x1x16x4xf32> to vector<16x4xf32>
    %c289 = arith.constant 289 : index
    %c0_68 = arith.constant 0 : index
    %51 = vector.load %arg9[%c289, %c0_68] : memref<324x4xf32, #tpu.memory_space<vmem>>, vector<16x4xf32>
    tpu.vector_store %arg9[%c289, %c0_68], %50 {strides = array<i32>} : memref<324x4xf32, #tpu.memory_space<vmem>>, vector<16x4xf32>,
    %c0_69 = arith.constant 0 : index
    %c0_70 = arith.constant 0 : index
    %52 = vector.load %arg3[%c0_69, %c0_70] : memref<1x8xf32, #tpu.memory_space<vmem>>, vector<1x8xf32>
    %c0_71 = arith.constant 0 : index
    %c0_72 = arith.constant 0 : index
    %53 = vector.load %arg4[%c0_71, %c0_72] : memref<1x8xf32, #tpu.memory_space<vmem>>, vector<1x8xf32>
    %cst_73 = arith.constant 0.000000e+00 : f32
    %54 = vector.broadcast %cst_73 : f32 to vector<128x8xf32>
    %c0_74 = arith.constant 0 : index
    %c0_75 = arith.constant 0 : index
    %55 = vector.load %arg9[%c0_74, %c0_75] : memref<324x4xf32, #tpu.memory_space<vmem>>, vector<128x4xf32>
    %c0_76 = arith.constant 0 : index
    %c0_77 = arith.constant 0 : index
    %c0_78 = arith.constant 0 : index
    %c0_79 = arith.constant 0 : index
    %56 = vector.load %arg2[%c0_76, %c0_77, %c0_78, %c0_79] : memref<3x3x4x8xf32, #tpu.memory_space<vmem>>, vector<1x1x4x8xf32>
    %57 = vector.shape_cast %56 : vector<1x1x4x8xf32> to vector<4x8xf32>
    %cst_80 = arith.constant dense<0.000000e+00> : vector<128x8xf32>
    %58 = tpu.matmul %55, %57, %cst_80 {dimension_numbers = #tpu.dot_dimension_numbers<[1], [0], [0], [1], [0, 0, 1, 1], [], []>} : vector<128x4xf32>, vector<4x8xf32>, vector<128x8xf32> -> vector<128x8xf32>
    %59 = arith.addf %54, %58 : vector<128x8xf32>
    %c1_81 = arith.constant 1 : index
    %c0_82 = arith.constant 0 : index
    %60 = vector.load %arg9[%c1_81, %c0_82] : memref<324x4xf32, #tpu.memory_space<vmem>>, vector<128x4xf32>
    %c0_83 = arith.constant 0 : index
    %c1_84 = arith.constant 1 : index
    %c0_85 = arith.constant 0 : index
    %c0_86 = arith.constant 0 : index
    %61 = vector.load %arg2[%c0_83, %c1_84, %c0_85, %c0_86] : memref<3x3x4x8xf32, #tpu.memory_space<vmem>>, vector<1x1x4x8xf32>
    %62 = vector.shape_cast %61 : vector<1x1x4x8xf32> to vector<4x8xf32>
    %cst_87 = arith.constant dense<0.000000e+00> : vector<128x8xf32>
    %63 = tpu.matmul %60, %62, %cst_87 {dimension_numbers = #tpu.dot_dimension_numbers<[1], [0], [0], [1], [0, 0, 1, 1], [], []>} : vector<128x4xf32>, vector<4x8xf32>, vector<128x8xf32> -> vector<128x8xf32>
    %64 = arith.addf %59, %63 : vector<128x8xf32>
    %c2_88 = arith.constant 2 : index
    %c0_89 = arith.constant 0 : index
    %65 = vector.load %arg9[%c2_88, %c0_89] : memref<324x4xf32, #tpu.memory_space<vmem>>, vector<128x4xf32>
    %c0_90 = arith.constant 0 : index
    %c2_91 = arith.constant 2 : index
    %c0_92 = arith.constant 0 : index
    %c0_93 = arith.constant 0 : index
    %66 = vector.load %arg2[%c0_90, %c2_91, %c0_92, %c0_93] : memref<3x3x4x8xf32, #tpu.memory_space<vmem>>, vector<1x1x4x8xf32>
    %67 = vector.shape_cast %66 : vector<1x1x4x8xf32> to vector<4x8xf32>
    %cst_94 = arith.constant dense<0.000000e+00> : vector<128x8xf32>
    %68 = tpu.matmul %65, %67, %cst_94 {dimension_numbers = #tpu.dot_dimension_numbers<[1], [0], [0], [1], [0, 0, 1, 1], [], []>} : vector<128x4xf32>, vector<4x8xf32>, vector<128x8xf32> -> vector<128x8xf32>
    %69 = arith.addf %64, %68 : vector<128x8xf32>
    %c18 = arith.constant 18 : index
    %c0_95 = arith.constant 0 : index
    %70 = vector.load %arg9[%c18, %c0_95] : memref<324x4xf32, #tpu.memory_space<vmem>>, vector<128x4xf32>
    %c1_96 = arith.constant 1 : index
    %c0_97 = arith.constant 0 : index
    %c0_98 = arith.constant 0 : index
    %c0_99 = arith.constant 0 : index
    %71 = vector.load %arg2[%c1_96, %c0_97, %c0_98, %c0_99] : memref<3x3x4x8xf32, #tpu.memory_space<vmem>>, vector<1x1x4x8xf32>
    %72 = vector.shape_cast %71 : vector<1x1x4x8xf32> to vector<4x8xf32>
    %cst_100 = arith.constant dense<0.000000e+00> : vector<128x8xf32>
    %73 = tpu.matmul %70, %72, %cst_100 {dimension_numbers = #tpu.dot_dimension_numbers<[1], [0], [0], [1], [0, 0, 1, 1], [], []>} : vector<128x4xf32>, vector<4x8xf32>, vector<128x8xf32> -> vector<128x8xf32>
    %74 = arith.addf %69, %73 : vector<128x8xf32>
    %c19_101 = arith.constant 19 : index
    %c0_102 = arith.constant 0 : index
    %75 = vector.load %arg9[%c19_101, %c0_102] : memref<324x4xf32, #tpu.memory_space<vmem>>, vector<128x4xf32>
    %c1_103 = arith.constant 1 : index
    %c1_104 = arith.constant 1 : index
    %c0_105 = arith.constant 0 : index
    %c0_106 = arith.constant 0 : index
    %76 = vector.load %arg2[%c1_103, %c1_104, %c0_105, %c0_106] : memref<3x3x4x8xf32, #tpu.memory_space<vmem>>, vector<1x1x4x8xf32>
    %77 = vector.shape_cast %76 : vector<1x1x4x8xf32> to vector<4x8xf32>
    %cst_107 = arith.constant dense<0.000000e+00> : vector<128x8xf32>
    %78 = tpu.matmul %75, %77, %cst_107 {dimension_numbers = #tpu.dot_dimension_numbers<[1], [0], [0], [1], [0, 0, 1, 1], [], []>} : vector<128x4xf32>, vector<4x8xf32>, vector<128x8xf32> -> vector<128x8xf32>
    %79 = arith.addf %74, %78 : vector<128x8xf32>
    %c20 = arith.constant 20 : index
    %c0_108 = arith.constant 0 : index
    %80 = vector.load %arg9[%c20, %c0_108] : memref<324x4xf32, #tpu.memory_space<vmem>>, vector<128x4xf32>
    %c1_109 = arith.constant 1 : index
    %c2_110 = arith.constant 2 : index
    %c0_111 = arith.constant 0 : index
    %c0_112 = arith.constant 0 : index
    %81 = vector.load %arg2[%c1_109, %c2_110, %c0_111, %c0_112] : memref<3x3x4x8xf32, #tpu.memory_space<vmem>>, vector<1x1x4x8xf32>
    %82 = vector.shape_cast %81 : vector<1x1x4x8xf32> to vector<4x8xf32>
    %cst_113 = arith.constant dense<0.000000e+00> : vector<128x8xf32>
    %83 = tpu.matmul %80, %82, %cst_113 {dimension_numbers = #tpu.dot_dimension_numbers<[1], [0], [0], [1], [0, 0, 1, 1], [], []>} : vector<128x4xf32>, vector<4x8xf32>, vector<128x8xf32> -> vector<128x8xf32>
    %84 = arith.addf %79, %83 : vector<128x8xf32>
    %c36 = arith.constant 36 : index
    %c0_114 = arith.constant 0 : index
    %85 = vector.load %arg9[%c36, %c0_114] : memref<324x4xf32, #tpu.memory_space<vmem>>, vector<128x4xf32>
    %c2_115 = arith.constant 2 : index
    %c0_116 = arith.constant 0 : index
    %c0_117 = arith.constant 0 : index
    %c0_118 = arith.constant 0 : index
    %86 = vector.load %arg2[%c2_115, %c0_116, %c0_117, %c0_118] : memref<3x3x4x8xf32, #tpu.memory_space<vmem>>, vector<1x1x4x8xf32>
    %87 = vector.shape_cast %86 : vector<1x1x4x8xf32> to vector<4x8xf32>
    %cst_119 = arith.constant dense<0.000000e+00> : vector<128x8xf32>
    %88 = tpu.matmul %85, %87, %cst_119 {dimension_numbers = #tpu.dot_dimension_numbers<[1], [0], [0], [1], [0, 0, 1, 1], [], []>} : vector<128x4xf32>, vector<4x8xf32>, vector<128x8xf32> -> vector<128x8xf32>
    %89 = arith.addf %84, %88 : vector<128x8xf32>
    %c37_120 = arith.constant 37 : index
    %c0_121 = arith.constant 0 : index
    %90 = vector.load %arg9[%c37_120, %c0_121] : memref<324x4xf32, #tpu.memory_space<vmem>>, vector<128x4xf32>
    %c2_122 = arith.constant 2 : index
    %c1_123 = arith.constant 1 : index
    %c0_124 = arith.constant 0 : index
    %c0_125 = arith.constant 0 : index
    %91 = vector.load %arg2[%c2_122, %c1_123, %c0_124, %c0_125] : memref<3x3x4x8xf32, #tpu.memory_space<vmem>>, vector<1x1x4x8xf32>
    %92 = vector.shape_cast %91 : vector<1x1x4x8xf32> to vector<4x8xf32>
    %cst_126 = arith.constant dense<0.000000e+00> : vector<128x8xf32>
    %93 = tpu.matmul %90, %92, %cst_126 {dimension_numbers = #tpu.dot_dimension_numbers<[1], [0], [0], [1], [0, 0, 1, 1], [], []>} : vector<128x4xf32>, vector<4x8xf32>, vector<128x8xf32> -> vector<128x8xf32>
    %94 = arith.addf %89, %93 : vector<128x8xf32>
    %c38 = arith.constant 38 : index
    %c0_127 = arith.constant 0 : index
    %95 = vector.load %arg9[%c38, %c0_127] : memref<324x4xf32, #tpu.memory_space<vmem>>, vector<128x4xf32>
    %c2_128 = arith.constant 2 : index
    %c2_129 = arith.constant 2 : index
    %c0_130 = arith.constant 0 : index
    %c0_131 = arith.constant 0 : index
    %96 = vector.load %arg2[%c2_128, %c2_129, %c0_130, %c0_131] : memref<3x3x4x8xf32, #tpu.memory_space<vmem>>, vector<1x1x4x8xf32>
    %97 = vector.shape_cast %96 : vector<1x1x4x8xf32> to vector<4x8xf32>
    %cst_132 = arith.constant dense<0.000000e+00> : vector<128x8xf32>
    %98 = tpu.matmul %95, %97, %cst_132 {dimension_numbers = #tpu.dot_dimension_numbers<[1], [0], [0], [1], [0, 0, 1, 1], [], []>} : vector<128x4xf32>, vector<4x8xf32>, vector<128x8xf32> -> vector<128x8xf32>
    %99 = arith.addf %94, %98 : vector<128x8xf32>
    %100 = vector.broadcast %52 : vector<1x8xf32> to vector<128x8xf32>
    %101 = arith.mulf %99, %100 : vector<128x8xf32>
    %102 = vector.broadcast %53 : vector<1x8xf32> to vector<128x8xf32>
    %103 = arith.addf %101, %102 : vector<128x8xf32>
    %cst_133 = arith.constant 0.000000e+00 : f32
    %104 = vector.broadcast %cst_133 : f32 to vector<128x8xf32>
    %105 = arith.maximumf %103, %104 : vector<128x8xf32>
    %c19_134 = arith.constant 19 : index
    %c0_135 = arith.constant 0 : index
    %106 = vector.load %arg10[%c19_134, %c0_135] : memref<324x8xf32, #tpu.memory_space<vmem>>, vector<128x8xf32>
    tpu.vector_store %arg10[%c19_134, %c0_135], %105 {strides = array<i32>} : memref<324x8xf32, #tpu.memory_space<vmem>>, vector<128x8xf32>,
    %cst_136 = arith.constant 0.000000e+00 : f32
    %107 = vector.broadcast %cst_136 : f32 to vector<128x8xf32>
    %c128 = arith.constant 128 : index
    %c0_137 = arith.constant 0 : index
    %108 = vector.load %arg9[%c128, %c0_137] : memref<324x4xf32, #tpu.memory_space<vmem>>, vector<128x4xf32>
    %c0_138 = arith.constant 0 : index
    %c0_139 = arith.constant 0 : index
    %c0_140 = arith.constant 0 : index
    %c0_141 = arith.constant 0 : index
    %109 = vector.load %arg2[%c0_138, %c0_139, %c0_140, %c0_141] : memref<3x3x4x8xf32, #tpu.memory_space<vmem>>, vector<1x1x4x8xf32>
    %110 = vector.shape_cast %109 : vector<1x1x4x8xf32> to vector<4x8xf32>
    %cst_142 = arith.constant dense<0.000000e+00> : vector<128x8xf32>
    %111 = tpu.matmul %108, %110, %cst_142 {dimension_numbers = #tpu.dot_dimension_numbers<[1], [0], [0], [1], [0, 0, 1, 1], [], []>} : vector<128x4xf32>, vector<4x8xf32>, vector<128x8xf32> -> vector<128x8xf32>
    %112 = arith.addf %107, %111 : vector<128x8xf32>
    %c129 = arith.constant 129 : index
    %c0_143 = arith.constant 0 : index
    %113 = vector.load %arg9[%c129, %c0_143] : memref<324x4xf32, #tpu.memory_space<vmem>>, vector<128x4xf32>
    %c0_144 = arith.constant 0 : index
    %c1_145 = arith.constant 1 : index
    %c0_146 = arith.constant 0 : index
    %c0_147 = arith.constant 0 : index
    %114 = vector.load %arg2[%c0_144, %c1_145, %c0_146, %c0_147] : memref<3x3x4x8xf32, #tpu.memory_space<vmem>>, vector<1x1x4x8xf32>
    %115 = vector.shape_cast %114 : vector<1x1x4x8xf32> to vector<4x8xf32>
    %cst_148 = arith.constant dense<0.000000e+00> : vector<128x8xf32>
    %116 = tpu.matmul %113, %115, %cst_148 {dimension_numbers = #tpu.dot_dimension_numbers<[1], [0], [0], [1], [0, 0, 1, 1], [], []>} : vector<128x4xf32>, vector<4x8xf32>, vector<128x8xf32> -> vector<128x8xf32>
    %117 = arith.addf %112, %116 : vector<128x8xf32>
    %c130 = arith.constant 130 : index
    %c0_149 = arith.constant 0 : index
    %118 = vector.load %arg9[%c130, %c0_149] : memref<324x4xf32, #tpu.memory_space<vmem>>, vector<128x4xf32>
    %c0_150 = arith.constant 0 : index
    %c2_151 = arith.constant 2 : index
    %c0_152 = arith.constant 0 : index
    %c0_153 = arith.constant 0 : index
    %119 = vector.load %arg2[%c0_150, %c2_151, %c0_152, %c0_153] : memref<3x3x4x8xf32, #tpu.memory_space<vmem>>, vector<1x1x4x8xf32>
    %120 = vector.shape_cast %119 : vector<1x1x4x8xf32> to vector<4x8xf32>
    %cst_154 = arith.constant dense<0.000000e+00> : vector<128x8xf32>
    %121 = tpu.matmul %118, %120, %cst_154 {dimension_numbers = #tpu.dot_dimension_numbers<[1], [0], [0], [1], [0, 0, 1, 1], [], []>} : vector<128x4xf32>, vector<4x8xf32>, vector<128x8xf32> -> vector<128x8xf32>
    %122 = arith.addf %117, %121 : vector<128x8xf32>
    %c146 = arith.constant 146 : index
    %c0_155 = arith.constant 0 : index
    %123 = vector.load %arg9[%c146, %c0_155] : memref<324x4xf32, #tpu.memory_space<vmem>>, vector<128x4xf32>
    %c1_156 = arith.constant 1 : index
    %c0_157 = arith.constant 0 : index
    %c0_158 = arith.constant 0 : index
    %c0_159 = arith.constant 0 : index
    %124 = vector.load %arg2[%c1_156, %c0_157, %c0_158, %c0_159] : memref<3x3x4x8xf32, #tpu.memory_space<vmem>>, vector<1x1x4x8xf32>
    %125 = vector.shape_cast %124 : vector<1x1x4x8xf32> to vector<4x8xf32>
    %cst_160 = arith.constant dense<0.000000e+00> : vector<128x8xf32>
    %126 = tpu.matmul %123, %125, %cst_160 {dimension_numbers = #tpu.dot_dimension_numbers<[1], [0], [0], [1], [0, 0, 1, 1], [], []>} : vector<128x4xf32>, vector<4x8xf32>, vector<128x8xf32> -> vector<128x8xf32>
    %127 = arith.addf %122, %126 : vector<128x8xf32>
    %c147 = arith.constant 147 : index
    %c0_161 = arith.constant 0 : index
    %128 = vector.load %arg9[%c147, %c0_161] : memref<324x4xf32, #tpu.memory_space<vmem>>, vector<128x4xf32>
    %c1_162 = arith.constant 1 : index
    %c1_163 = arith.constant 1 : index
    %c0_164 = arith.constant 0 : index
    %c0_165 = arith.constant 0 : index
    %129 = vector.load %arg2[%c1_162, %c1_163, %c0_164, %c0_165] : memref<3x3x4x8xf32, #tpu.memory_space<vmem>>, vector<1x1x4x8xf32>
    %130 = vector.shape_cast %129 : vector<1x1x4x8xf32> to vector<4x8xf32>
    %cst_166 = arith.constant dense<0.000000e+00> : vector<128x8xf32>
    %131 = tpu.matmul %128, %130, %cst_166 {dimension_numbers = #tpu.dot_dimension_numbers<[1], [0], [0], [1], [0, 0, 1, 1], [], []>} : vector<128x4xf32>, vector<4x8xf32>, vector<128x8xf32> -> vector<128x8xf32>
    %132 = arith.addf %127, %131 : vector<128x8xf32>
    %c148 = arith.constant 148 : index
    %c0_167 = arith.constant 0 : index
    %133 = vector.load %arg9[%c148, %c0_167] : memref<324x4xf32, #tpu.memory_space<vmem>>, vector<128x4xf32>
    %c1_168 = arith.constant 1 : index
    %c2_169 = arith.constant 2 : index
    %c0_170 = arith.constant 0 : index
    %c0_171 = arith.constant 0 : index
    %134 = vector.load %arg2[%c1_168, %c2_169, %c0_170, %c0_171] : memref<3x3x4x8xf32, #tpu.memory_space<vmem>>, vector<1x1x4x8xf32>
    %135 = vector.shape_cast %134 : vector<1x1x4x8xf32> to vector<4x8xf32>
    %cst_172 = arith.constant dense<0.000000e+00> : vector<128x8xf32>
    %136 = tpu.matmul %133, %135, %cst_172 {dimension_numbers = #tpu.dot_dimension_numbers<[1], [0], [0], [1], [0, 0, 1, 1], [], []>} : vector<128x4xf32>, vector<4x8xf32>, vector<128x8xf32> -> vector<128x8xf32>
    %137 = arith.addf %132, %136 : vector<128x8xf32>
    %c164 = arith.constant 164 : index
    %c0_173 = arith.constant 0 : index
    %138 = vector.load %arg9[%c164, %c0_173] : memref<324x4xf32, #tpu.memory_space<vmem>>, vector<128x4xf32>
    %c2_174 = arith.constant 2 : index
    %c0_175 = arith.constant 0 : index
    %c0_176 = arith.constant 0 : index
    %c0_177 = arith.constant 0 : index
    %139 = vector.load %arg2[%c2_174, %c0_175, %c0_176, %c0_177] : memref<3x3x4x8xf32, #tpu.memory_space<vmem>>, vector<1x1x4x8xf32>
    %140 = vector.shape_cast %139 : vector<1x1x4x8xf32> to vector<4x8xf32>
    %cst_178 = arith.constant dense<0.000000e+00> : vector<128x8xf32>
    %141 = tpu.matmul %138, %140, %cst_178 {dimension_numbers = #tpu.dot_dimension_numbers<[1], [0], [0], [1], [0, 0, 1, 1], [], []>} : vector<128x4xf32>, vector<4x8xf32>, vector<128x8xf32> -> vector<128x8xf32>
    %142 = arith.addf %137, %141 : vector<128x8xf32>
    %c165 = arith.constant 165 : index
    %c0_179 = arith.constant 0 : index
    %143 = vector.load %arg9[%c165, %c0_179] : memref<324x4xf32, #tpu.memory_space<vmem>>, vector<128x4xf32>
    %c2_180 = arith.constant 2 : index
    %c1_181 = arith.constant 1 : index
    %c0_182 = arith.constant 0 : index
    %c0_183 = arith.constant 0 : index
    %144 = vector.load %arg2[%c2_180, %c1_181, %c0_182, %c0_183] : memref<3x3x4x8xf32, #tpu.memory_space<vmem>>, vector<1x1x4x8xf32>
    %145 = vector.shape_cast %144 : vector<1x1x4x8xf32> to vector<4x8xf32>
    %cst_184 = arith.constant dense<0.000000e+00> : vector<128x8xf32>
    %146 = tpu.matmul %143, %145, %cst_184 {dimension_numbers = #tpu.dot_dimension_numbers<[1], [0], [0], [1], [0, 0, 1, 1], [], []>} : vector<128x4xf32>, vector<4x8xf32>, vector<128x8xf32> -> vector<128x8xf32>
    %147 = arith.addf %142, %146 : vector<128x8xf32>
    %c166 = arith.constant 166 : index
    %c0_185 = arith.constant 0 : index
    %148 = vector.load %arg9[%c166, %c0_185] : memref<324x4xf32, #tpu.memory_space<vmem>>, vector<128x4xf32>
    %c2_186 = arith.constant 2 : index
    %c2_187 = arith.constant 2 : index
    %c0_188 = arith.constant 0 : index
    %c0_189 = arith.constant 0 : index
    %149 = vector.load %arg2[%c2_186, %c2_187, %c0_188, %c0_189] : memref<3x3x4x8xf32, #tpu.memory_space<vmem>>, vector<1x1x4x8xf32>
    %150 = vector.shape_cast %149 : vector<1x1x4x8xf32> to vector<4x8xf32>
    %cst_190 = arith.constant dense<0.000000e+00> : vector<128x8xf32>
    %151 = tpu.matmul %148, %150, %cst_190 {dimension_numbers = #tpu.dot_dimension_numbers<[1], [0], [0], [1], [0, 0, 1, 1], [], []>} : vector<128x4xf32>, vector<4x8xf32>, vector<128x8xf32> -> vector<128x8xf32>
    %152 = arith.addf %147, %151 : vector<128x8xf32>
    %153 = vector.broadcast %52 : vector<1x8xf32> to vector<128x8xf32>
    %154 = arith.mulf %152, %153 : vector<128x8xf32>
    %155 = vector.broadcast %53 : vector<1x8xf32> to vector<128x8xf32>
    %156 = arith.addf %154, %155 : vector<128x8xf32>
    %cst_191 = arith.constant 0.000000e+00 : f32
    %157 = vector.broadcast %cst_191 : f32 to vector<128x8xf32>
    %158 = arith.maximumf %156, %157 : vector<128x8xf32>
    %c147_192 = arith.constant 147 : index
    %c0_193 = arith.constant 0 : index
    %159 = vector.load %arg10[%c147_192, %c0_193] : memref<324x8xf32, #tpu.memory_space<vmem>>, vector<128x8xf32>
    tpu.vector_store %arg10[%c147_192, %c0_193], %158 {strides = array<i32>} : memref<324x8xf32, #tpu.memory_space<vmem>>, vector<128x8xf32>,
    %cst_194 = arith.constant 0.000000e+00 : f32
    %160 = vector.broadcast %cst_194 : f32 to vector<30x8xf32>
    %c256 = arith.constant 256 : index
    %c0_195 = arith.constant 0 : index
    %161 = vector.load %arg9[%c256, %c0_195] : memref<324x4xf32, #tpu.memory_space<vmem>>, vector<30x4xf32>
    %c0_196 = arith.constant 0 : index
    %c0_197 = arith.constant 0 : index
    %c0_198 = arith.constant 0 : index
    %c0_199 = arith.constant 0 : index
    %162 = vector.load %arg2[%c0_196, %c0_197, %c0_198, %c0_199] : memref<3x3x4x8xf32, #tpu.memory_space<vmem>>, vector<1x1x4x8xf32>
    %163 = vector.shape_cast %162 : vector<1x1x4x8xf32> to vector<4x8xf32>
    %cst_200 = arith.constant dense<0.000000e+00> : vector<30x8xf32>
    %164 = tpu.matmul %161, %163, %cst_200 {dimension_numbers = #tpu.dot_dimension_numbers<[1], [0], [0], [1], [0, 0, 1, 1], [], []>} : vector<30x4xf32>, vector<4x8xf32>, vector<30x8xf32> -> vector<30x8xf32>
    %165 = arith.addf %160, %164 : vector<30x8xf32>
    %c257 = arith.constant 257 : index
    %c0_201 = arith.constant 0 : index
    %166 = vector.load %arg9[%c257, %c0_201] : memref<324x4xf32, #tpu.memory_space<vmem>>, vector<30x4xf32>
    %c0_202 = arith.constant 0 : index
    %c1_203 = arith.constant 1 : index
    %c0_204 = arith.constant 0 : index
    %c0_205 = arith.constant 0 : index
    %167 = vector.load %arg2[%c0_202, %c1_203, %c0_204, %c0_205] : memref<3x3x4x8xf32, #tpu.memory_space<vmem>>, vector<1x1x4x8xf32>
    %168 = vector.shape_cast %167 : vector<1x1x4x8xf32> to vector<4x8xf32>
    %cst_206 = arith.constant dense<0.000000e+00> : vector<30x8xf32>
    %169 = tpu.matmul %166, %168, %cst_206 {dimension_numbers = #tpu.dot_dimension_numbers<[1], [0], [0], [1], [0, 0, 1, 1], [], []>} : vector<30x4xf32>, vector<4x8xf32>, vector<30x8xf32> -> vector<30x8xf32>
    %170 = arith.addf %165, %169 : vector<30x8xf32>
    %c258 = arith.constant 258 : index
    %c0_207 = arith.constant 0 : index
    %171 = vector.load %arg9[%c258, %c0_207] : memref<324x4xf32, #tpu.memory_space<vmem>>, vector<30x4xf32>
    %c0_208 = arith.constant 0 : index
    %c2_209 = arith.constant 2 : index
    %c0_210 = arith.constant 0 : index
    %c0_211 = arith.constant 0 : index
    %172 = vector.load %arg2[%c0_208, %c2_209, %c0_210, %c0_211] : memref<3x3x4x8xf32, #tpu.memory_space<vmem>>, vector<1x1x4x8xf32>
    %173 = vector.shape_cast %172 : vector<1x1x4x8xf32> to vector<4x8xf32>
    %cst_212 = arith.constant dense<0.000000e+00> : vector<30x8xf32>
    %174 = tpu.matmul %171, %173, %cst_212 {dimension_numbers = #tpu.dot_dimension_numbers<[1], [0], [0], [1], [0, 0, 1, 1], [], []>} : vector<30x4xf32>, vector<4x8xf32>, vector<30x8xf32> -> vector<30x8xf32>
    %175 = arith.addf %170, %174 : vector<30x8xf32>
    %c274 = arith.constant 274 : index
    %c0_213 = arith.constant 0 : index
    %176 = vector.load %arg9[%c274, %c0_213] : memref<324x4xf32, #tpu.memory_space<vmem>>, vector<30x4xf32>
    %c1_214 = arith.constant 1 : index
    %c0_215 = arith.constant 0 : index
    %c0_216 = arith.constant 0 : index
    %c0_217 = arith.constant 0 : index
    %177 = vector.load %arg2[%c1_214, %c0_215, %c0_216, %c0_217] : memref<3x3x4x8xf32, #tpu.memory_space<vmem>>, vector<1x1x4x8xf32>
    %178 = vector.shape_cast %177 : vector<1x1x4x8xf32> to vector<4x8xf32>
    %cst_218 = arith.constant dense<0.000000e+00> : vector<30x8xf32>
    %179 = tpu.matmul %176, %178, %cst_218 {dimension_numbers = #tpu.dot_dimension_numbers<[1], [0], [0], [1], [0, 0, 1, 1], [], []>} : vector<30x4xf32>, vector<4x8xf32>, vector<30x8xf32> -> vector<30x8xf32>
    %180 = arith.addf %175, %179 : vector<30x8xf32>
    %c275 = arith.constant 275 : index
    %c0_219 = arith.constant 0 : index
    %181 = vector.load %arg9[%c275, %c0_219] : memref<324x4xf32, #tpu.memory_space<vmem>>, vector<30x4xf32>
    %c1_220 = arith.constant 1 : index
    %c1_221 = arith.constant 1 : index
    %c0_222 = arith.constant 0 : index
    %c0_223 = arith.constant 0 : index
    %182 = vector.load %arg2[%c1_220, %c1_221, %c0_222, %c0_223] : memref<3x3x4x8xf32, #tpu.memory_space<vmem>>, vector<1x1x4x8xf32>
    %183 = vector.shape_cast %182 : vector<1x1x4x8xf32> to vector<4x8xf32>
    %cst_224 = arith.constant dense<0.000000e+00> : vector<30x8xf32>
    %184 = tpu.matmul %181, %183, %cst_224 {dimension_numbers = #tpu.dot_dimension_numbers<[1], [0], [0], [1], [0, 0, 1, 1], [], []>} : vector<30x4xf32>, vector<4x8xf32>, vector<30x8xf32> -> vector<30x8xf32>
    %185 = arith.addf %180, %184 : vector<30x8xf32>
    %c276 = arith.constant 276 : index
    %c0_225 = arith.constant 0 : index
    %186 = vector.load %arg9[%c276, %c0_225] : memref<324x4xf32, #tpu.memory_space<vmem>>, vector<30x4xf32>
    %c1_226 = arith.constant 1 : index
    %c2_227 = arith.constant 2 : index
    %c0_228 = arith.constant 0 : index
    %c0_229 = arith.constant 0 : index
    %187 = vector.load %arg2[%c1_226, %c2_227, %c0_228, %c0_229] : memref<3x3x4x8xf32, #tpu.memory_space<vmem>>, vector<1x1x4x8xf32>
    %188 = vector.shape_cast %187 : vector<1x1x4x8xf32> to vector<4x8xf32>
    %cst_230 = arith.constant dense<0.000000e+00> : vector<30x8xf32>
    %189 = tpu.matmul %186, %188, %cst_230 {dimension_numbers = #tpu.dot_dimension_numbers<[1], [0], [0], [1], [0, 0, 1, 1], [], []>} : vector<30x4xf32>, vector<4x8xf32>, vector<30x8xf32> -> vector<30x8xf32>
    %190 = arith.addf %185, %189 : vector<30x8xf32>
    %c292 = arith.constant 292 : index
    %c0_231 = arith.constant 0 : index
    %191 = vector.load %arg9[%c292, %c0_231] : memref<324x4xf32, #tpu.memory_space<vmem>>, vector<30x4xf32>
    %c2_232 = arith.constant 2 : index
    %c0_233 = arith.constant 0 : index
    %c0_234 = arith.constant 0 : index
    %c0_235 = arith.constant 0 : index
    %192 = vector.load %arg2[%c2_232, %c0_233, %c0_234, %c0_235] : memref<3x3x4x8xf32, #tpu.memory_space<vmem>>, vector<1x1x4x8xf32>
    %193 = vector.shape_cast %192 : vector<1x1x4x8xf32> to vector<4x8xf32>
    %cst_236 = arith.constant dense<0.000000e+00> : vector<30x8xf32>
    %194 = tpu.matmul %191, %193, %cst_236 {dimension_numbers = #tpu.dot_dimension_numbers<[1], [0], [0], [1], [0, 0, 1, 1], [], []>} : vector<30x4xf32>, vector<4x8xf32>, vector<30x8xf32> -> vector<30x8xf32>
    %195 = arith.addf %190, %194 : vector<30x8xf32>
    %c293 = arith.constant 293 : index
    %c0_237 = arith.constant 0 : index
    %196 = vector.load %arg9[%c293, %c0_237] : memref<324x4xf32, #tpu.memory_space<vmem>>, vector<30x4xf32>
    %c2_238 = arith.constant 2 : index
    %c1_239 = arith.constant 1 : index
    %c0_240 = arith.constant 0 : index
    %c0_241 = arith.constant 0 : index
    %197 = vector.load %arg2[%c2_238, %c1_239, %c0_240, %c0_241] : memref<3x3x4x8xf32, #tpu.memory_space<vmem>>, vector<1x1x4x8xf32>
    %198 = vector.shape_cast %197 : vector<1x1x4x8xf32> to vector<4x8xf32>
    %cst_242 = arith.constant dense<0.000000e+00> : vector<30x8xf32>
    %199 = tpu.matmul %196, %198, %cst_242 {dimension_numbers = #tpu.dot_dimension_numbers<[1], [0], [0], [1], [0, 0, 1, 1], [], []>} : vector<30x4xf32>, vector<4x8xf32>, vector<30x8xf32> -> vector<30x8xf32>
    %200 = arith.addf %195, %199 : vector<30x8xf32>
    %c294 = arith.constant 294 : index
    %c0_243 = arith.constant 0 : index
    %201 = vector.load %arg9[%c294, %c0_243] : memref<324x4xf32, #tpu.memory_space<vmem>>, vector<30x4xf32>
    %c2_244 = arith.constant 2 : index
    %c2_245 = arith.constant 2 : index
    %c0_246 = arith.constant 0 : index
    %c0_247 = arith.constant 0 : index
    %202 = vector.load %arg2[%c2_244, %c2_245, %c0_246, %c0_247] : memref<3x3x4x8xf32, #tpu.memory_space<vmem>>, vector<1x1x4x8xf32>
    %203 = vector.shape_cast %202 : vector<1x1x4x8xf32> to vector<4x8xf32>
    %cst_248 = arith.constant dense<0.000000e+00> : vector<30x8xf32>
    %204 = tpu.matmul %201, %203, %cst_248 {dimension_numbers = #tpu.dot_dimension_numbers<[1], [0], [0], [1], [0, 0, 1, 1], [], []>} : vector<30x4xf32>, vector<4x8xf32>, vector<30x8xf32> -> vector<30x8xf32>
    %205 = arith.addf %200, %204 : vector<30x8xf32>
    %206 = vector.broadcast %52 : vector<1x8xf32> to vector<30x8xf32>
    %207 = arith.mulf %205, %206 : vector<30x8xf32>
    %208 = vector.broadcast %53 : vector<1x8xf32> to vector<30x8xf32>
    %209 = arith.addf %207, %208 : vector<30x8xf32>
    %cst_249 = arith.constant 0.000000e+00 : f32
    %210 = vector.broadcast %cst_249 : f32 to vector<30x8xf32>
    %211 = arith.maximumf %209, %210 : vector<30x8xf32>
    %c275_250 = arith.constant 275 : index
    %c0_251 = arith.constant 0 : index
    %212 = vector.load %arg10[%c275_250, %c0_251] : memref<324x8xf32, #tpu.memory_space<vmem>>, vector<30x8xf32>
    tpu.vector_store %arg10[%c275_250, %c0_251], %211 {strides = array<i32>} : memref<324x8xf32, #tpu.memory_space<vmem>>, vector<30x8xf32>,
    %cst_252 = arith.constant 0.000000e+00 : f32
    %213 = vector.broadcast %cst_252 : f32 to vector<2x8xf32>
    %c35 = arith.constant 35 : index
    %c0_253 = arith.constant 0 : index
    %214 = vector.load %arg10[%c35, %c0_253] : memref<324x8xf32, #tpu.memory_space<vmem>>, vector<2x8xf32>
    tpu.vector_store %arg10[%c35, %c0_253], %213 {strides = array<i32>} : memref<324x8xf32, #tpu.memory_space<vmem>>, vector<2x8xf32>,
    %cst_254 = arith.constant 0.000000e+00 : f32
    %215 = vector.broadcast %cst_254 : f32 to vector<2x8xf32>
    %c53 = arith.constant 53 : index
    %c0_255 = arith.constant 0 : index
    %216 = vector.load %arg10[%c53, %c0_255] : memref<324x8xf32, #tpu.memory_space<vmem>>, vector<2x8xf32>
    tpu.vector_store %arg10[%c53, %c0_255], %215 {strides = array<i32>} : memref<324x8xf32, #tpu.memory_space<vmem>>, vector<2x8xf32>,
    %cst_256 = arith.constant 0.000000e+00 : f32
    %217 = vector.broadcast %cst_256 : f32 to vector<2x8xf32>
    %c71 = arith.constant 71 : index
    %c0_257 = arith.constant 0 : index
    %218 = vector.load %arg10[%c71, %c0_257] : memref<324x8xf32, #tpu.memory_space<vmem>>, vector<2x8xf32>
    tpu.vector_store %arg10[%c71, %c0_257], %217 {strides = array<i32>} : memref<324x8xf32, #tpu.memory_space<vmem>>, vector<2x8xf32>,
    %cst_258 = arith.constant 0.000000e+00 : f32
    %219 = vector.broadcast %cst_258 : f32 to vector<2x8xf32>
    %c89 = arith.constant 89 : index
    %c0_259 = arith.constant 0 : index
    %220 = vector.load %arg10[%c89, %c0_259] : memref<324x8xf32, #tpu.memory_space<vmem>>, vector<2x8xf32>
    tpu.vector_store %arg10[%c89, %c0_259], %219 {strides = array<i32>} : memref<324x8xf32, #tpu.memory_space<vmem>>, vector<2x8xf32>,
    %cst_260 = arith.constant 0.000000e+00 : f32
    %221 = vector.broadcast %cst_260 : f32 to vector<2x8xf32>
    %c107 = arith.constant 107 : index
    %c0_261 = arith.constant 0 : index
    %222 = vector.load %arg10[%c107, %c0_261] : memref<324x8xf32, #tpu.memory_space<vmem>>, vector<2x8xf32>
    tpu.vector_store %arg10[%c107, %c0_261], %221 {strides = array<i32>} : memref<324x8xf32, #tpu.memory_space<vmem>>, vector<2x8xf32>,
    %cst_262 = arith.constant 0.000000e+00 : f32
    %223 = vector.broadcast %cst_262 : f32 to vector<2x8xf32>
    %c125 = arith.constant 125 : index
    %c0_263 = arith.constant 0 : index
    %224 = vector.load %arg10[%c125, %c0_263] : memref<324x8xf32, #tpu.memory_space<vmem>>, vector<2x8xf32>
    tpu.vector_store %arg10[%c125, %c0_263], %223 {strides = array<i32>} : memref<324x8xf32, #tpu.memory_space<vmem>>, vector<2x8xf32>,
    %cst_264 = arith.constant 0.000000e+00 : f32
    %225 = vector.broadcast %cst_264 : f32 to vector<2x8xf32>
    %c143 = arith.constant 143 : index
    %c0_265 = arith.constant 0 : index
    %226 = vector.load %arg10[%c143, %c0_265] : memref<324x8xf32, #tpu.memory_space<vmem>>, vector<2x8xf32>
    tpu.vector_store %arg10[%c143, %c0_265], %225 {strides = array<i32>} : memref<324x8xf32, #tpu.memory_space<vmem>>, vector<2x8xf32>,
    %cst_266 = arith.constant 0.000000e+00 : f32
    %227 = vector.broadcast %cst_266 : f32 to vector<2x8xf32>
    %c161 = arith.constant 161 : index
    %c0_267 = arith.constant 0 : index
    %228 = vector.load %arg10[%c161, %c0_267] : memref<324x8xf32, #tpu.memory_space<vmem>>, vector<2x8xf32>
    tpu.vector_store %arg10[%c161, %c0_267], %227 {strides = array<i32>} : memref<324x8xf32, #tpu.memory_space<vmem>>, vector<2x8xf32>,
    %cst_268 = arith.constant 0.000000e+00 : f32
    %229 = vector.broadcast %cst_268 : f32 to vector<2x8xf32>
    %c179 = arith.constant 179 : index
    %c0_269 = arith.constant 0 : index
    %230 = vector.load %arg10[%c179, %c0_269] : memref<324x8xf32, #tpu.memory_space<vmem>>, vector<2x8xf32>
    tpu.vector_store %arg10[%c179, %c0_269], %229 {strides = array<i32>} : memref<324x8xf32, #tpu.memory_space<vmem>>, vector<2x8xf32>,
    %cst_270 = arith.constant 0.000000e+00 : f32
    %231 = vector.broadcast %cst_270 : f32 to vector<2x8xf32>
    %c197 = arith.constant 197 : index
    %c0_271 = arith.constant 0 : index
    %232 = vector.load %arg10[%c197, %c0_271] : memref<324x8xf32, #tpu.memory_space<vmem>>, vector<2x8xf32>
    tpu.vector_store %arg10[%c197, %c0_271], %231 {strides = array<i32>} : memref<324x8xf32, #tpu.memory_space<vmem>>, vector<2x8xf32>,
    %cst_272 = arith.constant 0.000000e+00 : f32
    %233 = vector.broadcast %cst_272 : f32 to vector<2x8xf32>
    %c215 = arith.constant 215 : index
    %c0_273 = arith.constant 0 : index
    %234 = vector.load %arg10[%c215, %c0_273] : memref<324x8xf32, #tpu.memory_space<vmem>>, vector<2x8xf32>
    tpu.vector_store %arg10[%c215, %c0_273], %233 {strides = array<i32>} : memref<324x8xf32, #tpu.memory_space<vmem>>, vector<2x8xf32>,
    %cst_274 = arith.constant 0.000000e+00 : f32
    %235 = vector.broadcast %cst_274 : f32 to vector<2x8xf32>
    %c233 = arith.constant 233 : index
    %c0_275 = arith.constant 0 : index
    %236 = vector.load %arg10[%c233, %c0_275] : memref<324x8xf32, #tpu.memory_space<vmem>>, vector<2x8xf32>
    tpu.vector_store %arg10[%c233, %c0_275], %235 {strides = array<i32>} : memref<324x8xf32, #tpu.memory_space<vmem>>, vector<2x8xf32>,
    %cst_276 = arith.constant 0.000000e+00 : f32
    %237 = vector.broadcast %cst_276 : f32 to vector<2x8xf32>
    %c251 = arith.constant 251 : index
    %c0_277 = arith.constant 0 : index
    %238 = vector.load %arg10[%c251, %c0_277] : memref<324x8xf32, #tpu.memory_space<vmem>>, vector<2x8xf32>
    tpu.vector_store %arg10[%c251, %c0_277], %237 {strides = array<i32>} : memref<324x8xf32, #tpu.memory_space<vmem>>, vector<2x8xf32>,
    %cst_278 = arith.constant 0.000000e+00 : f32
    %239 = vector.broadcast %cst_278 : f32 to vector<2x8xf32>
    %c269 = arith.constant 269 : index
    %c0_279 = arith.constant 0 : index
    %240 = vector.load %arg10[%c269, %c0_279] : memref<324x8xf32, #tpu.memory_space<vmem>>, vector<2x8xf32>
    tpu.vector_store %arg10[%c269, %c0_279], %239 {strides = array<i32>} : memref<324x8xf32, #tpu.memory_space<vmem>>, vector<2x8xf32>,
    %cst_280 = arith.constant 0.000000e+00 : f32
    %241 = vector.broadcast %cst_280 : f32 to vector<2x8xf32>
    %c287 = arith.constant 287 : index
    %c0_281 = arith.constant 0 : index
    %242 = vector.load %arg10[%c287, %c0_281] : memref<324x8xf32, #tpu.memory_space<vmem>>, vector<2x8xf32>
    tpu.vector_store %arg10[%c287, %c0_281], %241 {strides = array<i32>} : memref<324x8xf32, #tpu.memory_space<vmem>>, vector<2x8xf32>,
    %c0_282 = arith.constant 0 : index
    %c0_283 = arith.constant 0 : index
    %243 = vector.load %arg6[%c0_282, %c0_283] : memref<1x8xf32, #tpu.memory_space<vmem>>, vector<1x8xf32>
    %c0_284 = arith.constant 0 : index
    %c0_285 = arith.constant 0 : index
    %244 = vector.load %arg7[%c0_284, %c0_285] : memref<1x8xf32, #tpu.memory_space<vmem>>, vector<1x8xf32>
    %cst_286 = arith.constant 0.000000e+00 : f32
    %245 = vector.broadcast %cst_286 : f32 to vector<128x8xf32>
    %c0_287 = arith.constant 0 : index
    %c0_288 = arith.constant 0 : index
    %246 = vector.load %arg10[%c0_287, %c0_288] : memref<324x8xf32, #tpu.memory_space<vmem>>, vector<128x8xf32>
    %c0_289 = arith.constant 0 : index
    %c0_290 = arith.constant 0 : index
    %c0_291 = arith.constant 0 : index
    %c0_292 = arith.constant 0 : index
    %247 = vector.load %arg5[%c0_289, %c0_290, %c0_291, %c0_292] : memref<3x3x8x8xf32, #tpu.memory_space<vmem>>, vector<1x1x8x8xf32>
    %248 = vector.shape_cast %247 : vector<1x1x8x8xf32> to vector<8x8xf32>
    %cst_293 = arith.constant dense<0.000000e+00> : vector<128x8xf32>
    %249 = tpu.matmul %246, %248, %cst_293 {dimension_numbers = #tpu.dot_dimension_numbers<[1], [0], [0], [1], [0, 0, 1, 1], [], []>} : vector<128x8xf32>, vector<8x8xf32>, vector<128x8xf32> -> vector<128x8xf32>
    %250 = arith.addf %245, %249 : vector<128x8xf32>
    %c1_294 = arith.constant 1 : index
    %c0_295 = arith.constant 0 : index
    %251 = vector.load %arg10[%c1_294, %c0_295] : memref<324x8xf32, #tpu.memory_space<vmem>>, vector<128x8xf32>
    %c0_296 = arith.constant 0 : index
    %c1_297 = arith.constant 1 : index
    %c0_298 = arith.constant 0 : index
    %c0_299 = arith.constant 0 : index
    %252 = vector.load %arg5[%c0_296, %c1_297, %c0_298, %c0_299] : memref<3x3x8x8xf32, #tpu.memory_space<vmem>>, vector<1x1x8x8xf32>
    %253 = vector.shape_cast %252 : vector<1x1x8x8xf32> to vector<8x8xf32>
    %cst_300 = arith.constant dense<0.000000e+00> : vector<128x8xf32>
    %254 = tpu.matmul %251, %253, %cst_300 {dimension_numbers = #tpu.dot_dimension_numbers<[1], [0], [0], [1], [0, 0, 1, 1], [], []>} : vector<128x8xf32>, vector<8x8xf32>, vector<128x8xf32> -> vector<128x8xf32>
    %255 = arith.addf %250, %254 : vector<128x8xf32>
    %c2_301 = arith.constant 2 : index
    %c0_302 = arith.constant 0 : index
    %256 = vector.load %arg10[%c2_301, %c0_302] : memref<324x8xf32, #tpu.memory_space<vmem>>, vector<128x8xf32>
    %c0_303 = arith.constant 0 : index
    %c2_304 = arith.constant 2 : index
    %c0_305 = arith.constant 0 : index
    %c0_306 = arith.constant 0 : index
    %257 = vector.load %arg5[%c0_303, %c2_304, %c0_305, %c0_306] : memref<3x3x8x8xf32, #tpu.memory_space<vmem>>, vector<1x1x8x8xf32>
    %258 = vector.shape_cast %257 : vector<1x1x8x8xf32> to vector<8x8xf32>
    %cst_307 = arith.constant dense<0.000000e+00> : vector<128x8xf32>
    %259 = tpu.matmul %256, %258, %cst_307 {dimension_numbers = #tpu.dot_dimension_numbers<[1], [0], [0], [1], [0, 0, 1, 1], [], []>} : vector<128x8xf32>, vector<8x8xf32>, vector<128x8xf32> -> vector<128x8xf32>
    %260 = arith.addf %255, %259 : vector<128x8xf32>
    %c18_308 = arith.constant 18 : index
    %c0_309 = arith.constant 0 : index
    %261 = vector.load %arg10[%c18_308, %c0_309] : memref<324x8xf32, #tpu.memory_space<vmem>>, vector<128x8xf32>
    %c1_310 = arith.constant 1 : index
    %c0_311 = arith.constant 0 : index
    %c0_312 = arith.constant 0 : index
    %c0_313 = arith.constant 0 : index
    %262 = vector.load %arg5[%c1_310, %c0_311, %c0_312, %c0_313] : memref<3x3x8x8xf32, #tpu.memory_space<vmem>>, vector<1x1x8x8xf32>
    %263 = vector.shape_cast %262 : vector<1x1x8x8xf32> to vector<8x8xf32>
    %cst_314 = arith.constant dense<0.000000e+00> : vector<128x8xf32>
    %264 = tpu.matmul %261, %263, %cst_314 {dimension_numbers = #tpu.dot_dimension_numbers<[1], [0], [0], [1], [0, 0, 1, 1], [], []>} : vector<128x8xf32>, vector<8x8xf32>, vector<128x8xf32> -> vector<128x8xf32>
    %265 = arith.addf %260, %264 : vector<128x8xf32>
    %c19_315 = arith.constant 19 : index
    %c0_316 = arith.constant 0 : index
    %266 = vector.load %arg10[%c19_315, %c0_316] : memref<324x8xf32, #tpu.memory_space<vmem>>, vector<128x8xf32>
    %c1_317 = arith.constant 1 : index
    %c1_318 = arith.constant 1 : index
    %c0_319 = arith.constant 0 : index
    %c0_320 = arith.constant 0 : index
    %267 = vector.load %arg5[%c1_317, %c1_318, %c0_319, %c0_320] : memref<3x3x8x8xf32, #tpu.memory_space<vmem>>, vector<1x1x8x8xf32>
    %268 = vector.shape_cast %267 : vector<1x1x8x8xf32> to vector<8x8xf32>
    %cst_321 = arith.constant dense<0.000000e+00> : vector<128x8xf32>
    %269 = tpu.matmul %266, %268, %cst_321 {dimension_numbers = #tpu.dot_dimension_numbers<[1], [0], [0], [1], [0, 0, 1, 1], [], []>} : vector<128x8xf32>, vector<8x8xf32>, vector<128x8xf32> -> vector<128x8xf32>
    %270 = arith.addf %265, %269 : vector<128x8xf32>
    %c20_322 = arith.constant 20 : index
    %c0_323 = arith.constant 0 : index
    %271 = vector.load %arg10[%c20_322, %c0_323] : memref<324x8xf32, #tpu.memory_space<vmem>>, vector<128x8xf32>
    %c1_324 = arith.constant 1 : index
    %c2_325 = arith.constant 2 : index
    %c0_326 = arith.constant 0 : index
    %c0_327 = arith.constant 0 : index
    %272 = vector.load %arg5[%c1_324, %c2_325, %c0_326, %c0_327] : memref<3x3x8x8xf32, #tpu.memory_space<vmem>>, vector<1x1x8x8xf32>
    %273 = vector.shape_cast %272 : vector<1x1x8x8xf32> to vector<8x8xf32>
    %cst_328 = arith.constant dense<0.000000e+00> : vector<128x8xf32>
    %274 = tpu.matmul %271, %273, %cst_328 {dimension_numbers = #tpu.dot_dimension_numbers<[1], [0], [0], [1], [0, 0, 1, 1], [], []>} : vector<128x8xf32>, vector<8x8xf32>, vector<128x8xf32> -> vector<128x8xf32>
    %275 = arith.addf %270, %274 : vector<128x8xf32>
    %c36_329 = arith.constant 36 : index
    %c0_330 = arith.constant 0 : index
    %276 = vector.load %arg10[%c36_329, %c0_330] : memref<324x8xf32, #tpu.memory_space<vmem>>, vector<128x8xf32>
    %c2_331 = arith.constant 2 : index
    %c0_332 = arith.constant 0 : index
    %c0_333 = arith.constant 0 : index
    %c0_334 = arith.constant 0 : index
    %277 = vector.load %arg5[%c2_331, %c0_332, %c0_333, %c0_334] : memref<3x3x8x8xf32, #tpu.memory_space<vmem>>, vector<1x1x8x8xf32>
    %278 = vector.shape_cast %277 : vector<1x1x8x8xf32> to vector<8x8xf32>
    %cst_335 = arith.constant dense<0.000000e+00> : vector<128x8xf32>
    %279 = tpu.matmul %276, %278, %cst_335 {dimension_numbers = #tpu.dot_dimension_numbers<[1], [0], [0], [1], [0, 0, 1, 1], [], []>} : vector<128x8xf32>, vector<8x8xf32>, vector<128x8xf32> -> vector<128x8xf32>
    %280 = arith.addf %275, %279 : vector<128x8xf32>
    %c37_336 = arith.constant 37 : index
    %c0_337 = arith.constant 0 : index
    %281 = vector.load %arg10[%c37_336, %c0_337] : memref<324x8xf32, #tpu.memory_space<vmem>>, vector<128x8xf32>
    %c2_338 = arith.constant 2 : index
    %c1_339 = arith.constant 1 : index
    %c0_340 = arith.constant 0 : index
    %c0_341 = arith.constant 0 : index
    %282 = vector.load %arg5[%c2_338, %c1_339, %c0_340, %c0_341] : memref<3x3x8x8xf32, #tpu.memory_space<vmem>>, vector<1x1x8x8xf32>
    %283 = vector.shape_cast %282 : vector<1x1x8x8xf32> to vector<8x8xf32>
    %cst_342 = arith.constant dense<0.000000e+00> : vector<128x8xf32>
    %284 = tpu.matmul %281, %283, %cst_342 {dimension_numbers = #tpu.dot_dimension_numbers<[1], [0], [0], [1], [0, 0, 1, 1], [], []>} : vector<128x8xf32>, vector<8x8xf32>, vector<128x8xf32> -> vector<128x8xf32>
    %285 = arith.addf %280, %284 : vector<128x8xf32>
    %c38_343 = arith.constant 38 : index
    %c0_344 = arith.constant 0 : index
    %286 = vector.load %arg10[%c38_343, %c0_344] : memref<324x8xf32, #tpu.memory_space<vmem>>, vector<128x8xf32>
    %c2_345 = arith.constant 2 : index
    %c2_346 = arith.constant 2 : index
    %c0_347 = arith.constant 0 : index
    %c0_348 = arith.constant 0 : index
    %287 = vector.load %arg5[%c2_345, %c2_346, %c0_347, %c0_348] : memref<3x3x8x8xf32, #tpu.memory_space<vmem>>, vector<1x1x8x8xf32>
    %288 = vector.shape_cast %287 : vector<1x1x8x8xf32> to vector<8x8xf32>
    %cst_349 = arith.constant dense<0.000000e+00> : vector<128x8xf32>
    %289 = tpu.matmul %286, %288, %cst_349 {dimension_numbers = #tpu.dot_dimension_numbers<[1], [0], [0], [1], [0, 0, 1, 1], [], []>} : vector<128x8xf32>, vector<8x8xf32>, vector<128x8xf32> -> vector<128x8xf32>
    %290 = arith.addf %285, %289 : vector<128x8xf32>
    %291 = vector.broadcast %243 : vector<1x8xf32> to vector<128x8xf32>
    %292 = arith.mulf %290, %291 : vector<128x8xf32>
    %293 = vector.broadcast %244 : vector<1x8xf32> to vector<128x8xf32>
    %294 = arith.addf %292, %293 : vector<128x8xf32>
    %cst_350 = arith.constant 0.000000e+00 : f32
    %295 = vector.broadcast %cst_350 : f32 to vector<128x8xf32>
    %296 = arith.maximumf %294, %295 : vector<128x8xf32>
    %c0_351 = arith.constant 0 : index
    %c0_352 = arith.constant 0 : index
    %297 = vector.load %arg11[%c0_351, %c0_352] : memref<286x8xf32, #tpu.memory_space<vmem>>, vector<128x8xf32>
    tpu.vector_store %arg11[%c0_351, %c0_352], %296 {strides = array<i32>} : memref<286x8xf32, #tpu.memory_space<vmem>>, vector<128x8xf32>,
    %cst_353 = arith.constant 0.000000e+00 : f32
    %298 = vector.broadcast %cst_353 : f32 to vector<128x8xf32>
    %c128_354 = arith.constant 128 : index
    %c0_355 = arith.constant 0 : index
    %299 = vector.load %arg10[%c128_354, %c0_355] : memref<324x8xf32, #tpu.memory_space<vmem>>, vector<128x8xf32>
    %c0_356 = arith.constant 0 : index
    %c0_357 = arith.constant 0 : index
    %c0_358 = arith.constant 0 : index
    %c0_359 = arith.constant 0 : index
    %300 = vector.load %arg5[%c0_356, %c0_357, %c0_358, %c0_359] : memref<3x3x8x8xf32, #tpu.memory_space<vmem>>, vector<1x1x8x8xf32>
    %301 = vector.shape_cast %300 : vector<1x1x8x8xf32> to vector<8x8xf32>
    %cst_360 = arith.constant dense<0.000000e+00> : vector<128x8xf32>
    %302 = tpu.matmul %299, %301, %cst_360 {dimension_numbers = #tpu.dot_dimension_numbers<[1], [0], [0], [1], [0, 0, 1, 1], [], []>} : vector<128x8xf32>, vector<8x8xf32>, vector<128x8xf32> -> vector<128x8xf32>
    %303 = arith.addf %298, %302 : vector<128x8xf32>
    %c129_361 = arith.constant 129 : index
    %c0_362 = arith.constant 0 : index
    %304 = vector.load %arg10[%c129_361, %c0_362] : memref<324x8xf32, #tpu.memory_space<vmem>>, vector<128x8xf32>
    %c0_363 = arith.constant 0 : index
    %c1_364 = arith.constant 1 : index
    %c0_365 = arith.constant 0 : index
    %c0_366 = arith.constant 0 : index
    %305 = vector.load %arg5[%c0_363, %c1_364, %c0_365, %c0_366] : memref<3x3x8x8xf32, #tpu.memory_space<vmem>>, vector<1x1x8x8xf32>
    %306 = vector.shape_cast %305 : vector<1x1x8x8xf32> to vector<8x8xf32>
    %cst_367 = arith.constant dense<0.000000e+00> : vector<128x8xf32>
    %307 = tpu.matmul %304, %306, %cst_367 {dimension_numbers = #tpu.dot_dimension_numbers<[1], [0], [0], [1], [0, 0, 1, 1], [], []>} : vector<128x8xf32>, vector<8x8xf32>, vector<128x8xf32> -> vector<128x8xf32>
    %308 = arith.addf %303, %307 : vector<128x8xf32>
    %c130_368 = arith.constant 130 : index
    %c0_369 = arith.constant 0 : index
    %309 = vector.load %arg10[%c130_368, %c0_369] : memref<324x8xf32, #tpu.memory_space<vmem>>, vector<128x8xf32>
    %c0_370 = arith.constant 0 : index
    %c2_371 = arith.constant 2 : index
    %c0_372 = arith.constant 0 : index
    %c0_373 = arith.constant 0 : index
    %310 = vector.load %arg5[%c0_370, %c2_371, %c0_372, %c0_373] : memref<3x3x8x8xf32, #tpu.memory_space<vmem>>, vector<1x1x8x8xf32>
    %311 = vector.shape_cast %310 : vector<1x1x8x8xf32> to vector<8x8xf32>
    %cst_374 = arith.constant dense<0.000000e+00> : vector<128x8xf32>
    %312 = tpu.matmul %309, %311, %cst_374 {dimension_numbers = #tpu.dot_dimension_numbers<[1], [0], [0], [1], [0, 0, 1, 1], [], []>} : vector<128x8xf32>, vector<8x8xf32>, vector<128x8xf32> -> vector<128x8xf32>
    %313 = arith.addf %308, %312 : vector<128x8xf32>
    %c146_375 = arith.constant 146 : index
    %c0_376 = arith.constant 0 : index
    %314 = vector.load %arg10[%c146_375, %c0_376] : memref<324x8xf32, #tpu.memory_space<vmem>>, vector<128x8xf32>
    %c1_377 = arith.constant 1 : index
    %c0_378 = arith.constant 0 : index
    %c0_379 = arith.constant 0 : index
    %c0_380 = arith.constant 0 : index
    %315 = vector.load %arg5[%c1_377, %c0_378, %c0_379, %c0_380] : memref<3x3x8x8xf32, #tpu.memory_space<vmem>>, vector<1x1x8x8xf32>
    %316 = vector.shape_cast %315 : vector<1x1x8x8xf32> to vector<8x8xf32>
    %cst_381 = arith.constant dense<0.000000e+00> : vector<128x8xf32>
    %317 = tpu.matmul %314, %316, %cst_381 {dimension_numbers = #tpu.dot_dimension_numbers<[1], [0], [0], [1], [0, 0, 1, 1], [], []>} : vector<128x8xf32>, vector<8x8xf32>, vector<128x8xf32> -> vector<128x8xf32>
    %318 = arith.addf %313, %317 : vector<128x8xf32>
    %c147_382 = arith.constant 147 : index
    %c0_383 = arith.constant 0 : index
    %319 = vector.load %arg10[%c147_382, %c0_383] : memref<324x8xf32, #tpu.memory_space<vmem>>, vector<128x8xf32>
    %c1_384 = arith.constant 1 : index
    %c1_385 = arith.constant 1 : index
    %c0_386 = arith.constant 0 : index
    %c0_387 = arith.constant 0 : index
    %320 = vector.load %arg5[%c1_384, %c1_385, %c0_386, %c0_387] : memref<3x3x8x8xf32, #tpu.memory_space<vmem>>, vector<1x1x8x8xf32>
    %321 = vector.shape_cast %320 : vector<1x1x8x8xf32> to vector<8x8xf32>
    %cst_388 = arith.constant dense<0.000000e+00> : vector<128x8xf32>
    %322 = tpu.matmul %319, %321, %cst_388 {dimension_numbers = #tpu.dot_dimension_numbers<[1], [0], [0], [1], [0, 0, 1, 1], [], []>} : vector<128x8xf32>, vector<8x8xf32>, vector<128x8xf32> -> vector<128x8xf32>
    %323 = arith.addf %318, %322 : vector<128x8xf32>
    %c148_389 = arith.constant 148 : index
    %c0_390 = arith.constant 0 : index
    %324 = vector.load %arg10[%c148_389, %c0_390] : memref<324x8xf32, #tpu.memory_space<vmem>>, vector<128x8xf32>
    %c1_391 = arith.constant 1 : index
    %c2_392 = arith.constant 2 : index
    %c0_393 = arith.constant 0 : index
    %c0_394 = arith.constant 0 : index
    %325 = vector.load %arg5[%c1_391, %c2_392, %c0_393, %c0_394] : memref<3x3x8x8xf32, #tpu.memory_space<vmem>>, vector<1x1x8x8xf32>
    %326 = vector.shape_cast %325 : vector<1x1x8x8xf32> to vector<8x8xf32>
    %cst_395 = arith.constant dense<0.000000e+00> : vector<128x8xf32>
    %327 = tpu.matmul %324, %326, %cst_395 {dimension_numbers = #tpu.dot_dimension_numbers<[1], [0], [0], [1], [0, 0, 1, 1], [], []>} : vector<128x8xf32>, vector<8x8xf32>, vector<128x8xf32> -> vector<128x8xf32>
    %328 = arith.addf %323, %327 : vector<128x8xf32>
    %c164_396 = arith.constant 164 : index
    %c0_397 = arith.constant 0 : index
    %329 = vector.load %arg10[%c164_396, %c0_397] : memref<324x8xf32, #tpu.memory_space<vmem>>, vector<128x8xf32>
    %c2_398 = arith.constant 2 : index
    %c0_399 = arith.constant 0 : index
    %c0_400 = arith.constant 0 : index
    %c0_401 = arith.constant 0 : index
    %330 = vector.load %arg5[%c2_398, %c0_399, %c0_400, %c0_401] : memref<3x3x8x8xf32, #tpu.memory_space<vmem>>, vector<1x1x8x8xf32>
    %331 = vector.shape_cast %330 : vector<1x1x8x8xf32> to vector<8x8xf32>
    %cst_402 = arith.constant dense<0.000000e+00> : vector<128x8xf32>
    %332 = tpu.matmul %329, %331, %cst_402 {dimension_numbers = #tpu.dot_dimension_numbers<[1], [0], [0], [1], [0, 0, 1, 1], [], []>} : vector<128x8xf32>, vector<8x8xf32>, vector<128x8xf32> -> vector<128x8xf32>
    %333 = arith.addf %328, %332 : vector<128x8xf32>
    %c165_403 = arith.constant 165 : index
    %c0_404 = arith.constant 0 : index
    %334 = vector.load %arg10[%c165_403, %c0_404] : memref<324x8xf32, #tpu.memory_space<vmem>>, vector<128x8xf32>
    %c2_405 = arith.constant 2 : index
    %c1_406 = arith.constant 1 : index
    %c0_407 = arith.constant 0 : index
    %c0_408 = arith.constant 0 : index
    %335 = vector.load %arg5[%c2_405, %c1_406, %c0_407, %c0_408] : memref<3x3x8x8xf32, #tpu.memory_space<vmem>>, vector<1x1x8x8xf32>
    %336 = vector.shape_cast %335 : vector<1x1x8x8xf32> to vector<8x8xf32>
    %cst_409 = arith.constant dense<0.000000e+00> : vector<128x8xf32>
    %337 = tpu.matmul %334, %336, %cst_409 {dimension_numbers = #tpu.dot_dimension_numbers<[1], [0], [0], [1], [0, 0, 1, 1], [], []>} : vector<128x8xf32>, vector<8x8xf32>, vector<128x8xf32> -> vector<128x8xf32>
    %338 = arith.addf %333, %337 : vector<128x8xf32>
    %c166_410 = arith.constant 166 : index
    %c0_411 = arith.constant 0 : index
    %339 = vector.load %arg10[%c166_410, %c0_411] : memref<324x8xf32, #tpu.memory_space<vmem>>, vector<128x8xf32>
    %c2_412 = arith.constant 2 : index
    %c2_413 = arith.constant 2 : index
    %c0_414 = arith.constant 0 : index
    %c0_415 = arith.constant 0 : index
    %340 = vector.load %arg5[%c2_412, %c2_413, %c0_414, %c0_415] : memref<3x3x8x8xf32, #tpu.memory_space<vmem>>, vector<1x1x8x8xf32>
    %341 = vector.shape_cast %340 : vector<1x1x8x8xf32> to vector<8x8xf32>
    %cst_416 = arith.constant dense<0.000000e+00> : vector<128x8xf32>
    %342 = tpu.matmul %339, %341, %cst_416 {dimension_numbers = #tpu.dot_dimension_numbers<[1], [0], [0], [1], [0, 0, 1, 1], [], []>} : vector<128x8xf32>, vector<8x8xf32>, vector<128x8xf32> -> vector<128x8xf32>
    %343 = arith.addf %338, %342 : vector<128x8xf32>
    %344 = vector.broadcast %243 : vector<1x8xf32> to vector<128x8xf32>
    %345 = arith.mulf %343, %344 : vector<128x8xf32>
    %346 = vector.broadcast %244 : vector<1x8xf32> to vector<128x8xf32>
    %347 = arith.addf %345, %346 : vector<128x8xf32>
    %cst_417 = arith.constant 0.000000e+00 : f32
    %348 = vector.broadcast %cst_417 : f32 to vector<128x8xf32>
    %349 = arith.maximumf %347, %348 : vector<128x8xf32>
    %c128_418 = arith.constant 128 : index
    %c0_419 = arith.constant 0 : index
    %350 = vector.load %arg11[%c128_418, %c0_419] : memref<286x8xf32, #tpu.memory_space<vmem>>, vector<128x8xf32>
    tpu.vector_store %arg11[%c128_418, %c0_419], %349 {strides = array<i32>} : memref<286x8xf32, #tpu.memory_space<vmem>>, vector<128x8xf32>,
    %cst_420 = arith.constant 0.000000e+00 : f32
    %351 = vector.broadcast %cst_420 : f32 to vector<30x8xf32>
    %c256_421 = arith.constant 256 : index
    %c0_422 = arith.constant 0 : index
    %352 = vector.load %arg10[%c256_421, %c0_422] : memref<324x8xf32, #tpu.memory_space<vmem>>, vector<30x8xf32>
    %c0_423 = arith.constant 0 : index
    %c0_424 = arith.constant 0 : index
    %c0_425 = arith.constant 0 : index
    %c0_426 = arith.constant 0 : index
    %353 = vector.load %arg5[%c0_423, %c0_424, %c0_425, %c0_426] : memref<3x3x8x8xf32, #tpu.memory_space<vmem>>, vector<1x1x8x8xf32>
    %354 = vector.shape_cast %353 : vector<1x1x8x8xf32> to vector<8x8xf32>
    %cst_427 = arith.constant dense<0.000000e+00> : vector<30x8xf32>
    %355 = tpu.matmul %352, %354, %cst_427 {dimension_numbers = #tpu.dot_dimension_numbers<[1], [0], [0], [1], [0, 0, 1, 1], [], []>} : vector<30x8xf32>, vector<8x8xf32>, vector<30x8xf32> -> vector<30x8xf32>
    %356 = arith.addf %351, %355 : vector<30x8xf32>
    %c257_428 = arith.constant 257 : index
    %c0_429 = arith.constant 0 : index
    %357 = vector.load %arg10[%c257_428, %c0_429] : memref<324x8xf32, #tpu.memory_space<vmem>>, vector<30x8xf32>
    %c0_430 = arith.constant 0 : index
    %c1_431 = arith.constant 1 : index
    %c0_432 = arith.constant 0 : index
    %c0_433 = arith.constant 0 : index
    %358 = vector.load %arg5[%c0_430, %c1_431, %c0_432, %c0_433] : memref<3x3x8x8xf32, #tpu.memory_space<vmem>>, vector<1x1x8x8xf32>
    %359 = vector.shape_cast %358 : vector<1x1x8x8xf32> to vector<8x8xf32>
    %cst_434 = arith.constant dense<0.000000e+00> : vector<30x8xf32>
    %360 = tpu.matmul %357, %359, %cst_434 {dimension_numbers = #tpu.dot_dimension_numbers<[1], [0], [0], [1], [0, 0, 1, 1], [], []>} : vector<30x8xf32>, vector<8x8xf32>, vector<30x8xf32> -> vector<30x8xf32>
    %361 = arith.addf %356, %360 : vector<30x8xf32>
    %c258_435 = arith.constant 258 : index
    %c0_436 = arith.constant 0 : index
    %362 = vector.load %arg10[%c258_435, %c0_436] : memref<324x8xf32, #tpu.memory_space<vmem>>, vector<30x8xf32>
    %c0_437 = arith.constant 0 : index
    %c2_438 = arith.constant 2 : index
    %c0_439 = arith.constant 0 : index
    %c0_440 = arith.constant 0 : index
    %363 = vector.load %arg5[%c0_437, %c2_438, %c0_439, %c0_440] : memref<3x3x8x8xf32, #tpu.memory_space<vmem>>, vector<1x1x8x8xf32>
    %364 = vector.shape_cast %363 : vector<1x1x8x8xf32> to vector<8x8xf32>
    %cst_441 = arith.constant dense<0.000000e+00> : vector<30x8xf32>
    %365 = tpu.matmul %362, %364, %cst_441 {dimension_numbers = #tpu.dot_dimension_numbers<[1], [0], [0], [1], [0, 0, 1, 1], [], []>} : vector<30x8xf32>, vector<8x8xf32>, vector<30x8xf32> -> vector<30x8xf32>
    %366 = arith.addf %361, %365 : vector<30x8xf32>
    %c274_442 = arith.constant 274 : index
    %c0_443 = arith.constant 0 : index
    %367 = vector.load %arg10[%c274_442, %c0_443] : memref<324x8xf32, #tpu.memory_space<vmem>>, vector<30x8xf32>
    %c1_444 = arith.constant 1 : index
    %c0_445 = arith.constant 0 : index
    %c0_446 = arith.constant 0 : index
    %c0_447 = arith.constant 0 : index
    %368 = vector.load %arg5[%c1_444, %c0_445, %c0_446, %c0_447] : memref<3x3x8x8xf32, #tpu.memory_space<vmem>>, vector<1x1x8x8xf32>
    %369 = vector.shape_cast %368 : vector<1x1x8x8xf32> to vector<8x8xf32>
    %cst_448 = arith.constant dense<0.000000e+00> : vector<30x8xf32>
    %370 = tpu.matmul %367, %369, %cst_448 {dimension_numbers = #tpu.dot_dimension_numbers<[1], [0], [0], [1], [0, 0, 1, 1], [], []>} : vector<30x8xf32>, vector<8x8xf32>, vector<30x8xf32> -> vector<30x8xf32>
    %371 = arith.addf %366, %370 : vector<30x8xf32>
    %c275_449 = arith.constant 275 : index
    %c0_450 = arith.constant 0 : index
    %372 = vector.load %arg10[%c275_449, %c0_450] : memref<324x8xf32, #tpu.memory_space<vmem>>, vector<30x8xf32>
    %c1_451 = arith.constant 1 : index
    %c1_452 = arith.constant 1 : index
    %c0_453 = arith.constant 0 : index
    %c0_454 = arith.constant 0 : index
    %373 = vector.load %arg5[%c1_451, %c1_452, %c0_453, %c0_454] : memref<3x3x8x8xf32, #tpu.memory_space<vmem>>, vector<1x1x8x8xf32>
    %374 = vector.shape_cast %373 : vector<1x1x8x8xf32> to vector<8x8xf32>
    %cst_455 = arith.constant dense<0.000000e+00> : vector<30x8xf32>
    %375 = tpu.matmul %372, %374, %cst_455 {dimension_numbers = #tpu.dot_dimension_numbers<[1], [0], [0], [1], [0, 0, 1, 1], [], []>} : vector<30x8xf32>, vector<8x8xf32>, vector<30x8xf32> -> vector<30x8xf32>
    %376 = arith.addf %371, %375 : vector<30x8xf32>
    %c276_456 = arith.constant 276 : index
    %c0_457 = arith.constant 0 : index
    %377 = vector.load %arg10[%c276_456, %c0_457] : memref<324x8xf32, #tpu.memory_space<vmem>>, vector<30x8xf32>
    %c1_458 = arith.constant 1 : index
    %c2_459 = arith.constant 2 : index
    %c0_460 = arith.constant 0 : index
    %c0_461 = arith.constant 0 : index
    %378 = vector.load %arg5[%c1_458, %c2_459, %c0_460, %c0_461] : memref<3x3x8x8xf32, #tpu.memory_space<vmem>>, vector<1x1x8x8xf32>
    %379 = vector.shape_cast %378 : vector<1x1x8x8xf32> to vector<8x8xf32>
    %cst_462 = arith.constant dense<0.000000e+00> : vector<30x8xf32>
    %380 = tpu.matmul %377, %379, %cst_462 {dimension_numbers = #tpu.dot_dimension_numbers<[1], [0], [0], [1], [0, 0, 1, 1], [], []>} : vector<30x8xf32>, vector<8x8xf32>, vector<30x8xf32> -> vector<30x8xf32>
    %381 = arith.addf %376, %380 : vector<30x8xf32>
    %c292_463 = arith.constant 292 : index
    %c0_464 = arith.constant 0 : index
    %382 = vector.load %arg10[%c292_463, %c0_464] : memref<324x8xf32, #tpu.memory_space<vmem>>, vector<30x8xf32>
    %c2_465 = arith.constant 2 : index
    %c0_466 = arith.constant 0 : index
    %c0_467 = arith.constant 0 : index
    %c0_468 = arith.constant 0 : index
    %383 = vector.load %arg5[%c2_465, %c0_466, %c0_467, %c0_468] : memref<3x3x8x8xf32, #tpu.memory_space<vmem>>, vector<1x1x8x8xf32>
    %384 = vector.shape_cast %383 : vector<1x1x8x8xf32> to vector<8x8xf32>
    %cst_469 = arith.constant dense<0.000000e+00> : vector<30x8xf32>
    %385 = tpu.matmul %382, %384, %cst_469 {dimension_numbers = #tpu.dot_dimension_numbers<[1], [0], [0], [1], [0, 0, 1, 1], [], []>} : vector<30x8xf32>, vector<8x8xf32>, vector<30x8xf32> -> vector<30x8xf32>
    %386 = arith.addf %381, %385 : vector<30x8xf32>
    %c293_470 = arith.constant 293 : index
    %c0_471 = arith.constant 0 : index
    %387 = vector.load %arg10[%c293_470, %c0_471] : memref<324x8xf32, #tpu.memory_space<vmem>>, vector<30x8xf32>
    %c2_472 = arith.constant 2 : index
    %c1_473 = arith.constant 1 : index
    %c0_474 = arith.constant 0 : index
    %c0_475 = arith.constant 0 : index
    %388 = vector.load %arg5[%c2_472, %c1_473, %c0_474, %c0_475] : memref<3x3x8x8xf32, #tpu.memory_space<vmem>>, vector<1x1x8x8xf32>
    %389 = vector.shape_cast %388 : vector<1x1x8x8xf32> to vector<8x8xf32>
    %cst_476 = arith.constant dense<0.000000e+00> : vector<30x8xf32>
    %390 = tpu.matmul %387, %389, %cst_476 {dimension_numbers = #tpu.dot_dimension_numbers<[1], [0], [0], [1], [0, 0, 1, 1], [], []>} : vector<30x8xf32>, vector<8x8xf32>, vector<30x8xf32> -> vector<30x8xf32>
    %391 = arith.addf %386, %390 : vector<30x8xf32>
    %c294_477 = arith.constant 294 : index
    %c0_478 = arith.constant 0 : index
    %392 = vector.load %arg10[%c294_477, %c0_478] : memref<324x8xf32, #tpu.memory_space<vmem>>, vector<30x8xf32>
    %c2_479 = arith.constant 2 : index
    %c2_480 = arith.constant 2 : index
    %c0_481 = arith.constant 0 : index
    %c0_482 = arith.constant 0 : index
    %393 = vector.load %arg5[%c2_479, %c2_480, %c0_481, %c0_482] : memref<3x3x8x8xf32, #tpu.memory_space<vmem>>, vector<1x1x8x8xf32>
    %394 = vector.shape_cast %393 : vector<1x1x8x8xf32> to vector<8x8xf32>
    %cst_483 = arith.constant dense<0.000000e+00> : vector<30x8xf32>
    %395 = tpu.matmul %392, %394, %cst_483 {dimension_numbers = #tpu.dot_dimension_numbers<[1], [0], [0], [1], [0, 0, 1, 1], [], []>} : vector<30x8xf32>, vector<8x8xf32>, vector<30x8xf32> -> vector<30x8xf32>
    %396 = arith.addf %391, %395 : vector<30x8xf32>
    %397 = vector.broadcast %243 : vector<1x8xf32> to vector<30x8xf32>
    %398 = arith.mulf %396, %397 : vector<30x8xf32>
    %399 = vector.broadcast %244 : vector<1x8xf32> to vector<30x8xf32>
    %400 = arith.addf %398, %399 : vector<30x8xf32>
    %cst_484 = arith.constant 0.000000e+00 : f32
    %401 = vector.broadcast %cst_484 : f32 to vector<30x8xf32>
    %402 = arith.maximumf %400, %401 : vector<30x8xf32>
    %c256_485 = arith.constant 256 : index
    %c0_486 = arith.constant 0 : index
    %403 = vector.load %arg11[%c256_485, %c0_486] : memref<286x8xf32, #tpu.memory_space<vmem>>, vector<30x8xf32>
    tpu.vector_store %arg11[%c256_485, %c0_486], %402 {strides = array<i32>} : memref<286x8xf32, #tpu.memory_space<vmem>>, vector<30x8xf32>,
    %c0_487 = arith.constant 0 : index
    %c0_488 = arith.constant 0 : index
    %404 = vector.load %arg11[%c0_487, %c0_488] : memref<286x8xf32, #tpu.memory_space<vmem>>, vector<16x8xf32>
    %c0_489 = arith.constant 0 : index
    %c0_490 = arith.constant 0 : index
    %c0_491 = arith.constant 0 : index
    %c0_492 = arith.constant 0 : index
    %405 = vector.load %arg8[%c0_489, %c0_490, %c0_491, %c0_492] : memref<1x16x16x8xf32, #tpu.memory_space<vmem>>, vector<1x1x16x8xf32>
    %406 = vector.shape_cast %405 : vector<1x1x16x8xf32> to vector<16x8xf32>
    %407 = vector.shape_cast %404 : vector<16x8xf32> to vector<1x1x16x8xf32>
    tpu.vector_store %arg8[%c0_489, %c0_490, %c0_491, %c0_492], %407 {strides = array<i32>} : memref<1x16x16x8xf32, #tpu.memory_space<vmem>>, vector<1x1x16x8xf32>,
    %c18_493 = arith.constant 18 : index
    %c0_494 = arith.constant 0 : index
    %408 = vector.load %arg11[%c18_493, %c0_494] : memref<286x8xf32, #tpu.memory_space<vmem>>, vector<16x8xf32>
    %c0_495 = arith.constant 0 : index
    %c1_496 = arith.constant 1 : index
    %c0_497 = arith.constant 0 : index
    %c0_498 = arith.constant 0 : index
    %409 = vector.load %arg8[%c0_495, %c1_496, %c0_497, %c0_498] : memref<1x16x16x8xf32, #tpu.memory_space<vmem>>, vector<1x1x16x8xf32>
    %410 = vector.shape_cast %409 : vector<1x1x16x8xf32> to vector<16x8xf32>
    %411 = vector.shape_cast %408 : vector<16x8xf32> to vector<1x1x16x8xf32>
    tpu.vector_store %arg8[%c0_495, %c1_496, %c0_497, %c0_498], %411 {strides = array<i32>} : memref<1x16x16x8xf32, #tpu.memory_space<vmem>>, vector<1x1x16x8xf32>,
    %c36_499 = arith.constant 36 : index
    %c0_500 = arith.constant 0 : index
    %412 = vector.load %arg11[%c36_499, %c0_500] : memref<286x8xf32, #tpu.memory_space<vmem>>, vector<16x8xf32>
    %c0_501 = arith.constant 0 : index
    %c2_502 = arith.constant 2 : index
    %c0_503 = arith.constant 0 : index
    %c0_504 = arith.constant 0 : index
    %413 = vector.load %arg8[%c0_501, %c2_502, %c0_503, %c0_504] : memref<1x16x16x8xf32, #tpu.memory_space<vmem>>, vector<1x1x16x8xf32>
    %414 = vector.shape_cast %413 : vector<1x1x16x8xf32> to vector<16x8xf32>
    %415 = vector.shape_cast %412 : vector<16x8xf32> to vector<1x1x16x8xf32>
    tpu.vector_store %arg8[%c0_501, %c2_502, %c0_503, %c0_504], %415 {strides = array<i32>} : memref<1x16x16x8xf32, #tpu.memory_space<vmem>>, vector<1x1x16x8xf32>,
    %c54 = arith.constant 54 : index
    %c0_505 = arith.constant 0 : index
    %416 = vector.load %arg11[%c54, %c0_505] : memref<286x8xf32, #tpu.memory_space<vmem>>, vector<16x8xf32>
    %c0_506 = arith.constant 0 : index
    %c3_507 = arith.constant 3 : index
    %c0_508 = arith.constant 0 : index
    %c0_509 = arith.constant 0 : index
    %417 = vector.load %arg8[%c0_506, %c3_507, %c0_508, %c0_509] : memref<1x16x16x8xf32, #tpu.memory_space<vmem>>, vector<1x1x16x8xf32>
    %418 = vector.shape_cast %417 : vector<1x1x16x8xf32> to vector<16x8xf32>
    %419 = vector.shape_cast %416 : vector<16x8xf32> to vector<1x1x16x8xf32>
    tpu.vector_store %arg8[%c0_506, %c3_507, %c0_508, %c0_509], %419 {strides = array<i32>} : memref<1x16x16x8xf32, #tpu.memory_space<vmem>>, vector<1x1x16x8xf32>,
    %c72 = arith.constant 72 : index
    %c0_510 = arith.constant 0 : index
    %420 = vector.load %arg11[%c72, %c0_510] : memref<286x8xf32, #tpu.memory_space<vmem>>, vector<16x8xf32>
    %c0_511 = arith.constant 0 : index
    %c4_512 = arith.constant 4 : index
    %c0_513 = arith.constant 0 : index
    %c0_514 = arith.constant 0 : index
    %421 = vector.load %arg8[%c0_511, %c4_512, %c0_513, %c0_514] : memref<1x16x16x8xf32, #tpu.memory_space<vmem>>, vector<1x1x16x8xf32>
    %422 = vector.shape_cast %421 : vector<1x1x16x8xf32> to vector<16x8xf32>
    %423 = vector.shape_cast %420 : vector<16x8xf32> to vector<1x1x16x8xf32>
    tpu.vector_store %arg8[%c0_511, %c4_512, %c0_513, %c0_514], %423 {strides = array<i32>} : memref<1x16x16x8xf32, #tpu.memory_space<vmem>>, vector<1x1x16x8xf32>,
    %c90 = arith.constant 90 : index
    %c0_515 = arith.constant 0 : index
    %424 = vector.load %arg11[%c90, %c0_515] : memref<286x8xf32, #tpu.memory_space<vmem>>, vector<16x8xf32>
    %c0_516 = arith.constant 0 : index
    %c5_517 = arith.constant 5 : index
    %c0_518 = arith.constant 0 : index
    %c0_519 = arith.constant 0 : index
    %425 = vector.load %arg8[%c0_516, %c5_517, %c0_518, %c0_519] : memref<1x16x16x8xf32, #tpu.memory_space<vmem>>, vector<1x1x16x8xf32>
    %426 = vector.shape_cast %425 : vector<1x1x16x8xf32> to vector<16x8xf32>
    %427 = vector.shape_cast %424 : vector<16x8xf32> to vector<1x1x16x8xf32>
    tpu.vector_store %arg8[%c0_516, %c5_517, %c0_518, %c0_519], %427 {strides = array<i32>} : memref<1x16x16x8xf32, #tpu.memory_space<vmem>>, vector<1x1x16x8xf32>,
    %c108 = arith.constant 108 : index
    %c0_520 = arith.constant 0 : index
    %428 = vector.load %arg11[%c108, %c0_520] : memref<286x8xf32, #tpu.memory_space<vmem>>, vector<16x8xf32>
    %c0_521 = arith.constant 0 : index
    %c6_522 = arith.constant 6 : index
    %c0_523 = arith.constant 0 : index
    %c0_524 = arith.constant 0 : index
    %429 = vector.load %arg8[%c0_521, %c6_522, %c0_523, %c0_524] : memref<1x16x16x8xf32, #tpu.memory_space<vmem>>, vector<1x1x16x8xf32>
    %430 = vector.shape_cast %429 : vector<1x1x16x8xf32> to vector<16x8xf32>
    %431 = vector.shape_cast %428 : vector<16x8xf32> to vector<1x1x16x8xf32>
    tpu.vector_store %arg8[%c0_521, %c6_522, %c0_523, %c0_524], %431 {strides = array<i32>} : memref<1x16x16x8xf32, #tpu.memory_space<vmem>>, vector<1x1x16x8xf32>,
    %c126 = arith.constant 126 : index
    %c0_525 = arith.constant 0 : index
    %432 = vector.load %arg11[%c126, %c0_525] : memref<286x8xf32, #tpu.memory_space<vmem>>, vector<16x8xf32>
    %c0_526 = arith.constant 0 : index
    %c7_527 = arith.constant 7 : index
    %c0_528 = arith.constant 0 : index
    %c0_529 = arith.constant 0 : index
    %433 = vector.load %arg8[%c0_526, %c7_527, %c0_528, %c0_529] : memref<1x16x16x8xf32, #tpu.memory_space<vmem>>, vector<1x1x16x8xf32>
    %434 = vector.shape_cast %433 : vector<1x1x16x8xf32> to vector<16x8xf32>
    %435 = vector.shape_cast %432 : vector<16x8xf32> to vector<1x1x16x8xf32>
    tpu.vector_store %arg8[%c0_526, %c7_527, %c0_528, %c0_529], %435 {strides = array<i32>} : memref<1x16x16x8xf32, #tpu.memory_space<vmem>>, vector<1x1x16x8xf32>,
    %c144 = arith.constant 144 : index
    %c0_530 = arith.constant 0 : index
    %436 = vector.load %arg11[%c144, %c0_530] : memref<286x8xf32, #tpu.memory_space<vmem>>, vector<16x8xf32>
    %c0_531 = arith.constant 0 : index
    %c8_532 = arith.constant 8 : index
    %c0_533 = arith.constant 0 : index
    %c0_534 = arith.constant 0 : index
    %437 = vector.load %arg8[%c0_531, %c8_532, %c0_533, %c0_534] : memref<1x16x16x8xf32, #tpu.memory_space<vmem>>, vector<1x1x16x8xf32>
    %438 = vector.shape_cast %437 : vector<1x1x16x8xf32> to vector<16x8xf32>
    %439 = vector.shape_cast %436 : vector<16x8xf32> to vector<1x1x16x8xf32>
    tpu.vector_store %arg8[%c0_531, %c8_532, %c0_533, %c0_534], %439 {strides = array<i32>} : memref<1x16x16x8xf32, #tpu.memory_space<vmem>>, vector<1x1x16x8xf32>,
    %c162 = arith.constant 162 : index
    %c0_535 = arith.constant 0 : index
    %440 = vector.load %arg11[%c162, %c0_535] : memref<286x8xf32, #tpu.memory_space<vmem>>, vector<16x8xf32>
    %c0_536 = arith.constant 0 : index
    %c9_537 = arith.constant 9 : index
    %c0_538 = arith.constant 0 : index
    %c0_539 = arith.constant 0 : index
    %441 = vector.load %arg8[%c0_536, %c9_537, %c0_538, %c0_539] : memref<1x16x16x8xf32, #tpu.memory_space<vmem>>, vector<1x1x16x8xf32>
    %442 = vector.shape_cast %441 : vector<1x1x16x8xf32> to vector<16x8xf32>
    %443 = vector.shape_cast %440 : vector<16x8xf32> to vector<1x1x16x8xf32>
    tpu.vector_store %arg8[%c0_536, %c9_537, %c0_538, %c0_539], %443 {strides = array<i32>} : memref<1x16x16x8xf32, #tpu.memory_space<vmem>>, vector<1x1x16x8xf32>,
    %c180 = arith.constant 180 : index
    %c0_540 = arith.constant 0 : index
    %444 = vector.load %arg11[%c180, %c0_540] : memref<286x8xf32, #tpu.memory_space<vmem>>, vector<16x8xf32>
    %c0_541 = arith.constant 0 : index
    %c10_542 = arith.constant 10 : index
    %c0_543 = arith.constant 0 : index
    %c0_544 = arith.constant 0 : index
    %445 = vector.load %arg8[%c0_541, %c10_542, %c0_543, %c0_544] : memref<1x16x16x8xf32, #tpu.memory_space<vmem>>, vector<1x1x16x8xf32>
    %446 = vector.shape_cast %445 : vector<1x1x16x8xf32> to vector<16x8xf32>
    %447 = vector.shape_cast %444 : vector<16x8xf32> to vector<1x1x16x8xf32>
    tpu.vector_store %arg8[%c0_541, %c10_542, %c0_543, %c0_544], %447 {strides = array<i32>} : memref<1x16x16x8xf32, #tpu.memory_space<vmem>>, vector<1x1x16x8xf32>,
    %c198 = arith.constant 198 : index
    %c0_545 = arith.constant 0 : index
    %448 = vector.load %arg11[%c198, %c0_545] : memref<286x8xf32, #tpu.memory_space<vmem>>, vector<16x8xf32>
    %c0_546 = arith.constant 0 : index
    %c11_547 = arith.constant 11 : index
    %c0_548 = arith.constant 0 : index
    %c0_549 = arith.constant 0 : index
    %449 = vector.load %arg8[%c0_546, %c11_547, %c0_548, %c0_549] : memref<1x16x16x8xf32, #tpu.memory_space<vmem>>, vector<1x1x16x8xf32>
    %450 = vector.shape_cast %449 : vector<1x1x16x8xf32> to vector<16x8xf32>
    %451 = vector.shape_cast %448 : vector<16x8xf32> to vector<1x1x16x8xf32>
    tpu.vector_store %arg8[%c0_546, %c11_547, %c0_548, %c0_549], %451 {strides = array<i32>} : memref<1x16x16x8xf32, #tpu.memory_space<vmem>>, vector<1x1x16x8xf32>,
    %c216 = arith.constant 216 : index
    %c0_550 = arith.constant 0 : index
    %452 = vector.load %arg11[%c216, %c0_550] : memref<286x8xf32, #tpu.memory_space<vmem>>, vector<16x8xf32>
    %c0_551 = arith.constant 0 : index
    %c12_552 = arith.constant 12 : index
    %c0_553 = arith.constant 0 : index
    %c0_554 = arith.constant 0 : index
    %453 = vector.load %arg8[%c0_551, %c12_552, %c0_553, %c0_554] : memref<1x16x16x8xf32, #tpu.memory_space<vmem>>, vector<1x1x16x8xf32>
    %454 = vector.shape_cast %453 : vector<1x1x16x8xf32> to vector<16x8xf32>
    %455 = vector.shape_cast %452 : vector<16x8xf32> to vector<1x1x16x8xf32>
    tpu.vector_store %arg8[%c0_551, %c12_552, %c0_553, %c0_554], %455 {strides = array<i32>} : memref<1x16x16x8xf32, #tpu.memory_space<vmem>>, vector<1x1x16x8xf32>,
    %c234 = arith.constant 234 : index
    %c0_555 = arith.constant 0 : index
    %456 = vector.load %arg11[%c234, %c0_555] : memref<286x8xf32, #tpu.memory_space<vmem>>, vector<16x8xf32>
    %c0_556 = arith.constant 0 : index
    %c13_557 = arith.constant 13 : index
    %c0_558 = arith.constant 0 : index
    %c0_559 = arith.constant 0 : index
    %457 = vector.load %arg8[%c0_556, %c13_557, %c0_558, %c0_559] : memref<1x16x16x8xf32, #tpu.memory_space<vmem>>, vector<1x1x16x8xf32>
    %458 = vector.shape_cast %457 : vector<1x1x16x8xf32> to vector<16x8xf32>
    %459 = vector.shape_cast %456 : vector<16x8xf32> to vector<1x1x16x8xf32>
    tpu.vector_store %arg8[%c0_556, %c13_557, %c0_558, %c0_559], %459 {strides = array<i32>} : memref<1x16x16x8xf32, #tpu.memory_space<vmem>>, vector<1x1x16x8xf32>,
    %c252 = arith.constant 252 : index
    %c0_560 = arith.constant 0 : index
    %460 = vector.load %arg11[%c252, %c0_560] : memref<286x8xf32, #tpu.memory_space<vmem>>, vector<16x8xf32>
    %c0_561 = arith.constant 0 : index
    %c14_562 = arith.constant 14 : index
    %c0_563 = arith.constant 0 : index
    %c0_564 = arith.constant 0 : index
    %461 = vector.load %arg8[%c0_561, %c14_562, %c0_563, %c0_564] : memref<1x16x16x8xf32, #tpu.memory_space<vmem>>, vector<1x1x16x8xf32>
    %462 = vector.shape_cast %461 : vector<1x1x16x8xf32> to vector<16x8xf32>
    %463 = vector.shape_cast %460 : vector<16x8xf32> to vector<1x1x16x8xf32>
    tpu.vector_store %arg8[%c0_561, %c14_562, %c0_563, %c0_564], %463 {strides = array<i32>} : memref<1x16x16x8xf32, #tpu.memory_space<vmem>>, vector<1x1x16x8xf32>,
    %c270 = arith.constant 270 : index
    %c0_565 = arith.constant 0 : index
    %464 = vector.load %arg11[%c270, %c0_565] : memref<286x8xf32, #tpu.memory_space<vmem>>, vector<16x8xf32>
    %c0_566 = arith.constant 0 : index
    %c15_567 = arith.constant 15 : index
    %c0_568 = arith.constant 0 : index
    %c0_569 = arith.constant 0 : index
    %465 = vector.load %arg8[%c0_566, %c15_567, %c0_568, %c0_569] : memref<1x16x16x8xf32, #tpu.memory_space<vmem>>, vector<1x1x16x8xf32>
    %466 = vector.shape_cast %465 : vector<1x1x16x8xf32> to vector<16x8xf32>
    %467 = vector.shape_cast %464 : vector<16x8xf32> to vector<1x1x16x8xf32>
    tpu.vector_store %arg8[%c0_566, %c15_567, %c0_568, %c0_569], %467 {strides = array<i32>} : memref<1x16x16x8xf32, #tpu.memory_space<vmem>>, vector<1x1x16x8xf32>,
    return
  }
  func.func @transform_0(%arg0: i32) -> (i32, i32, i32, i32) {
    %c0_i32 = arith.constant 0 : i32
    %c0_i32_0 = arith.constant 0 : i32
    %c0_i32_1 = arith.constant 0 : i32
    %c0_i32_2 = arith.constant 0 : i32
    return %arg0, %c0_i32, %c0_i32_0, %c0_i32_1 : i32, i32, i32, i32
  }
  func.func @transform_1(%arg0: i32) -> (i32, i32, i32, i32) {
    %c0_i32 = arith.constant 0 : i32
    %c0_i32_0 = arith.constant 0 : i32
    %c0_i32_1 = arith.constant 0 : i32
    %c0_i32_2 = arith.constant 0 : i32
    %c0_i32_3 = arith.constant 0 : i32
    return %c0_i32, %c0_i32_0, %c0_i32_1, %c0_i32_2 : i32, i32, i32, i32
  }
  func.func @transform_2(%arg0: i32) -> (i32, i32) {
    %c0_i32 = arith.constant 0 : i32
    %c0_i32_0 = arith.constant 0 : i32
    %c0_i32_1 = arith.constant 0 : i32
    return %c0_i32, %c0_i32_0 : i32, i32
  }
  func.func @transform_3(%arg0: i32) -> (i32, i32) {
    %c0_i32 = arith.constant 0 : i32
    %c0_i32_0 = arith.constant 0 : i32
    %c0_i32_1 = arith.constant 0 : i32
    return %c0_i32, %c0_i32_0 : i32, i32
  }
  func.func @transform_4(%arg0: i32) -> (i32, i32, i32, i32) {
    %c0_i32 = arith.constant 0 : i32
    %c0_i32_0 = arith.constant 0 : i32
    %c0_i32_1 = arith.constant 0 : i32
    %c0_i32_2 = arith.constant 0 : i32
    %c0_i32_3 = arith.constant 0 : i32
    return %c0_i32, %c0_i32_0, %c0_i32_1, %c0_i32_2 : i32, i32, i32, i32
  }
  func.func @transform_5(%arg0: i32) -> (i32, i32) {
    %c0_i32 = arith.constant 0 : i32
    %c0_i32_0 = arith.constant 0 : i32
    %c0_i32_1 = arith.constant 0 : i32
    return %c0_i32, %c0_i32_0 : i32, i32
  }
  func.func @transform_6(%arg0: i32) -> (i32, i32) {
    %c0_i32 = arith.constant 0 : i32
    %c0_i32_0 = arith.constant 0 : i32
    %c0_i32_1 = arith.constant 0 : i32
    return %c0_i32, %c0_i32_0 : i32, i32
  }
  func.func @transform_7(%arg0: i32) -> (i32, i32, i32, i32) {
    %c0_i32 = arith.constant 0 : i32
    %c0_i32_0 = arith.constant 0 : i32
    %c0_i32_1 = arith.constant 0 : i32
    %c0_i32_2 = arith.constant 0 : i32
    return %arg0, %c0_i32, %c0_i32_0, %c0_i32_1 : i32, i32, i32, i32
  }
}

</mosaic_0001>

<bundles_post_ra>
// kernel: tpu_custom_call.1
= control target key start
LH: loop header
LB: loop body
LE: loop exit
PB: predicated region body
PF: predicated region fallthrough
CT: control target
= control target key end

     0   :  { %s14125_s24 = smov 0   ;;  %s15793_s0 = inlined_call_operand.vmem [shape: f32[2,16,16,4], index: 0, kind: input, shape index: {}]   ;;  %s15794_s1 = inlined_call_operand.vmem [shape: f32[3,3,4,8], index: 1, kind: input, shape index: {}]   ;;  %s15795_s2 = inlined_call_operand.vmem [shape: f32[1,8], index: 2, kind: input, shape index: {}]   ;;  %s15796_s3 = inlined_call_operand.vmem [shape: f32[1,8], index: 3, kind: input, shape index: {}]   ;;  %s15797_s4 = inlined_call_operand.vmem [shape: f32[3,3,8,8], index: 4, kind: input, shape index: {}]   ;;  %s15798_s5 = inlined_call_operand.vmem [shape: f32[1,8], index: 5, kind: input, shape index: {}]   ;;  %s15799_s6 = inlined_call_operand.vmem [shape: f32[1,8], index: 6, kind: input, shape index: {}]   ;;  %s15800_s7 = inlined_call_operand.vmem [shape: f32[2,16,16,8], index: 7, kind: output, shape index: {}]  }
   0x1 LB: > { %s10909_s25 = sadd.s32 4294967295, %s14082_s24   ;;  %p10913_p0 = scmp.ge.s32.totalorder %s14082_s24, 1  ;;  %s14082_s24 = sphi %s14125_s24, %s17_s24  }
   0x2   : > { %p237_p1 = scmp.lt.s32.totalorder %s14082_s24, 3 }
   0x4   : > { %p238_p2 = pnand %p10913_p0, %p237_p1 }
   0x5   : > { %v10948_v0 = vld [vmem:[%s15794_s1 + $0x4] sm:$0xf] (!%p238_p2)  ;;  %vm529_vm0 = vcmask (!%p238_p2), 1043456   ;;  %vm279_vm1 = vcmask (!%p238_p2), 31744   ;;  %p14138_p3 = scmp.lt.s32.totalorder (!%p238_p2), %s10909_s25, 1  ;;  %v14084_v1 = vmov (!%p238_p2), 0.0  }
   0x6   : > { %241 = sbr.rel (%p238_p2) target bundleno = 1098 (0x44a), region = 48  ;;  %12411 = vmatprep.subr.msk.mxu0 (!%p238_p2), %vm529_vm0, %v10948_v0  ;;  %280 = vst.msk [vmem:[#allocation2] sm:$0xff] (!%p238_p2), %vm279_vm1, %v14084_v1  ;;  %281 = vst.msk [vmem:[#allocation2 + $0x8] sm:$0xff] (!%p238_p2), %vm279_vm1, %v14084_v1  ;;  %v462_v2 = vld [vmem:[%s15794_s1] sm:$0xf] (!%p238_p2)  ;;  %vm320_vm2 = vcmask (!%p238_p2), 27648  }
   0x7   : > { %282 = vst.msk [vmem:[#allocation2 + $0x10] sm:$0xff] (!%p238_p2), %vm279_vm1, %v14084_v1  ;;  %283 = vst.msk [vmem:[#allocation2 + $0x18] sm:$0xff] (!%p238_p2), %vm279_vm1, %v14084_v1  ;;  %v11111_v3 = vld [vmem:[%s15794_s1 + $0x4] sm:$0xf] (!%p238_p2)  ;;  %12412 = vmatpush3.msk.msra.mxu0 (!%p238_p2), %vm529_vm0, %v10948_v0  ;;  %v14240_v4 = vld [vmem:[%s15794_s1] sm:$0xf] (!%p238_p2) }
   0x8   : > { %284 = vst.msk [vmem:[#allocation2 + $0x20] sm:$0xff] (!%p238_p2), %vm279_vm1, %v14084_v1  ;;  %285 = vst.msk [vmem:[#allocation2 + $0x28] sm:$0xff] (!%p238_p2), %vm279_vm1, %v14084_v1  ;;  %12645 = vmatprep.subr.msk.mxu1 (!%p238_p2), %vm529_vm0, %v11111_v3  ;;  %12437 = vmatprep.subr.msk.mxu0 (!%p238_p2), %vm529_vm0, %v462_v2  ;;  %v14266_v11 = vld [vmem:[%s15794_s1 + $0x8] sm:$0xf] (!%p238_p2)  ;;  %vm322_vm3 = vcmask (!%p238_p2), 64512   ;;  %vm5643_vm4 = vcmask (!%p238_p2), 58368  }
   0x9   : > { %286 = vst.msk [vmem:[#allocation2 + $0x30] sm:$0xff] (!%p238_p2), %vm279_vm1, %v14084_v1  ;;  %287 = vst.msk [vmem:[#allocation2 + $0x38] sm:$0xff] (!%p238_p2), %vm279_vm1, %v14084_v1  ;;  %12646 = vmatpush3.msk.msra.mxu1 (!%p238_p2), %vm529_vm0, %v11111_v3  ;;  %v14317_v38 = vld [vmem:[%s15794_s1 + $0x8] sm:$0xf] (!%p238_p2)  ;;  %vm5641_vm5 = vcmask (!%p238_p2), 62464   ;;  %vm363_vm6 = vcmask (!%p238_p2), 60416  }
   0xa   : > { %288 = vst.msk [vmem:[#allocation2 + $0x40] sm:$0xff] (!%p238_p2), %vm279_vm1, %v14084_v1  ;;  %289 = vst.msk [vmem:[#allocation2 + $0x48] sm:$0xff] (!%p238_p2), %vm279_vm1, %v14084_v1  ;;  %12671 = vmatprep.subr.msk.mxu1 (!%p238_p2), %vm529_vm0, %v14240_v4 }
   0xb   : > { %290 = vst.msk [vmem:[#allocation2 + $0x50] sm:$0xff] (!%p238_p2), %vm279_vm1, %v14084_v1  ;;  %291 = vst.msk [vmem:[#allocation2 + $0x58] sm:$0xff] (!%p238_p2), %vm279_vm1, %v14084_v1 }
   0xc   : > { %292 = vst.msk [vmem:[#allocation2 + $0x60] sm:$0xff] (!%p238_p2), %vm279_vm1, %v14084_v1  ;;  %293 = vst.msk [vmem:[#allocation2 + $0x68] sm:$0xff] (!%p238_p2), %vm279_vm1, %v14084_v1 }
   0xd   : > { %294 = vst.msk [vmem:[#allocation2 + $0x70] sm:$0xff] %vm279_vm1, %v14084_v1  ;;  %295 = vst.msk [vmem:[#allocation2 + $0x78] sm:$0xff] %vm279_vm1, %v14084_v1  ;;  %s15803_s25 = smov (!%p14138_p3, %s10909_s25), 1  ;;  %v463_v12 = vld [vmem:[#allocation2 + $0x1] sm:$0xff] }
   0xe   : > { %296 = vst.msk [vmem:[#allocation2 + $0x80] sm:$0xff] %vm279_vm1, %v14084_v1  ;;  %297 = vst.msk [vmem:[#allocation2 + $0x88] sm:$0xff] %vm279_vm1, %v14084_v1  ;;  %s11707_s12 = sshll.u32 %s15803_s25, 8  ;;  %v464_v13 = vld [vmem:[#allocation2 + $0x9] sm:$0xff]  ;;  %12413 = vmatprep.mubr.msk.f32.mxu0 %vm279_vm1, %v463_v12  ;;  %v446_v0 = vld [vmem:[#allocation2] sm:$0xff] }
   0xf   : > { %298 = vst.msk [vmem:[#allocation2 + $0x90] sm:$0xff] %vm279_vm1, %v14084_v1  ;;  %299 = vst.msk [vmem:[#allocation2 + $0x98] sm:$0xff] %vm279_vm1, %v14084_v1  ;;  %s14252_s15 = scalar_lea.vmem %s15793_s0, %s11707_s12  ;;  %12414 = vmatmul.mubr.msk.f32.vlgmr.msra.gmra.mrb[0].mxu0 %vm279_vm1, %v464_v13  ;;  %v447_v3 = vld [vmem:[#allocation2 + $0x8] sm:$0xff]  ;;  %s15630_s19 = scalar_lea.vmem %s15800_s7, %s11707_s12 }
  0x10   : > { %300 = vst.msk [vmem:[#allocation2 + $0xa0] sm:$0xff] %vm279_vm1, %v14084_v1  ;;  %301 = vst.msk [vmem:[#allocation2 + $0xa8] sm:$0xff] %vm279_vm1, %v14084_v1  ;;  %v365_v5 = vld [vmem:[%s14252_s15] sm:$0xff]  ;;  %v10929_v7 = vld [vmem:[%s14252_s15 + $0x68] sm:$0xff]  ;;  %12438 = vmatpush3.msk.msra.mxu0 %vm529_vm0, %v462_v2 }
  0x11   : > { %302 = vst.msk [vmem:[#allocation2 + $0xb0] sm:$0xff] %vm279_vm1, %v14084_v1  ;;  %303 = vst.msk [vmem:[#allocation2 + $0xb8] sm:$0xff] %vm279_vm1, %v14084_v1  ;;  %v10928_v6 = vld [vmem:[%s14252_s15 + $0x60] sm:$0xff]  ;;  %v366_v8 = vld [vmem:[%s14252_s15 + $0x8] sm:$0xff]  ;;  %12463 = vmatprep.subr.msk.mxu0 %vm529_vm0, %v14266_v11 }
  0x12   : > { %304 = vst.msk [vmem:[#allocation2 + $0xc0] sm:$0xff] %vm279_vm1, %v14084_v1  ;;  %305 = vst.msk [vmem:[#allocation2 + $0xc8] sm:$0xff] %vm279_vm1, %v14084_v1  ;;  %v10918_v9 = vld [vmem:[%s14252_s15 + $0x10] sm:$0xff]  ;;  %v10919_v14 = vld [vmem:[%s14252_s15 + $0x18] sm:$0xff] }
  0x13   : > { %306 = vst.msk [vmem:[#allocation2 + $0xd0] sm:$0xff] %vm279_vm1, %v14084_v1  ;;  %307 = vst.msk [vmem:[#allocation2 + $0xd8] sm:$0xff] %vm279_vm1, %v14084_v1  ;;  %v10930_v10 = vld [vmem:[%s14252_s15 + $0x70] sm:$0xff]  ;;  %v10931_v15 = vld [vmem:[%s14252_s15 + $0x78] sm:$0xff] }
  0x14   : > { %308 = vst.msk [vmem:[#allocation2 + $0xe0] sm:$0xff] %vm279_vm1, %v14084_v1  ;;  %309 = vst.msk [vmem:[#allocation2 + $0xe8] sm:$0xff] %vm279_vm1, %v14084_v1  ;;  %v10920_v16 = vld [vmem:[%s14252_s15 + $0x20] sm:$0xff]  ;;  %v10921_v18 = vld [vmem:[%s14252_s15 + $0x28] sm:$0xff] }
  0x15   : > { %310 = vst.msk [vmem:[#allocation2 + $0xf0] sm:$0xff] %vm279_vm1, %v14084_v1  ;;  %311 = vst.msk [vmem:[#allocation2 + $0xf8] sm:$0xff] %vm279_vm1, %v14084_v1  ;;  %v10932_v17 = vld [vmem:[%s14252_s15 + $0x80] sm:$0xff]  ;;  %v10933_v19 = vld [vmem:[%s14252_s15 + $0x88] sm:$0xff] }
  0x16   : > { %312 = vst.msk [vmem:[#allocation2 + $0x100] sm:$0xff] %vm279_vm1, %v14084_v1  ;;  %313 = vst.msk [vmem:[#allocation2 + $0x108] sm:$0xff] %vm279_vm1, %v14084_v1  ;;  %v10934_v20 = vld [vmem:[%s14252_s15 + $0x90] sm:$0xff]  ;;  %v10935_v22 = vld [vmem:[%s14252_s15 + $0x98] sm:$0xff] }
  0x17   : > { %314 = vst.msk [vmem:[#allocation2 + $0x110] sm:$0xff] %vm279_vm1, %v14084_v1  ;;  %315 = vst.msk [vmem:[#allocation2 + $0x118] sm:$0xff] %vm279_vm1, %v14084_v1  ;;  %v10922_v21 = vld [vmem:[%s14252_s15 + $0x30] sm:$0xff]  ;;  %v10923_v23 = vld [vmem:[%s14252_s15 + $0x38] sm:$0xff] }
  0x18   : > { %316 = vst.msk [vmem:[#allocation2 + $0x120] sm:$0xff] %vm279_vm1, %v14084_v1  ;;  %317 = vst.msk [vmem:[#allocation2 + $0x128] sm:$0xff] %vm279_vm1, %v14084_v1  ;;  %v10936_v24 = vld [vmem:[%s14252_s15 + $0xa0] sm:$0xff]  ;;  %v10937_v26 = vld [vmem:[%s14252_s15 + $0xa8] sm:$0xff] }
  0x19   : > { %318 = vst.msk [vmem:[#allocation2 + $0x130] sm:$0xff] %vm279_vm1, %v14084_v1  ;;  %319 = vst.msk [vmem:[#allocation2 + $0x138] sm:$0xff] %vm279_vm1, %v14084_v1  ;;  %v10924_v25 = vld [vmem:[%s14252_s15 + $0x40] sm:$0xff]  ;;  %v10925_v27 = vld [vmem:[%s14252_s15 + $0x48] sm:$0xff] }
  0x1a   : > { %367 = vst.msk [vmem:[#allocation2 + $0x13] sm:$0xff] %vm279_vm1, %v365_v5  ;;  %397 = vst.msk [vmem:[#allocation2 + $0x7f] sm:$0xff] %vm279_vm1, %v10928_v6  ;;  %v10926_v28 = vld [vmem:[%s14252_s15 + $0x50] sm:$0xff]  ;;  %v10927_v36 = vld [vmem:[%s14252_s15 + $0x58] sm:$0xff] }
  0x1b   : > { %398 = vst.msk [vmem:[#allocation2 + $0x87] sm:$0xff] %vm279_vm1, %v10929_v7  ;;  %368 = vst.msk [vmem:[#allocation2 + $0x1b] sm:$0xff] %vm279_vm1, %v366_v8  ;;  %v10938_v29 = vld [vmem:[%s14252_s15 + $0xb0] sm:$0xff]  ;;  %v10939_v37 = vld [vmem:[%s14252_s15 + $0xb8] sm:$0xff] }
  0x1c   : > { %372 = vst.msk [vmem:[#allocation2 + $0x25] sm:$0xff] %vm279_vm1, %v10918_v9  ;;  %402 = vst.msk [vmem:[#allocation2 + $0x91] sm:$0xff] %vm279_vm1, %v10930_v10  ;;  %v10940_v47 = vld [vmem:[%s14252_s15 + $0xc0] sm:$0xff]  ;;  %v10941_v48 = vld [vmem:[%s14252_s15 + $0xc8] sm:$0xff] }
  0x1d   : > { %373 = vst.msk [vmem:[#allocation2 + $0x2d] sm:$0xff] %vm279_vm1, %v10919_v14  ;;  %403 = vst.msk [vmem:[#allocation2 + $0x99] sm:$0xff] %vm279_vm1, %v10931_v15  ;;  %v10942_v51 = vld [vmem:[%s14252_s15 + $0xd0] sm:$0xff]  ;;  %v14360_v7 = vld [vmem:[%s15794_s1 + $0xc] sm:$0xf] }
  0x1e   : > { %377 = vst.msk [vmem:[#allocation2 + $0x37] sm:$0xff] %vm279_vm1, %v10920_v16  ;;  %407 = vst.msk [vmem:[#allocation2 + $0xa3] sm:$0xff] %vm279_vm1, %v10932_v17  ;;  %v10943_v13 = vld [vmem:[%s14252_s15 + $0xd8] sm:$0xff]  ;;  %v10944_v14 = vld [vmem:[%s14252_s15 + $0xe0] sm:$0xff] }
  0x1f   : > { %378 = vst.msk [vmem:[#allocation2 + $0x3f] sm:$0xff] %vm279_vm1, %v10921_v18  ;;  %408 = vst.msk [vmem:[#allocation2 + $0xab] sm:$0xff] %vm279_vm1, %v10933_v19 }
  0x20   : > { %412 = vst.msk [vmem:[#allocation2 + $0xb5] sm:$0xff] %vm279_vm1, %v10934_v20  ;;  %382 = vst.msk [vmem:[#allocation2 + $0x49] sm:$0xff] %vm279_vm1, %v10922_v21 }
  0x21   : > { %413 = vst.msk [vmem:[#allocation2 + $0xbd] sm:$0xff] %vm279_vm1, %v10935_v22  ;;  %383 = vst.msk [vmem:[#allocation2 + $0x51] sm:$0xff] %vm279_vm1, %v10923_v23  ;;  %v465_v30 = vld [vmem:[#allocation2 + $0x11] sm:$0xff] }
  0x22   : > { %417 = vst.msk [vmem:[#allocation2 + $0xc7] sm:$0xff] %vm279_vm1, %v10936_v24  ;;  %387 = vst.msk [vmem:[#allocation2 + $0x5b] sm:$0xff] %vm279_vm1, %v10924_v25  ;;  %v2577_v31 = vld [vmem:[#allocation2 + $0x81] sm:$0xff]  ;;  %v2578_v32 = vld [vmem:[#allocation2 + $0x89] sm:$0xff]  ;;  %12416 = vmatprep.mubr.msk.f32.mxu0 %vm279_vm1, %v465_v30 }
  0x23   : > { %418 = vst.msk [vmem:[#allocation2 + $0xcf] sm:$0xff] %vm279_vm1, %v10937_v26  ;;  %388 = vst.msk [vmem:[#allocation2 + $0x63] sm:$0xff] %vm279_vm1, %v10925_v27  ;;  %12647 = vmatprep.mubr.msk.f32.mxu1 %vm279_vm1, %v2577_v31  ;;  %v466_v33 = vld [vmem:[#allocation2 + $0x19] sm:$0xff]  ;;  %v467_v34 = vld [vmem:[#allocation2 + $0x21] sm:$0xff] }
  0x24   : > { %392 = vst.msk [vmem:[#allocation2 + $0x6d] sm:$0xff] %vm279_vm1, %v10926_v28  ;;  %422 = vst.msk [vmem:[#allocation2 + $0xd9] sm:$0xff] %vm279_vm1, %v10938_v29  ;;  %v2579_v35 = vld [vmem:[#allocation2 + $0x91] sm:$0xff]  ;;  %12417 = vmatmul.mubr.msk.f32.gmra.mrb[2].mxu0 %vm279_vm1, %v466_v33  ;;  %12648 = vmatmul.mubr.msk.f32.vlgmr.msra.gmra.mrb[0].mxu1 %vm279_vm1, %v2578_v32  ;;  %v468_v39 = vld [vmem:[#allocation2 + $0x29] sm:$0xff] }
  0x25   : > { %12419 = vmatprep.mubr.msk.f32.mxu0 %vm279_vm1, %v467_v34  ;;  %12650 = vmatprep.mubr.msk.f32.mxu1 %vm279_vm1, %v2579_v35  ;;  %v2580_v40 = vld [vmem:[#allocation2 + $0x99] sm:$0xff]  ;;  %393 = vst.msk [vmem:[#allocation2 + $0x75] sm:$0xff] %vm279_vm1, %v10927_v36  ;;  %423 = vst.msk [vmem:[#allocation2 + $0xe1] sm:$0xff] %vm279_vm1, %v10939_v37  ;;  %v469_v41 = vld [vmem:[#allocation2 + $0x31] sm:$0xff] }
  0x26   : > { %v2581_v42 = vld [vmem:[#allocation2 + $0xa1] sm:$0xff]  ;;  %12672 = vmatpush3.msk.msra.mxu1 %vm529_vm0, %v14240_v4  ;;  %v470_v43 = vld [vmem:[#allocation2 + $0x39] sm:$0xff]  ;;  %v2582_v44 = vld [vmem:[#allocation2 + $0xa9] sm:$0xff]  ;;  %427 = vst.msk [vmem:[#allocation2 + $0xeb] sm:$0xff] %vm279_vm1, %v10940_v47 }
  0x27   : > { %12697 = vmatprep.subr.msk.mxu1 %vm529_vm0, %v14317_v38  ;;  %v471_v45 = vld [vmem:[#allocation2 + $0x41] sm:$0xff]  ;;  %v2583_v46 = vld [vmem:[#allocation2 + $0xb1] sm:$0xff]  ;;  %428 = vst.msk [vmem:[#allocation2 + $0xf3] sm:$0xff] %vm279_vm1, %v10941_v48  ;;  %v472_v49 = vld [vmem:[#allocation2 + $0x49] sm:$0xff] }
  0x28   : > { %12420 = vmatmul.mubr.msk.f32.gmra.mrb[4].mxu0 %vm279_vm1, %v468_v39  ;;  %12651 = vmatmul.mubr.msk.f32.gmra.mrb[2].mxu1 %vm279_vm1, %v2580_v40  ;;  %v2584_v50 = vld [vmem:[#allocation2 + $0xb9] sm:$0xff]  ;;  %v473_v52 = vld [vmem:[#allocation2 + $0x51] sm:$0xff]  ;;  %432 = vst.msk [vmem:[#allocation2 + $0xfd] sm:$0xff] %vm279_vm1, %v10942_v51  ;;  %v2561_v9 = vld [vmem:[#allocation2 + $0x88] sm:$0xff] }
  0x29   : > { %12422 = vmatprep.mubr.msk.f32.mxu0 %vm279_vm1, %v469_v41  ;;  %12653 = vmatprep.mubr.msk.f32.mxu1 %vm279_vm1, %v2581_v42  ;;  %v2585_v53 = vld [vmem:[#allocation2 + $0xc1] sm:$0xff]  ;;  %v474_v54 = vld [vmem:[#allocation2 + $0x59] sm:$0xff]  ;;  %v448_v5 = vld [vmem:[#allocation2 + $0x10] sm:$0xff]  ;;  %433 = vst.msk [vmem:[#allocation2 + $0x105] sm:$0xff] %vm279_vm1, %v10943_v13 }
  0x2a   : > { %v2586_v55 = vld [vmem:[#allocation2 + $0xc9] sm:$0xff]  ;;  %v475_v56 = vld [vmem:[#allocation2 + $0x61] sm:$0xff]  ;;  %v2587_v57 = vld [vmem:[#allocation2 + $0xd1] sm:$0xff]  ;;  %437 = vst.msk [vmem:[#allocation2 + $0x10f] sm:$0xff] %vm279_vm1, %v10944_v14 }
  0x2b   : > { %v476_v58 = vld [vmem:[#allocation2 + $0x69] sm:$0xff]  ;;  %v2588_v59 = vld [vmem:[#allocation2 + $0xd9] sm:$0xff]  ;;  %v11037_v13 = vld [vmem:[%s15794_s1 + $0x14] sm:$0xf]  ;;  %321 = vst.msk [vmem:[#allocation2 + $0x140] sm:$0xf] %vm320_vm2, %v14084_v1 }
  0x2c   : > { %12423 = vmatmul.mubr.msk.f32.gmra.mrb[6].mxu0 %vm279_vm1, %v470_v43  ;;  %12654 = vmatmul.mubr.msk.f32.gmra.mrb[4].mxu1 %vm279_vm1, %v2582_v44  ;;  %v477_v60 = vld [vmem:[#allocation2 + $0x71] sm:$0xff]  ;;  %v2589_v61 = vld [vmem:[#allocation2 + $0xe1] sm:$0xff]  ;;  %v478_v62 = vld [vmem:[#allocation2 + $0x79] sm:$0xff]  ;;  %326 = vst.msk [vmem:[#allocation3 + $0x18] sm:$0xff] %vm322_vm3, %v14084_v1 }
  0x2d   : > { %12425 = vmatprep.mubr.msk.f32.mxu0 %vm279_vm1, %v471_v45  ;;  %12656 = vmatprep.mubr.msk.f32.mxu1 %vm279_vm1, %v2583_v46  ;;  %v2590_v63 = vld [vmem:[#allocation2 + $0xe9] sm:$0xff]  ;;  %v2560_v6 = vld [vmem:[#allocation2 + $0x80] sm:$0xff]  ;;  %v449_v8 = vld [vmem:[#allocation2 + $0x18] sm:$0xff]  ;;  %327 = vst.msk [vmem:[#allocation3 + $0x20] sm:$0xff] %vm322_vm3, %v14084_v1 }
  0x2e   : > { %v2591_v2 = vld [vmem:[#allocation2 + $0xf1] sm:$0xff]  ;;  %v450_v10 = vld [vmem:[#allocation2 + $0x20] sm:$0xff]  ;;  %v451_v15 = vld [vmem:[#allocation2 + $0x28] sm:$0xff]  ;;  %323 = vst.msk [vmem:[#allocation3] sm:$0xff] %vm322_vm3, %v14084_v1 }
  0x2f   : > { %v2592_v4 = vld [vmem:[#allocation2 + $0xf9] sm:$0xff]  ;;  %v2562_v12 = vld [vmem:[#allocation2 + $0x90] sm:$0xff]  ;;  %v2565_v20 = vld [vmem:[#allocation2 + $0xa8] sm:$0xff]  ;;  %324 = vst.msk [vmem:[#allocation3 + $0x8] sm:$0xff] %vm322_vm3, %v14084_v1 }
  0x30   : > { %12426 = vmatmul.mubr.msk.f32.gmra.mrb[8].mxu0 %vm279_vm1, %v472_v49  ;;  %12657 = vmatmul.mubr.msk.f32.gmra.mrb[6].mxu1 %vm279_vm1, %v2584_v50  ;;  %v2563_v16 = vld [vmem:[#allocation2 + $0x98] sm:$0xff]  ;;  %v452_v17 = vld [vmem:[#allocation2 + $0x30] sm:$0xff]  ;;  %v2564_v18 = vld [vmem:[#allocation2 + $0xa0] sm:$0xff]  ;;  %325 = vst.msk [vmem:[#allocation3 + $0x10] sm:$0xff] %vm322_vm3, %v14084_v1 }
  0x31   : > { %12428 = vmatprep.mubr.msk.f32.mxu0 %vm279_vm1, %v473_v52  ;;  %12659 = vmatprep.mubr.msk.f32.mxu1 %vm279_vm1, %v2585_v53  ;;  %v453_v19 = vld [vmem:[#allocation2 + $0x38] sm:$0xff]  ;;  %v454_v21 = vld [vmem:[#allocation2 + $0x40] sm:$0xff]  ;;  %v2566_v22 = vld [vmem:[#allocation2 + $0xb0] sm:$0xff]  ;;  %328 = vst.msk [vmem:[#allocation3 + $0x28] sm:$0xff] %vm322_vm3, %v14084_v1 }
  0x32   : > { %v455_v23 = vld [vmem:[#allocation2 + $0x48] sm:$0xff]  ;;  %v2567_v24 = vld [vmem:[#allocation2 + $0xb8] sm:$0xff]  ;;  %v456_v25 = vld [vmem:[#allocation2 + $0x50] sm:$0xff]  ;;  %329 = vst.msk [vmem:[#allocation3 + $0x30] sm:$0xff] %vm322_vm3, %v14084_v1 }
  0x33   : > { %v2568_v26 = vld [vmem:[#allocation2 + $0xc0] sm:$0xff]  ;;  %v457_v27 = vld [vmem:[#allocation2 + $0x58] sm:$0xff]  ;;  %v2569_v28 = vld [vmem:[#allocation2 + $0xc8] sm:$0xff]  ;;  %330 = vst.msk [vmem:[#allocation3 + $0x38] sm:$0xff] %vm322_vm3, %v14084_v1 }
  0x34   : > { %12429 = vmatmul.mubr.msk.f32.gmra.mrb[10].mxu0 %vm279_vm1, %v474_v54  ;;  %12660 = vmatmul.mubr.msk.f32.gmra.mrb[8].mxu1 %vm279_vm1, %v2586_v55  ;;  %v458_v29 = vld [vmem:[#allocation2 + $0x60] sm:$0xff]  ;;  %v2570_v30 = vld [vmem:[#allocation2 + $0xd0] sm:$0xff]  ;;  %v459_v31 = vld [vmem:[#allocation2 + $0x68] sm:$0xff]  ;;  %331 = vst.msk [vmem:[#allocation3 + $0x40] sm:$0xff] %vm322_vm3, %v14084_v1 }
  0x35   : > { %12431 = vmatprep.mubr.msk.f32.mxu0 %vm279_vm1, %v475_v56  ;;  %12662 = vmatprep.mubr.msk.f32.mxu1 %vm279_vm1, %v2587_v57  ;;  %v2571_v32 = vld [vmem:[#allocation2 + $0xd8] sm:$0xff]  ;;  %v460_v33 = vld [vmem:[#allocation2 + $0x70] sm:$0xff]  ;;  %v2572_v34 = vld [vmem:[#allocation2 + $0xe0] sm:$0xff]  ;;  %332 = vst.msk [vmem:[#allocation3 + $0x48] sm:$0xff] %vm322_vm3, %v14084_v1 }
  0x36   : > { %v461_v35 = vld [vmem:[#allocation2 + $0x78] sm:$0xff]  ;;  %v2573_v36 = vld [vmem:[#allocation2 + $0xe8] sm:$0xff]  ;;  %v14418_v43 = vld [vmem:[%s15794_s1 + $0x10] sm:$0xf]  ;;  %333 = vst.msk [vmem:[#allocation3 + $0x50] sm:$0xff] %vm322_vm3, %v14084_v1 }
  0x37   : > { %v874_v37 = vld [vmem:[#allocation2 + $0x2] sm:$0xff]  ;;  %v875_v39 = vld [vmem:[#allocation2 + $0xa] sm:$0xff]  ;;  %v2575_v40 = vld [vmem:[#allocation2 + $0xf8] sm:$0xff]  ;;  %334 = vst.msk [vmem:[#allocation3 + $0x58] sm:$0xff] %vm322_vm3, %v14084_v1 }
  0x38   : > { %12432 = vmatmul.mubr.msk.f32.gmra.mrb[12].mxu0 %vm279_vm1, %v476_v58  ;;  %12663 = vmatmul.mubr.msk.f32.gmra.mrb[10].mxu1 %vm279_vm1, %v2588_v59  ;;  %v14411_v41 = vld [vmem:[#allocation2 + $0x12] sm:$0xff]  ;;  %v14413_v42 = vld [vmem:[#allocation2 + $0x82] sm:$0xff]  ;;  %v14426_v44 = vld [vmem:[#allocation2 + $0x1a] sm:$0xff]  ;;  %335 = vst.msk [vmem:[#allocation3 + $0x60] sm:$0xff] %vm322_vm3, %v14084_v1 }
  0x39   : > { %12434 = vmatprep.mubr.msk.f32.mxu0 %vm279_vm1, %v477_v60  ;;  %12665 = vmatprep.mubr.msk.f32.mxu1 %vm279_vm1, %v2589_v61  ;;  %v14428_v45 = vld [vmem:[#allocation2 + $0x8a] sm:$0xff]  ;;  %v14432_v46 = vld [vmem:[#allocation2 + $0x22] sm:$0xff]  ;;  %v14434_v47 = vld [vmem:[#allocation2 + $0x92] sm:$0xff]  ;;  %336 = vst.msk [vmem:[#allocation3 + $0x68] sm:$0xff] %vm322_vm3, %v14084_v1 }
  0x3a   : > { %v14445_v48 = vld [vmem:[%s15794_s1 + $0x10] sm:$0xf]  ;;  %v2989_v50 = vld [vmem:[#allocation2 + $0x9a] sm:$0xff]  ;;  %v2990_v52 = vld [vmem:[#allocation2 + $0xa2] sm:$0xff]  ;;  %337 = vst.msk [vmem:[#allocation3 + $0x70] sm:$0xff] %vm322_vm3, %v14084_v1 }
  0x3b   : > { %v879_v49 = vld [vmem:[#allocation2 + $0x2a] sm:$0xff]  ;;  %v880_v51 = vld [vmem:[#allocation2 + $0x32] sm:$0xff]  ;;  %v881_v53 = vld [vmem:[#allocation2 + $0x3a] sm:$0xff]  ;;  %338 = vst.msk [vmem:[#allocation3 + $0x78] sm:$0xff] %vm322_vm3, %v14084_v1 }
  0x3c   : > { %12435 = vmatmul.mubr.msk.f32.gmra.mrb[14].mxu0 %vm279_vm1, %v478_v62  ;;  %12666 = vmatmul.mubr.msk.f32.gmra.mrb[12].mxu1 %vm279_vm1, %v2590_v63  ;;  %v2991_v54 = vld [vmem:[#allocation2 + $0xaa] sm:$0xff]  ;;  %v882_v55 = vld [vmem:[#allocation2 + $0x42] sm:$0xff]  ;;  %v2992_v56 = vld [vmem:[#allocation2 + $0xb2] sm:$0xff]  ;;  %339 = vst.msk [vmem:[#allocation3 + $0x80] sm:$0xff] %vm322_vm3, %v14084_v1 }
  0x3d   : > { %12439 = vmatprep.mubr.msk.f32.mxu0 %vm279_vm1, %v446_v0  ;;  %12668 = vmatprep.mubr.msk.f32.mxu1 %vm279_vm1, %v2591_v2  ;;  %v883_v57 = vld [vmem:[#allocation2 + $0x4a] sm:$0xff]  ;;  %v2993_v58 = vld [vmem:[#allocation2 + $0xba] sm:$0xff]  ;;  %v884_v59 = vld [vmem:[#allocation2 + $0x52] sm:$0xff]  ;;  %340 = vst.msk [vmem:[#allocation3 + $0x88] sm:$0xff] %vm322_vm3, %v14084_v1 }
  0x3e   : > { %v2994_v60 = vld [vmem:[#allocation2 + $0xc2] sm:$0xff]  ;;  %v885_v61 = vld [vmem:[#allocation2 + $0x5a] sm:$0xff]  ;;  %v2995_v62 = vld [vmem:[#allocation2 + $0xca] sm:$0xff]  ;;  %341 = vst.msk [vmem:[#allocation3 + $0x90] sm:$0xff] %vm322_vm3, %v14084_v1 }
  0x3f   : > { %v886_v63 = vld [vmem:[#allocation2 + $0x62] sm:$0xff]  ;;  %v2996_v0 = vld [vmem:[#allocation2 + $0xd2] sm:$0xff]  ;;  %v887_v2 = vld [vmem:[#allocation2 + $0x6a] sm:$0xff]  ;;  %342 = vst.msk [vmem:[#allocation3 + $0x98] sm:$0xff] %vm322_vm3, %v14084_v1 }
  0x40   : > { %12440 = vmatmul.mubr.msk.f32.vlgmr.msra.gmra.mrb[0].mxu0 %vm279_vm1, %v447_v3  ;;  %12669 = vmatmul.mubr.msk.f32.gmra.mrb[14].mxu1 %vm279_vm1, %v2592_v4  ;;  %v2997_v3 = vld [vmem:[#allocation2 + $0xda] sm:$0xff]  ;;  %v888_v4 = vld [vmem:[#allocation2 + $0x72] sm:$0xff]  ;;  %343 = vst.msk [vmem:[#allocation3 + $0xa0] sm:$0xff] %vm322_vm3, %v14084_v1  ;;  %344 = vst.msk [vmem:[#allocation3 + $0xa8] sm:$0xff] %vm322_vm3, %v14084_v1 }
  0x41   : > { %12464 = vmatpush3.msk.msra.mxu0 %vm529_vm0, %v14266_v11  ;;  %12442 = vmatprep.mubr.msk.f32.mxu0 %vm279_vm1, %v448_v5  ;;  %v14376_v11 = vld [vmem:[%s15794_s1 + $0xc] sm:$0xf]  ;;  %v2998_v5 = vld [vmem:[#allocation2 + $0xe2] sm:$0xff]  ;;  %v1334_v14 = vld [vmem:[#allocation2 + $0x13] sm:$0xff]  ;;  %345 = vst.msk [vmem:[#allocation3 + $0xb0] sm:$0xff] %vm322_vm3, %v14084_v1 }
  0x42   : > { %12673 = vmatprep.mubr.msk.f32.mxu1 %vm279_vm1, %v2560_v6  ;;  %12489 = vmatprep.subr.msk.mxu0 %vm529_vm0, %v14360_v7  ;;  %v10945_v6 = vld [vmem:[%s14252_s15 + $0xe8] sm:$0xff]  ;;  %346 = vst.msk [vmem:[#allocation3 + $0xb8] sm:$0xff] %vm322_vm3, %v14084_v1  ;;  %347 = vst.msk [vmem:[#allocation3 + $0xc0] sm:$0xff] %vm322_vm3, %v14084_v1 }
  0x43   : > { %438 = vst.msk [vmem:[#allocation2 + $0x117] sm:$0xff] %vm279_vm1, %v10945_v6  ;;  %v3680_v6 = vld [vmem:[#allocation2 + $0xcc] sm:$0xff] }
  0x44   : > { %12443 = vmatmul.mubr.msk.f32.gmra.mrb[2].mxu0 %vm279_vm1, %v449_v8  ;;  %12674 = vmatmul.mubr.msk.f32.vlgmr.msra.gmra.mrb[0].mxu1 %vm279_vm1, %v2561_v9  ;;  %v889_v8 = vld [vmem:[#allocation2 + $0x7a] sm:$0xff]  ;;  %v2999_v9 = vld [vmem:[#allocation2 + $0xea] sm:$0xff]  ;;  %348 = vst.msk [vmem:[#allocation3 + $0xc8] sm:$0xff] %vm322_vm3, %v14084_v1  ;;  %349 = vst.msk [vmem:[#allocation3 + $0xd0] sm:$0xff] %vm322_vm3, %v14084_v1 }
  0x45   : > { %12445 = vmatprep.mubr.msk.f32.mxu0 %vm279_vm1, %v450_v10  ;;  %12676 = vmatprep.mubr.msk.f32.mxu1 %vm279_vm1, %v2562_v12  ;;  %v3000_v10 = vld [vmem:[#allocation2 + $0xf2] sm:$0xff]  ;;  %v3001_v12 = vld [vmem:[#allocation2 + $0xfa] sm:$0xff]  ;;  %350 = vst.msk [vmem:[#allocation3 + $0xd8] sm:$0xff] %vm322_vm3, %v14084_v1  ;;  %351 = vst.msk [vmem:[#allocation3 + $0xe0] sm:$0xff] %vm322_vm3, %v14084_v1 }
  0x46   : > { %12698 = vmatpush3.msk.msra.mxu1 %vm529_vm0, %v14317_v38  ;;  %v2574_v38 = vld [vmem:[#allocation2 + $0xf0] sm:$0xff]  ;;  %352 = vst.msk [vmem:[#allocation3 + $0xe8] sm:$0xff] %vm322_vm3, %v14084_v1  ;;  %353 = vst.msk [vmem:[#allocation3 + $0xf0] sm:$0xff] %vm322_vm3, %v14084_v1 }
  0x47   : > { %12723 = vmatprep.subr.msk.mxu1 %vm529_vm0, %v14376_v11  ;;  %354 = vst.msk [vmem:[#allocation3 + $0xf8] sm:$0xff] %vm322_vm3, %v14084_v1  ;;  %355 = vst.msk [vmem:[#allocation3 + $0x100] sm:$0xff] %vm322_vm3, %v14084_v1 }
  0x48   : > { %12446 = vmatmul.mubr.msk.f32.gmra.mrb[4].mxu0 %vm279_vm1, %v451_v15  ;;  %12677 = vmatmul.mubr.msk.f32.gmra.mrb[2].mxu1 %vm279_vm1, %v2563_v16  ;;  %v14528_v15 = vld [vmem:[#allocation2 + $0x102] sm:$0xff]  ;;  %356 = vst.msk [vmem:[#allocation3 + $0x108] sm:$0xff] %vm322_vm3, %v14084_v1  ;;  %357 = vst.msk [vmem:[#allocation3 + $0x110] sm:$0xff] %vm322_vm3, %v14084_v1 }
  0x49   : > { %12448 = vmatprep.mubr.msk.f32.mxu0 %vm279_vm1, %v452_v17  ;;  %12679 = vmatprep.mubr.msk.f32.mxu1 %vm279_vm1, %v2564_v18  ;;  %v1335_v16 = vld [vmem:[#allocation2 + $0x1b] sm:$0xff]  ;;  %v14536_v17 = vld [vmem:[#allocation2 + $0x10a] sm:$0xff]  ;;  %358 = vst.msk [vmem:[#allocation3 + $0x118] sm:$0xff] %vm322_vm3, %v14084_v1  ;;  %359 = vst.msk [vmem:[#allocation3 + $0x120] sm:$0xff] %vm322_vm3, %v14084_v1 }
  0x4a   : > { %v1336_v18 = vld [vmem:[#allocation2 + $0x23] sm:$0xff]  ;;  %360 = vst.msk [vmem:[#allocation3 + $0x128] sm:$0xff] %vm322_vm3, %v14084_v1  ;;  %361 = vst.msk [vmem:[#allocation3 + $0x130] sm:$0xff] %vm322_vm3, %v14084_v1 }
  0x4b   : > { %362 = vst.msk [vmem:[#allocation3 + $0x138] sm:$0xff] %vm322_vm3, %v14084_v1 }
  0x4c   : > { %12449 = vmatmul.mubr.msk.f32.gmra.mrb[6].mxu0 %vm279_vm1, %v453_v19  ;;  %12680 = vmatmul.mubr.msk.f32.gmra.mrb[4].mxu1 %vm279_vm1, %v2565_v20  ;;  %v3444_v19 = vld [vmem:[#allocation2 + $0x93] sm:$0xff]  ;;  %364 = vst.msk [vmem:[#allocation3 + $0x140] sm:$0xf] %vm363_vm6, %v14084_v1 }
  0x4d   : > { %12451 = vmatprep.mubr.msk.f32.mxu0 %vm279_vm1, %v454_v21  ;;  %12682 = vmatprep.mubr.msk.f32.mxu1 %vm279_vm1, %v2566_v22  ;;  %v14541_v20 = vld [vmem:[%s15794_s1 + $0x18] sm:$0xf]  ;;  %v1337_v21 = vld [vmem:[#allocation2 + $0x2b] sm:$0xff] }
  0x4e   : > { %v3445_v22 = vld [vmem:[#allocation2 + $0x9b] sm:$0xff] }
  0x50   : > { %12452 = vmatmul.mubr.msk.f32.gmra.mrb[8].mxu0 %vm279_vm1, %v455_v23  ;;  %12683 = vmatmul.mubr.msk.f32.gmra.mrb[6].mxu1 %vm279_vm1, %v2567_v24  ;;  %v1338_v23 = vld [vmem:[#allocation2 + $0x33] sm:$0xff]  ;;  %v3446_v24 = vld [vmem:[#allocation2 + $0xa3] sm:$0xff] }
  0x51   : > { %12454 = vmatprep.mubr.msk.f32.mxu0 %vm279_vm1, %v456_v25  ;;  %12685 = vmatprep.mubr.msk.f32.mxu1 %vm279_vm1, %v2568_v26  ;;  %v14556_v25 = vld [vmem:[%s15794_s1 + $0x18] sm:$0xf] }
  0x52   : > { %v1339_v26 = vld [vmem:[#allocation2 + $0x3b] sm:$0xff] }
  0x54   : > { %12455 = vmatmul.mubr.msk.f32.gmra.mrb[10].mxu0 %vm279_vm1, %v457_v27  ;;  %12686 = vmatmul.mubr.msk.f32.gmra.mrb[8].mxu1 %vm279_vm1, %v2569_v28  ;;  %v3447_v27 = vld [vmem:[#allocation2 + $0xab] sm:$0xff]  ;;  %v1340_v28 = vld [vmem:[#allocation2 + $0x43] sm:$0xff] }
  0x55   : > { %12457 = vmatprep.mubr.msk.f32.mxu0 %vm279_vm1, %v458_v29  ;;  %12688 = vmatprep.mubr.msk.f32.mxu1 %vm279_vm1, %v2570_v30  ;;  %v3448_v29 = vld [vmem:[#allocation2 + $0xb3] sm:$0xff]  ;;  %v1341_v30 = vld [vmem:[#allocation2 + $0x4b] sm:$0xff] }
  0x58   : > { %12458 = vmatmul.mubr.msk.f32.gmra.mrb[12].mxu0 %vm279_vm1, %v459_v31  ;;  %12689 = vmatmul.mubr.msk.f32.gmra.mrb[10].mxu1 %vm279_vm1, %v2571_v32  ;;  %v3449_v31 = vld [vmem:[#allocation2 + $0xbb] sm:$0xff]  ;;  %v1342_v32 = vld [vmem:[#allocation2 + $0x53] sm:$0xff] }
  0x59   : > { %12460 = vmatprep.mubr.msk.f32.mxu0 %vm279_vm1, %v460_v33  ;;  %12691 = vmatprep.mubr.msk.f32.mxu1 %vm279_vm1, %v2572_v34  ;;  %v3450_v33 = vld [vmem:[#allocation2 + $0xc3] sm:$0xff]  ;;  %v1343_v34 = vld [vmem:[#allocation2 + $0x5b] sm:$0xff] }
  0x5c   : > { %12461 = vmatmul.mubr.msk.f32.gmra.mrb[14].mxu0 %vm279_vm1, %v461_v35  ;;  %12692 = vmatmul.mubr.msk.f32.gmra.mrb[12].mxu1 %vm279_vm1, %v2573_v36  ;;  %v3451_v35 = vld [vmem:[#allocation2 + $0xcb] sm:$0xff]  ;;  %v1344_v36 = vld [vmem:[#allocation2 + $0x63] sm:$0xff] }
  0x5d   : > { %12465 = vmatprep.mubr.msk.f32.mxu0 %vm279_vm1, %v874_v37  ;;  %12694 = vmatprep.mubr.msk.f32.mxu1 %vm279_vm1, %v2574_v38  ;;  %v3452_v37 = vld [vmem:[#allocation2 + $0xd3] sm:$0xff]  ;;  %v1345_v38 = vld [vmem:[#allocation2 + $0x6b] sm:$0xff] }
  0x60   : > { %12466 = vmatmul.mubr.msk.f32.vlgmr.msra.gmra.mrb[0].mxu0 %vm279_vm1, %v875_v39  ;;  %12695 = vmatmul.mubr.msk.f32.gmra.mrb[14].mxu1 %vm279_vm1, %v2575_v40  ;;  %v3453_v39 = vld [vmem:[#allocation2 + $0xdb] sm:$0xff]  ;;  %v1346_v40 = vld [vmem:[#allocation2 + $0x73] sm:$0xff] }
  0x61   : > { %12490 = vmatpush3.msk.msra.mxu0 %vm529_vm0, %v14360_v7  ;;  %12468 = vmatprep.mubr.msk.f32.mxu0 %vm279_vm1, %v14411_v41  ;;  %v10946_v7 = vld [vmem:[%s14252_s15 + $0xf0] sm:$0xff] }
  0x62   : > { %12699 = vmatprep.mubr.msk.f32.mxu1 %vm279_vm1, %v14413_v42  ;;  %12515 = vmatprep.subr.msk.mxu0 %vm529_vm0, %v14418_v43  ;;  %442 = vst.msk [vmem:[#allocation2 + $0x121] sm:$0xff] %vm279_vm1, %v10946_v7  ;;  %v1574_v7 = vld [vmem:[#allocation2 + $0x64] sm:$0xff] }
  0x64   : > { %12469 = vmatmul.mubr.msk.f32.gmra.mrb[2].mxu0 %vm279_vm1, %v14426_v44  ;;  %12700 = vmatmul.mubr.msk.f32.vlgmr.msra.gmra.mrb[0].mxu1 %vm279_vm1, %v14428_v45 }
  0x65   : > { %12471 = vmatprep.mubr.msk.f32.mxu0 %vm279_vm1, %v14432_v46  ;;  %12702 = vmatprep.mubr.msk.f32.mxu1 %vm279_vm1, %v14434_v47 }
  0x66   : > { %12724 = vmatpush3.msk.msra.mxu1 %vm529_vm0, %v14376_v11  ;;  %v11200_v11 = vld [vmem:[%s15794_s1 + $0x14] sm:$0xf] }
  0x67   : > { %12749 = vmatprep.subr.msk.mxu1 %vm529_vm0, %v14445_v48 }
  0x68   : > { %12472 = vmatmul.mubr.msk.f32.gmra.mrb[4].mxu0 %vm279_vm1, %v879_v49  ;;  %12703 = vmatmul.mubr.msk.f32.gmra.mrb[2].mxu1 %vm279_vm1, %v2989_v50 }
  0x69   : > { %12474 = vmatprep.mubr.msk.f32.mxu0 %vm279_vm1, %v880_v51  ;;  %12705 = vmatprep.mubr.msk.f32.mxu1 %vm279_vm1, %v2990_v52 }
  0x6c   : > { %12475 = vmatmul.mubr.msk.f32.gmra.mrb[6].mxu0 %vm279_vm1, %v881_v53  ;;  %12706 = vmatmul.mubr.msk.f32.gmra.mrb[4].mxu1 %vm279_vm1, %v2991_v54 }
  0x6d   : > { %12477 = vmatprep.mubr.msk.f32.mxu0 %vm279_vm1, %v882_v55  ;;  %12708 = vmatprep.mubr.msk.f32.mxu1 %vm279_vm1, %v2992_v56 }
  0x70   : > { %12478 = vmatmul.mubr.msk.f32.gmra.mrb[8].mxu0 %vm279_vm1, %v883_v57  ;;  %12709 = vmatmul.mubr.msk.f32.gmra.mrb[6].mxu1 %vm279_vm1, %v2993_v58 }
  0x71   : > { %12480 = vmatprep.mubr.msk.f32.mxu0 %vm279_vm1, %v884_v59  ;;  %12711 = vmatprep.mubr.msk.f32.mxu1 %vm279_vm1, %v2994_v60 }
  0x74   : > { %12481 = vmatmul.mubr.msk.f32.gmra.mrb[10].mxu0 %vm279_vm1, %v885_v61  ;;  %12712 = vmatmul.mubr.msk.f32.gmra.mrb[8].mxu1 %vm279_vm1, %v2995_v62 }
  0x75   : > { %12483 = vmatprep.mubr.msk.f32.mxu0 %vm279_vm1, %v886_v63  ;;  %12714 = vmatprep.mubr.msk.f32.mxu1 %vm279_vm1, %v2996_v0 }
  0x78   : > { %12484 = vmatmul.mubr.msk.f32.gmra.mrb[12].mxu0 %vm279_vm1, %v887_v2  ;;  %12715 = vmatmul.mubr.msk.f32.gmra.mrb[10].mxu1 %vm279_vm1, %v2997_v3 }
  0x79   : > { %12486 = vmatprep.mubr.msk.f32.mxu0 %vm279_vm1, %v888_v4  ;;  %12717 = vmatprep.mubr.msk.f32.mxu1 %vm279_vm1, %v2998_v5 }
  0x7c   : > { %12487 = vmatmul.mubr.msk.f32.gmra.mrb[14].mxu0 %vm279_vm1, %v889_v8  ;;  %12718 = vmatmul.mubr.msk.f32.gmra.mrb[12].mxu1 %vm279_vm1, %v2999_v9 }
  0x7d   : > { %12491 = vmatprep.mubr.msk.f32.mxu0 %vm279_vm1, %v14411_v41  ;;  %12720 = vmatprep.mubr.msk.f32.mxu1 %vm279_vm1, %v3000_v10  ;;  %v3454_v41 = vld [vmem:[#allocation2 + $0xe3] sm:$0xff] }
  0x80   : > { %12492 = vmatmul.mubr.msk.f32.vlgmr.msra.gmra.mrb[0].mxu0 %vm279_vm1, %v14426_v44  ;;  %12721 = vmatmul.mubr.msk.f32.gmra.mrb[14].mxu1 %vm279_vm1, %v3001_v12  ;;  %v1348_v44 = vld [vmem:[#allocation2 + $0x83] sm:$0xff] }
  0x81   : > { %12516 = vmatpush3.msk.msra.mxu0 %vm529_vm0, %v14418_v43  ;;  %12494 = vmatprep.mubr.msk.f32.mxu0 %vm279_vm1, %v14432_v46  ;;  %v3455_v43 = vld [vmem:[#allocation2 + $0xeb] sm:$0xff] }
  0x82   : > { %12725 = vmatprep.mubr.msk.f32.mxu1 %vm279_vm1, %v14434_v47  ;;  %12541 = vmatprep.subr.msk.mxu0 %vm529_vm0, %v11037_v13  ;;  %v1349_v46 = vld [vmem:[#allocation2 + $0x8b] sm:$0xff]  ;;  %v3457_v47 = vld [vmem:[#allocation2 + $0xfb] sm:$0xff] }
  0x84   : > { %12495 = vmatmul.mubr.msk.f32.gmra.mrb[2].mxu0 %vm279_vm1, %v879_v49  ;;  %12726 = vmatmul.mubr.msk.f32.vlgmr.msra.gmra.mrb[0].mxu1 %vm279_vm1, %v2989_v50  ;;  %v3458_v49 = vld [vmem:[#allocation2 + $0x103] sm:$0xff] }
  0x85   : > { %12497 = vmatprep.mubr.msk.f32.mxu0 %vm279_vm1, %v880_v51  ;;  %12728 = vmatprep.mubr.msk.f32.mxu1 %vm279_vm1, %v2990_v52  ;;  %v1565_v50 = vld [vmem:[#allocation2 + $0x1c] sm:$0xff]  ;;  %v3459_v51 = vld [vmem:[#allocation2 + $0x10b] sm:$0xff] }
  0x86   : > { %12750 = vmatpush3.msk.msra.mxu1 %vm529_vm0, %v14445_v48  ;;  %v1564_v48 = vld [vmem:[#allocation2 + $0x14] sm:$0xff]  ;;  %v14587_v52 = vld [vmem:[#allocation2 + $0x24] sm:$0xff] }
  0x87   : > { %12775 = vmatprep.subr.msk.mxu1 %vm529_vm0, %v11200_v11 }
  0x88   : > { %12498 = vmatmul.mubr.msk.f32.gmra.mrb[4].mxu0 %vm279_vm1, %v881_v53  ;;  %12729 = vmatmul.mubr.msk.f32.gmra.mrb[2].mxu1 %vm279_vm1, %v2991_v54  ;;  %v14589_v53 = vld [vmem:[#allocation2 + $0x94] sm:$0xff]  ;;  %v14594_v54 = vld [vmem:[%s15794_s1 + $0x1c] sm:$0xf] }
  0x89   : > { %12500 = vmatprep.mubr.msk.f32.mxu0 %vm279_vm1, %v882_v55  ;;  %12731 = vmatprep.mubr.msk.f32.mxu1 %vm279_vm1, %v2992_v56  ;;  %v14602_v55 = vld [vmem:[#allocation2 + $0x2c] sm:$0xff]  ;;  %v14604_v56 = vld [vmem:[#allocation2 + $0x9c] sm:$0xff] }
  0x8c   : > { %12501 = vmatmul.mubr.msk.f32.gmra.mrb[6].mxu0 %vm279_vm1, %v883_v57  ;;  %12732 = vmatmul.mubr.msk.f32.gmra.mrb[4].mxu1 %vm279_vm1, %v2993_v58  ;;  %v14608_v57 = vld [vmem:[#allocation2 + $0x34] sm:$0xff]  ;;  %v14610_v58 = vld [vmem:[#allocation2 + $0xa4] sm:$0xff] }
  0x8d   : > { %12503 = vmatprep.mubr.msk.f32.mxu0 %vm279_vm1, %v884_v59  ;;  %12734 = vmatprep.mubr.msk.f32.mxu1 %vm279_vm1, %v2994_v60  ;;  %v14621_v59 = vld [vmem:[%s15794_s1 + $0x1c] sm:$0xf] }
  0x8e   : > { %v1569_v60 = vld [vmem:[#allocation2 + $0x3c] sm:$0xff] }
  0x90   : > { %12504 = vmatmul.mubr.msk.f32.gmra.mrb[8].mxu0 %vm279_vm1, %v885_v61  ;;  %12735 = vmatmul.mubr.msk.f32.gmra.mrb[6].mxu1 %vm279_vm1, %v2995_v62  ;;  %v3676_v61 = vld [vmem:[#allocation2 + $0xac] sm:$0xff]  ;;  %v1570_v62 = vld [vmem:[#allocation2 + $0x44] sm:$0xff] }
  0x91   : > { %12506 = vmatprep.mubr.msk.f32.mxu0 %vm279_vm1, %v886_v63  ;;  %12737 = vmatprep.mubr.msk.f32.mxu1 %vm279_vm1, %v2996_v0  ;;  %v3677_v63 = vld [vmem:[#allocation2 + $0xb4] sm:$0xff]  ;;  %v1571_v0 = vld [vmem:[#allocation2 + $0x4c] sm:$0xff] }
  0x94   : > { %12507 = vmatmul.mubr.msk.f32.gmra.mrb[10].mxu0 %vm279_vm1, %v887_v2  ;;  %12738 = vmatmul.mubr.msk.f32.gmra.mrb[8].mxu1 %vm279_vm1, %v2997_v3  ;;  %v3678_v2 = vld [vmem:[#allocation2 + $0xbc] sm:$0xff]  ;;  %v1572_v3 = vld [vmem:[#allocation2 + $0x54] sm:$0xff] }
  0x95   : > { %12509 = vmatprep.mubr.msk.f32.mxu0 %vm279_vm1, %v888_v4  ;;  %12740 = vmatprep.mubr.msk.f32.mxu1 %vm279_vm1, %v2998_v5  ;;  %v3679_v4 = vld [vmem:[#allocation2 + $0xc4] sm:$0xff]  ;;  %v1573_v5 = vld [vmem:[#allocation2 + $0x5c] sm:$0xff] }
  0x98   : > { %12510 = vmatmul.mubr.msk.f32.gmra.mrb[12].mxu0 %vm279_vm1, %v889_v8  ;;  %12741 = vmatmul.mubr.msk.f32.gmra.mrb[10].mxu1 %vm279_vm1, %v2999_v9  ;;  %v3681_v8 = vld [vmem:[#allocation2 + $0xd4] sm:$0xff]  ;;  %v1575_v9 = vld [vmem:[#allocation2 + $0x6c] sm:$0xff] }
  0x99   : > { %12512 = vmatprep.mubr.msk.f32.mxu0 %vm279_vm1, %v14413_v42  ;;  %12743 = vmatprep.mubr.msk.f32.mxu1 %vm279_vm1, %v3000_v10  ;;  %v1347_v42 = vld [vmem:[#allocation2 + $0x7b] sm:$0xff] }
  0x9a   : > { %v3682_v10 = vld [vmem:[#allocation2 + $0xdc] sm:$0xff] }
  0x9c   : > { %12513 = vmatmul.mubr.msk.f32.gmra.mrb[14].mxu0 %vm279_vm1, %v14428_v45  ;;  %12744 = vmatmul.mubr.msk.f32.gmra.mrb[12].mxu1 %vm279_vm1, %v3001_v12  ;;  %v3456_v45 = vld [vmem:[#allocation2 + $0xf3] sm:$0xff] }
  0x9d   : > { %12517 = vmatprep.mubr.msk.f32.mxu0 %vm279_vm1, %v1334_v14  ;;  %12746 = vmatprep.mubr.msk.f32.mxu1 %vm279_vm1, %v14528_v15  ;;  %v1576_v12 = vld [vmem:[#allocation2 + $0x74] sm:$0xff]  ;;  %v1577_v14 = vld [vmem:[#allocation2 + $0x7c] sm:$0xff] }
  0xa0   : > { %12518 = vmatmul.mubr.msk.f32.vlgmr.msra.gmra.mrb[0].mxu0 %vm279_vm1, %v1335_v16  ;;  %12747 = vmatmul.mubr.msk.f32.gmra.mrb[14].mxu1 %vm279_vm1, %v14536_v17  ;;  %v3684_v16 = vld [vmem:[#allocation2 + $0xec] sm:$0xff] }
  0xa1   : > { %12542 = vmatpush3.msk.msra.mxu0 %vm529_vm0, %v11037_v13  ;;  %12520 = vmatprep.mubr.msk.f32.mxu0 %vm279_vm1, %v1336_v18  ;;  %v3683_v13 = vld [vmem:[#allocation2 + $0xe4] sm:$0xff] }
  0xa2   : > { %12751 = vmatprep.mubr.msk.f32.mxu1 %vm279_vm1, %v3444_v19  ;;  %12567 = vmatprep.subr.msk.mxu0 %vm529_vm0, %v14541_v20  ;;  %v1578_v18 = vld [vmem:[#allocation2 + $0x84] sm:$0xff]  ;;  %v3685_v19 = vld [vmem:[#allocation2 + $0xf4] sm:$0xff] }
  0xa4   : > { %12521 = vmatmul.mubr.msk.f32.gmra.mrb[2].mxu0 %vm279_vm1, %v1337_v21  ;;  %12752 = vmatmul.mubr.msk.f32.vlgmr.msra.gmra.mrb[0].mxu1 %vm279_vm1, %v3445_v22  ;;  %v3686_v21 = vld [vmem:[#allocation2 + $0xfc] sm:$0xff]  ;;  %v3687_v22 = vld [vmem:[#allocation2 + $0x104] sm:$0xff] }
  0xa5   : > { %12523 = vmatprep.mubr.msk.f32.mxu0 %vm279_vm1, %v1338_v23  ;;  %12754 = vmatprep.mubr.msk.f32.mxu1 %vm279_vm1, %v3446_v24  ;;  %v3688_v23 = vld [vmem:[#allocation2 + $0x10c] sm:$0xff]  ;;  %v11091_v24 = vld [vmem:[%s15794_s1 + $0x20] sm:$0xf] }
  0xa6   : > { %12776 = vmatpush3.msk.msra.mxu1 %vm529_vm0, %v11200_v11  ;;  %v10947_v11 = vld [vmem:[%s14252_s15 + $0xf8] sm:$0xff] }
  0xa7   : > { %12801 = vmatprep.subr.msk.mxu1 %vm529_vm0, %v14556_v25  ;;  %443 = vst.msk [vmem:[#allocation2 + $0x129] sm:$0xff] %vm279_vm1, %v10947_v11  ;;  %v4365_v11 = vld [vmem:[#allocation2 + $0xce] sm:$0xff] }
  0xa8   : > { %12524 = vmatmul.mubr.msk.f32.gmra.mrb[4].mxu0 %vm279_vm1, %v1339_v26  ;;  %12755 = vmatmul.mubr.msk.f32.gmra.mrb[2].mxu1 %vm279_vm1, %v3447_v27  ;;  %v2024_v26 = vld [vmem:[#allocation2 + $0x25] sm:$0xff]  ;;  %v14706_v27 = vld [vmem:[#allocation2 + $0x114] sm:$0xff] }
  0xa9   : > { %12526 = vmatprep.mubr.msk.f32.mxu0 %vm279_vm1, %v1340_v28  ;;  %12757 = vmatprep.mubr.msk.f32.mxu1 %vm279_vm1, %v3448_v29  ;;  %v2025_v28 = vld [vmem:[#allocation2 + $0x2d] sm:$0xff]  ;;  %v14714_v29 = vld [vmem:[#allocation2 + $0x11c] sm:$0xff] }
  0xac   : > { %12527 = vmatmul.mubr.msk.f32.gmra.mrb[6].mxu0 %vm279_vm1, %v1341_v30  ;;  %12758 = vmatmul.mubr.msk.f32.gmra.mrb[4].mxu1 %vm279_vm1, %v3449_v31  ;;  %v2026_v30 = vld [vmem:[#allocation2 + $0x35] sm:$0xff]  ;;  %v4131_v31 = vld [vmem:[#allocation2 + $0xa5] sm:$0xff] }
  0xad   : > { %12529 = vmatprep.mubr.msk.f32.mxu0 %vm279_vm1, %v1342_v32  ;;  %12760 = vmatprep.mubr.msk.f32.mxu1 %vm279_vm1, %v3450_v33  ;;  %v14719_v32 = vld [vmem:[%s15794_s1 + $0x4] sm:$0xf] }
  0xae   : > { %v2027_v33 = vld [vmem:[#allocation2 + $0x3d] sm:$0xff] }
  0xb0   : > { %12530 = vmatmul.mubr.msk.f32.gmra.mrb[8].mxu0 %vm279_vm1, %v1343_v34  ;;  %12761 = vmatmul.mubr.msk.f32.gmra.mrb[6].mxu1 %vm279_vm1, %v3451_v35  ;;  %v4132_v34 = vld [vmem:[#allocation2 + $0xad] sm:$0xff]  ;;  %v2028_v35 = vld [vmem:[#allocation2 + $0x45] sm:$0xff] }
  0xb1   : > { %12532 = vmatprep.mubr.msk.f32.mxu0 %vm279_vm1, %v1344_v36  ;;  %12763 = vmatprep.mubr.msk.f32.mxu1 %vm279_vm1, %v3452_v37  ;;  %v4133_v36 = vld [vmem:[#allocation2 + $0xb5] sm:$0xff]  ;;  %v14734_v37 = vld [vmem:[%s15797_s4 + $0x8] sm:$0xff] }
  0xb4   : > { %12533 = vmatmul.mubr.msk.f32.gmra.mrb[10].mxu0 %vm279_vm1, %v1345_v38  ;;  %12764 = vmatmul.mubr.msk.f32.gmra.mrb[8].mxu1 %vm279_vm1, %v3453_v39  ;;  %v2029_v38 = vld [vmem:[#allocation2 + $0x4d] sm:$0xff]  ;;  %v4134_v39 = vld [vmem:[#allocation2 + $0xbd] sm:$0xff] }
  0xb5   : > { %12535 = vmatprep.mubr.msk.f32.mxu0 %vm279_vm1, %v1346_v40  ;;  %12766 = vmatprep.mubr.msk.f32.mxu1 %vm279_vm1, %v3454_v41  ;;  %v2030_v40 = vld [vmem:[#allocation2 + $0x55] sm:$0xff]  ;;  %v4135_v41 = vld [vmem:[#allocation2 + $0xc5] sm:$0xff] }
  0xb8   : > { %12536 = vmatmul.mubr.msk.f32.gmra.mrb[12].mxu0 %vm279_vm1, %v1347_v42  ;;  %12767 = vmatmul.mubr.msk.f32.gmra.mrb[10].mxu1 %vm279_vm1, %v3455_v43  ;;  %v2031_v42 = vld [vmem:[#allocation2 + $0x5d] sm:$0xff]  ;;  %v4136_v43 = vld [vmem:[#allocation2 + $0xcd] sm:$0xff] }
  0xb9   : > { %12538 = vmatprep.mubr.msk.f32.mxu0 %vm279_vm1, %v1348_v44  ;;  %12769 = vmatprep.mubr.msk.f32.mxu1 %vm279_vm1, %v3456_v45  ;;  %v2032_v44 = vld [vmem:[#allocation2 + $0x65] sm:$0xff]  ;;  %v4137_v45 = vld [vmem:[#allocation2 + $0xd5] sm:$0xff] }
  0xbc   : > { %12539 = vmatmul.mubr.msk.f32.gmra.mrb[14].mxu0 %vm279_vm1, %v1349_v46  ;;  %12770 = vmatmul.mubr.msk.f32.gmra.mrb[12].mxu1 %vm279_vm1, %v3457_v47  ;;  %v2033_v46 = vld [vmem:[#allocation2 + $0x6d] sm:$0xff]  ;;  %v4138_v47 = vld [vmem:[#allocation2 + $0xdd] sm:$0xff] }
  0xbd   : > { %12543 = vmatprep.mubr.msk.f32.mxu0 %vm279_vm1, %v1564_v48  ;;  %12772 = vmatprep.mubr.msk.f32.mxu1 %vm279_vm1, %v3458_v49  ;;  %v2034_v48 = vld [vmem:[#allocation2 + $0x75] sm:$0xff]  ;;  %v4139_v49 = vld [vmem:[#allocation2 + $0xe5] sm:$0xff] }
  0xc0   : > { %12544 = vmatmul.mubr.msk.f32.vlgmr.msra.gmra.mrb[0].mxu0 %vm279_vm1, %v1565_v50  ;;  %12773 = vmatmul.mubr.msk.f32.gmra.mrb[14].mxu1 %vm279_vm1, %v3459_v51  ;;  %v2035_v50 = vld [vmem:[#allocation2 + $0x7d] sm:$0xff]  ;;  %v4140_v51 = vld [vmem:[#allocation2 + $0xed] sm:$0xff] }
  0xc1   : > { %12568 = vmatpush3.msk.msra.mxu0 %vm529_vm0, %v14541_v20  ;;  %12546 = vmatprep.mubr.msk.f32.mxu0 %vm279_vm1, %v14587_v52  ;;  %v1579_v20 = vld [vmem:[#allocation2 + $0x8c] sm:$0xff] }
  0xc2   : > { %12777 = vmatprep.mubr.msk.f32.mxu1 %vm279_vm1, %v14589_v53  ;;  %12593 = vmatprep.subr.msk.mxu0 %vm529_vm0, %v14594_v54 }
  0xc4   : > { %12547 = vmatmul.mubr.msk.f32.gmra.mrb[2].mxu0 %vm279_vm1, %v14602_v55  ;;  %12778 = vmatmul.mubr.msk.f32.vlgmr.msra.gmra.mrb[0].mxu1 %vm279_vm1, %v14604_v56 }
  0xc5   : > { %12549 = vmatprep.mubr.msk.f32.mxu0 %vm279_vm1, %v14608_v57  ;;  %12780 = vmatprep.mubr.msk.f32.mxu1 %vm279_vm1, %v14610_v58 }
  0xc6   : > { %12802 = vmatpush3.msk.msra.mxu1 %vm529_vm0, %v14556_v25  ;;  %v14676_v25 = vld [vmem:[%s15794_s1 + $0x20] sm:$0xf] }
  0xc7   : > { %12827 = vmatprep.subr.msk.mxu1 %vm529_vm0, %v14621_v59 }
  0xc8   : > { %12550 = vmatmul.mubr.msk.f32.gmra.mrb[4].mxu0 %vm279_vm1, %v1569_v60  ;;  %12781 = vmatmul.mubr.msk.f32.gmra.mrb[2].mxu1 %vm279_vm1, %v3676_v61 }
  0xc9   : > { %12552 = vmatprep.mubr.msk.f32.mxu0 %vm279_vm1, %v1570_v62  ;;  %12783 = vmatprep.mubr.msk.f32.mxu1 %vm279_vm1, %v3677_v63 }
  0xcc   : > { %12553 = vmatmul.mubr.msk.f32.gmra.mrb[6].mxu0 %vm279_vm1, %v1571_v0  ;;  %12784 = vmatmul.mubr.msk.f32.gmra.mrb[4].mxu1 %vm279_vm1, %v3678_v2 }
  0xcd   : > { %12555 = vmatprep.mubr.msk.f32.mxu0 %vm279_vm1, %v1572_v3  ;;  %12786 = vmatprep.mubr.msk.f32.mxu1 %vm279_vm1, %v3679_v4 }
  0xd0   : > { %12556 = vmatmul.mubr.msk.f32.gmra.mrb[8].mxu0 %vm279_vm1, %v1573_v5  ;;  %12787 = vmatmul.mubr.msk.f32.gmra.mrb[6].mxu1 %vm279_vm1, %v3680_v6 }
  0xd1   : > { %12558 = vmatprep.mubr.msk.f32.mxu0 %vm279_vm1, %v1574_v7  ;;  %12789 = vmatprep.mubr.msk.f32.mxu1 %vm279_vm1, %v3681_v8 }
  0xd4   : > { %12559 = vmatmul.mubr.msk.f32.gmra.mrb[10].mxu0 %vm279_vm1, %v1575_v9  ;;  %12790 = vmatmul.mubr.msk.f32.gmra.mrb[8].mxu1 %vm279_vm1, %v3682_v10 }
  0xd5   : > { %12561 = vmatprep.mubr.msk.f32.mxu0 %vm279_vm1, %v1576_v12  ;;  %12792 = vmatprep.mubr.msk.f32.mxu1 %vm279_vm1, %v3683_v13 }
  0xd8   : > { %12562 = vmatmul.mubr.msk.f32.gmra.mrb[12].mxu0 %vm279_vm1, %v1577_v14  ;;  %12793 = vmatmul.mubr.msk.f32.gmra.mrb[10].mxu1 %vm279_vm1, %v3684_v16 }
  0xd9   : > { %12564 = vmatprep.mubr.msk.f32.mxu0 %vm279_vm1, %v1578_v18  ;;  %12795 = vmatprep.mubr.msk.f32.mxu1 %vm279_vm1, %v3685_v19 }
  0xdc   : > { %12565 = vmatmul.mubr.msk.f32.gmra.mrb[14].mxu0 %vm279_vm1, %v1579_v20  ;;  %12796 = vmatmul.mubr.msk.f32.gmra.mrb[12].mxu1 %vm279_vm1, %v3686_v21 }
  0xdd   : > { %12569 = vmatprep.mubr.msk.f32.mxu0 %vm279_vm1, %v14587_v52  ;;  %12798 = vmatprep.mubr.msk.f32.mxu1 %vm279_vm1, %v3687_v22  ;;  %v2036_v52 = vld [vmem:[#allocation2 + $0x85] sm:$0xff] }
  0xe0   : > { %12570 = vmatmul.mubr.msk.f32.vlgmr.msra.gmra.mrb[0].mxu0 %vm279_vm1, %v14602_v55  ;;  %12799 = vmatmul.mubr.msk.f32.gmra.mrb[14].mxu1 %vm279_vm1, %v3688_v23  ;;  %v4142_v55 = vld [vmem:[#allocation2 + $0xfd] sm:$0xff] }
  0xe1   : > { %12594 = vmatpush3.msk.msra.mxu0 %vm529_vm0, %v14594_v54  ;;  %12572 = vmatprep.mubr.msk.f32.mxu0 %vm279_vm1, %v14608_v57  ;;  %v2037_v54 = vld [vmem:[#allocation2 + $0x8d] sm:$0xff]  ;;  %v4143_v57 = vld [vmem:[#allocation2 + $0x105] sm:$0xff] }
  0xe2   : > { %12803 = vmatprep.mubr.msk.f32.mxu1 %vm279_vm1, %v14610_v58  ;;  %12619 = vmatprep.subr.msk.mxu0 %vm529_vm0, %v11091_v24  ;;  %v2039_v58 = vld [vmem:[#allocation2 + $0x9d] sm:$0xff] }
  0xe4   : > { %12573 = vmatmul.mubr.msk.f32.gmra.mrb[2].mxu0 %vm279_vm1, %v1569_v60  ;;  %12804 = vmatmul.mubr.msk.f32.vlgmr.msra.gmra.mrb[0].mxu1 %vm279_vm1, %v3676_v61  ;;  %v2254_v60 = vld [vmem:[#allocation2 + $0x26] sm:$0xff]  ;;  %v4145_v61 = vld [vmem:[#allocation2 + $0x115] sm:$0xff] }
  0xe5   : > { %12575 = vmatprep.mubr.msk.f32.mxu0 %vm279_vm1, %v1570_v62  ;;  %12806 = vmatprep.mubr.msk.f32.mxu1 %vm279_vm1, %v3677_v63  ;;  %v2255_v62 = vld [vmem:[#allocation2 + $0x2e] sm:$0xff]  ;;  %v4146_v63 = vld [vmem:[#allocation2 + $0x11d] sm:$0xff] }
  0xe6   : > { %12828 = vmatpush3.msk.msra.mxu1 %vm529_vm0, %v14621_v59  ;;  %v4144_v59 = vld [vmem:[#allocation2 + $0x10d] sm:$0xff] }
  0xe7   : > { %12853 = vmatprep.subr.msk.mxu1 %vm529_vm0, %v14676_v25 }
  0xe8   : > { %12576 = vmatmul.mubr.msk.f32.gmra.mrb[4].mxu0 %vm279_vm1, %v1571_v0  ;;  %12807 = vmatmul.mubr.msk.f32.gmra.mrb[2].mxu1 %vm279_vm1, %v3678_v2  ;;  %v2256_v0 = vld [vmem:[#allocation2 + $0x36] sm:$0xff]  ;;  %v4360_v2 = vld [vmem:[#allocation2 + $0xa6] sm:$0xff] }
  0xe9   : > { %12578 = vmatprep.mubr.msk.f32.mxu0 %vm279_vm1, %v1572_v3  ;;  %12809 = vmatprep.mubr.msk.f32.mxu1 %vm279_vm1, %v3679_v4  ;;  %v14850_v3 = vld [vmem:[%s15794_s1] sm:$0xf] }
  0xea   : > { %v2257_v4 = vld [vmem:[#allocation2 + $0x3e] sm:$0xff] }
  0xec   : > { %12579 = vmatmul.mubr.msk.f32.gmra.mrb[6].mxu0 %vm279_vm1, %v1573_v5  ;;  %12810 = vmatmul.mubr.msk.f32.gmra.mrb[4].mxu1 %vm279_vm1, %v3680_v6  ;;  %v4361_v5 = vld [vmem:[#allocation2 + $0xae] sm:$0xff]  ;;  %v2258_v6 = vld [vmem:[#allocation2 + $0x46] sm:$0xff] }
  0xed   : > { %12581 = vmatprep.mubr.msk.f32.mxu0 %vm279_vm1, %v1574_v7  ;;  %12812 = vmatprep.mubr.msk.f32.mxu1 %vm279_vm1, %v3681_v8  ;;  %v4362_v7 = vld [vmem:[#allocation2 + $0xb6] sm:$0xff]  ;;  %v2259_v8 = vld [vmem:[#allocation2 + $0x4e] sm:$0xff] }
  0xf0   : > { %12582 = vmatmul.mubr.msk.f32.gmra.mrb[8].mxu0 %vm279_vm1, %v1575_v9  ;;  %12813 = vmatmul.mubr.msk.f32.gmra.mrb[6].mxu1 %vm279_vm1, %v3682_v10  ;;  %v4363_v9 = vld [vmem:[#allocation2 + $0xbe] sm:$0xff]  ;;  %v2260_v10 = vld [vmem:[#allocation2 + $0x56] sm:$0xff] }
  0xf1   : > { %12584 = vmatprep.mubr.msk.f32.mxu0 %vm279_vm1, %v1576_v12  ;;  %12815 = vmatprep.mubr.msk.f32.mxu1 %vm279_vm1, %v3683_v13  ;;  %v4364_v12 = vld [vmem:[#allocation2 + $0xc6] sm:$0xff]  ;;  %v2261_v13 = vld [vmem:[#allocation2 + $0x5e] sm:$0xff] }
  0xf4   : > { %12585 = vmatmul.mubr.msk.f32.gmra.mrb[10].mxu0 %vm279_vm1, %v1577_v14  ;;  %12816 = vmatmul.mubr.msk.f32.gmra.mrb[8].mxu1 %vm279_vm1, %v3684_v16  ;;  %v2262_v14 = vld [vmem:[#allocation2 + $0x66] sm:$0xff]  ;;  %v4366_v16 = vld [vmem:[#allocation2 + $0xd6] sm:$0xff] }
  0xf5   : > { %12587 = vmatprep.mubr.msk.f32.mxu0 %vm279_vm1, %v1578_v18  ;;  %12818 = vmatprep.mubr.msk.f32.mxu1 %vm279_vm1, %v3685_v19  ;;  %v2263_v18 = vld [vmem:[#allocation2 + $0x6e] sm:$0xff]  ;;  %v4367_v19 = vld [vmem:[#allocation2 + $0xde] sm:$0xff] }
  0xf8   : > { %12588 = vmatmul.mubr.msk.f32.gmra.mrb[12].mxu0 %vm279_vm1, %v1579_v20  ;;  %12819 = vmatmul.mubr.msk.f32.gmra.mrb[10].mxu1 %vm279_vm1, %v3686_v21  ;;  %v2264_v20 = vld [vmem:[#allocation2 + $0x76] sm:$0xff]  ;;  %v4368_v21 = vld [vmem:[#allocation2 + $0xe6] sm:$0xff] }
  0xf9   : > { %12590 = vmatprep.mubr.msk.f32.mxu0 %vm279_vm1, %v14589_v53  ;;  %12821 = vmatprep.mubr.msk.f32.mxu1 %vm279_vm1, %v3687_v22  ;;  %v4141_v53 = vld [vmem:[#allocation2 + $0xf5] sm:$0xff]  ;;  %v2265_v22 = vld [vmem:[#allocation2 + $0x7e] sm:$0xff] }
  0xfc   : > { %12591 = vmatmul.mubr.msk.f32.gmra.mrb[14].mxu0 %vm279_vm1, %v14604_v56  ;;  %12822 = vmatmul.mubr.msk.f32.gmra.mrb[12].mxu1 %vm279_vm1, %v3688_v23  ;;  %v2038_v56 = vld [vmem:[#allocation2 + $0x95] sm:$0xff] }
  0xfd   : > { %12595 = vmatprep.mubr.msk.f32.mxu0 %vm279_vm1, %v2024_v26  ;;  %12824 = vmatprep.mubr.msk.f32.mxu1 %vm279_vm1, %v14706_v27  ;;  %v4369_v23 = vld [vmem:[#allocation2 + $0xee] sm:$0xff] }
  0xfe   : > { %v2267_v26 = vld [vmem:[#allocation2 + $0x8e] sm:$0xff] }
 0x100   : > { %12596 = vmatmul.mubr.msk.f32.vlgmr.msra.gmra.mrb[0].mxu0 %vm279_vm1, %v2025_v28  ;;  %12825 = vmatmul.mubr.msk.f32.gmra.mrb[14].mxu1 %vm279_vm1, %v14714_v29  ;;  %v4371_v28 = vld [vmem:[#allocation2 + $0xfe] sm:$0xff] }
 0x101   : > { %12620 = vmatpush3.msk.msra.mxu0 %vm529_vm0, %v11091_v24  ;;  %12598 = vmatprep.mubr.msk.f32.mxu0 %vm279_vm1, %v2026_v30  ;;  %v2266_v24 = vld [vmem:[#allocation2 + $0x86] sm:$0xff]  ;;  %v2268_v30 = vld [vmem:[#allocation2 + $0x96] sm:$0xff] }
 0x102   : > { %12829 = vmatprep.mubr.msk.f32.mxu1 %vm279_vm1, %v4131_v31  ;;  %12879 = vmatprep.subr.msk.mxu0 %vm529_vm0, %v14719_v32  ;;  %v4372_v31 = vld [vmem:[#allocation2 + $0x106] sm:$0xff] }
 0x104   : > { %12599 = vmatmul.mubr.msk.f32.gmra.mrb[2].mxu0 %vm279_vm1, %v2027_v33  ;;  %12830 = vmatmul.mubr.msk.f32.vlgmr.msra.gmra.mrb[0].mxu1 %vm279_vm1, %v4132_v34  ;;  %v4373_v33 = vld [vmem:[#allocation2 + $0x10e] sm:$0xff]  ;;  %v4374_v34 = vld [vmem:[#allocation2 + $0x116] sm:$0xff] }
 0x105   : > { %12601 = vmatprep.mubr.msk.f32.mxu0 %vm279_vm1, %v2028_v35  ;;  %12832 = vmatprep.mubr.msk.f32.mxu1 %vm279_vm1, %v4133_v36  ;;  %v4658_v35 = vld [vmem:[#allocation2 + $0x101] sm:$0xff] }
 0x106   : > { %12854 = vmatpush3.msk.msra.mxu1 %vm529_vm0, %v14676_v25  ;;  %v4370_v25 = vld [vmem:[#allocation2 + $0xf6] sm:$0xff]  ;;  %v4375_v36 = vld [vmem:[#allocation2 + $0x11e] sm:$0xff] }
 0x107   : > { %12951 = vmatprep.subr.mxu1 %v14734_v37 }
 0x108   : > { %12602 = vmatmul.mubr.msk.f32.gmra.mrb[4].mxu0 %vm279_vm1, %v2029_v38  ;;  %12833 = vmatmul.mubr.msk.f32.gmra.mrb[2].mxu1 %vm279_vm1, %v4134_v39  ;;  %v4659_v38 = vld [vmem:[#allocation2 + $0x109] sm:$0xff]  ;;  %v4660_v39 = vld [vmem:[#allocation2 + $0x111] sm:$0xff] }
 0x109   : > { %12604 = vmatprep.mubr.msk.f32.mxu0 %vm279_vm1, %v2030_v40  ;;  %12835 = vmatprep.mubr.msk.f32.mxu1 %vm279_vm1, %v4135_v41  ;;  %v11283_v40 = vld [vmem:[%s15794_s1 + $0x8] sm:$0xf]  ;;  %v4661_v41 = vld [vmem:[#allocation2 + $0x119] sm:$0x3f] }
 0x10c   : > { %12605 = vmatmul.mubr.msk.f32.gmra.mrb[6].mxu0 %vm279_vm1, %v2031_v42  ;;  %12836 = vmatmul.mubr.msk.f32.gmra.mrb[4].mxu1 %vm279_vm1, %v4136_v43  ;;  %v4653_v42 = vld [vmem:[#allocation2 + $0x100] sm:$0xff]  ;;  %v4654_v43 = vld [vmem:[#allocation2 + $0x108] sm:$0xff] }
 0x10d   : > { %12607 = vmatprep.mubr.msk.f32.mxu0 %vm279_vm1, %v2032_v44  ;;  %12838 = vmatprep.mubr.msk.f32.mxu1 %vm279_vm1, %v4137_v45  ;;  %v4655_v44 = vld [vmem:[#allocation2 + $0x110] sm:$0xff]  ;;  %v11289_v45 = vld [vmem:[%s15794_s1 + $0xc] sm:$0xf] }
 0x110   : > { %12608 = vmatmul.mubr.msk.f32.gmra.mrb[8].mxu0 %vm279_vm1, %v2033_v46  ;;  %12839 = vmatmul.mubr.msk.f32.gmra.mrb[6].mxu1 %vm279_vm1, %v4138_v47  ;;  %v4656_v46 = vld [vmem:[#allocation2 + $0x118] sm:$0x3f] }
 0x111   : > { %12610 = vmatprep.mubr.msk.f32.mxu0 %vm279_vm1, %v2034_v48  ;;  %12841 = vmatprep.mubr.msk.f32.mxu1 %vm279_vm1, %v4139_v49  ;;  %v4865_v47 = vld [vmem:[#allocation2 + $0x112] sm:$0xff]  ;;  %v4866_v49 = vld [vmem:[#allocation2 + $0x11a] sm:$0x3f] }
 0x112   : > { %v11295_v48 = vld [vmem:[%s15794_s1 + $0x10] sm:$0xf] }
 0x114   : > { %12611 = vmatmul.mubr.msk.f32.gmra.mrb[10].mxu0 %vm279_vm1, %v2035_v50  ;;  %12842 = vmatmul.mubr.msk.f32.gmra.mrb[8].mxu1 %vm279_vm1, %v4140_v51  ;;  %v4974_v50 = vld [vmem:[#allocation2 + $0x122] sm:$0xff]  ;;  %v11301_v51 = vld [vmem:[%s15794_s1 + $0x14] sm:$0xf] }
 0x115   : > { %12613 = vmatprep.mubr.msk.f32.mxu0 %vm279_vm1, %v2036_v52  ;;  %12844 = vmatprep.mubr.msk.f32.mxu1 %vm279_vm1, %v4141_v53  ;;  %v5081_v52 = vld [vmem:[#allocation2 + $0x113] sm:$0xff]  ;;  %v5082_v53 = vld [vmem:[#allocation2 + $0x11b] sm:$0xff] }
 0x118   : > { %12614 = vmatmul.mubr.msk.f32.gmra.mrb[12].mxu0 %vm279_vm1, %v2037_v54  ;;  %12845 = vmatmul.mubr.msk.f32.gmra.mrb[10].mxu1 %vm279_vm1, %v4142_v55  ;;  %v5083_v54 = vld [vmem:[#allocation2 + $0x123] sm:$0xff]  ;;  %v11307_v55 = vld [vmem:[%s15794_s1 + $0x18] sm:$0xf] }
 0x119   : > { %12616 = vmatprep.mubr.msk.f32.mxu0 %vm279_vm1, %v2038_v56  ;;  %12847 = vmatprep.mubr.msk.f32.mxu1 %vm279_vm1, %v4143_v57  ;;  %v5084_v56 = vld [vmem:[#allocation2 + $0x12b] sm:$0x3f] }
 0x11a   : > { %v5192_v57 = vld [vmem:[#allocation2 + $0x124] sm:$0xff] }
 0x11c   : > { %12617 = vmatmul.mubr.msk.f32.gmra.mrb[14].mxu0 %vm279_vm1, %v2039_v58  ;;  %12848 = vmatmul.mubr.msk.f32.gmra.mrb[12].mxu1 %vm279_vm1, %v4144_v59  ;;  %v11313_v58 = vld [vmem:[%s15794_s1 + $0x1c] sm:$0xf]  ;;  %v5193_v59 = vld [vmem:[#allocation2 + $0x12c] sm:$0x3f] }
 0x11d   : > { %12621 = vmatprep.mubr.msk.f32.mxu0 %vm279_vm1, %v2254_v60  ;;  %12850 = vmatprep.mubr.msk.f32.mxu1 %vm279_vm1, %v4145_v61  ;;  %v5301_v60 = vld [vmem:[#allocation2 + $0x134] sm:$0xff]  ;;  %v11319_v61 = vld [vmem:[%s15794_s1 + $0x20] sm:$0xf] }
 0x120   : > { %12622 = vmatmul.mubr.msk.f32.vlgmr.msra.gmra.mrb[0].mxu0 %vm279_vm1, %v2255_v62  ;;  %12851 = vmatmul.mubr.msk.f32.gmra.mrb[14].mxu1 %vm279_vm1, %v4146_v63  ;;  %v5408_v62 = vld [vmem:[#allocation2 + $0x125] sm:$0xff]  ;;  %v5409_v63 = vld [vmem:[#allocation2 + $0x12d] sm:$0xff] }
 0x121   : > { %12624 = vmatprep.mubr.msk.f32.mxu0 %vm279_vm1, %v2256_v0  ;;  %12855 = vmatprep.mubr.msk.f32.mxu1 %vm279_vm1, %v4360_v2  ;;  %v5410_v0 = vld [vmem:[#allocation2 + $0x135] sm:$0xff]  ;;  %v5411_v2 = vld [vmem:[#allocation2 + $0x13d] sm:$0x3f] }
 0x122   : > { %12880 = vmatpush3.msk.msra.mxu0 %vm529_vm0, %v14719_v32  ;;  %v2269_v32 = vld [vmem:[#allocation2 + $0x9e] sm:$0xff] }
 0x123   : > { %12887 = vmatprep.subr.msk.mxu0 %vm529_vm0, %v14850_v3 }
 0x124   : > { %12625 = vmatmul.mubr.msk.f32.gmra.mrb[2].mxu0 %vm279_vm1, %v2257_v4  ;;  %12856 = vmatmul.mubr.msk.f32.vlgmr.msra.gmra.mrb[0].mxu1 %vm279_vm1, %v4361_v5  ;;  %v5518_v4 = vld [vmem:[#allocation2 + $0x12e] sm:$0xff]  ;;  %v5519_v5 = vld [vmem:[#allocation2 + $0x136] sm:$0xff] }
 0x125   : > { %12627 = vmatprep.mubr.msk.f32.mxu0 %vm279_vm1, %v2258_v6  ;;  %12858 = vmatprep.mubr.msk.f32.mxu1 %vm279_vm1, %v4362_v7  ;;  %v5678_v6 = vld [vmem:[#allocation3 + $0x1] sm:$0xff]  ;;  %v5679_v7 = vld [vmem:[#allocation3 + $0x9] sm:$0xff] }
 0x126   : > { %12952 = vmatpush3.msra.mxu1 %v14734_v37 }
 0x128   : > { %12628 = vmatmul.mubr.msk.f32.gmra.mrb[4].mxu0 %vm279_vm1, %v2259_v8  ;;  %12859 = vmatmul.mubr.msk.f32.gmra.mrb[2].mxu1 %vm279_vm1, %v4363_v9  ;;  %v5520_v8 = vld [vmem:[#allocation2 + $0x13e] sm:$0x3f] }
 0x129   : > { %12630 = vmatprep.mubr.msk.f32.mxu0 %vm279_vm1, %v2260_v10  ;;  %12861 = vmatprep.mubr.msk.f32.mxu1 %vm279_vm1, %v4364_v12  ;;  %v14971_v9 = vld [vmem:[%s15797_s4] sm:$0xff]  ;;  %v14979_v10 = vld [vmem:[%s15797_s4 + $0x10] sm:$0xff] }
 0x12a   : > { %12977 = vmatprep.subr.mxu1 %v14971_v9  ;;  %v14990_v12 = vld [vmem:[%s15796_s3] ss:$0 sm:$0xff] }
 0x12c   : > { %12631 = vmatmul.mubr.msk.f32.gmra.mrb[6].mxu0 %vm279_vm1, %v2261_v13  ;;  %12862 = vmatmul.mubr.msk.f32.gmra.mrb[4].mxu1 %vm279_vm1, %v4365_v11 }
 0x12d   : > { %12633 = vmatprep.mubr.msk.f32.mxu0 %vm279_vm1, %v2262_v14  ;;  %12864 = vmatprep.mubr.msk.f32.mxu1 %vm279_vm1, %v4366_v16 }
 0x130   : > { %12634 = vmatmul.mubr.msk.f32.gmra.mrb[8].mxu0 %vm279_vm1, %v2263_v18  ;;  %12865 = vmatmul.mubr.msk.f32.gmra.mrb[6].mxu1 %vm279_vm1, %v4367_v19 }
 0x131   : > { %12636 = vmatprep.mubr.msk.f32.mxu0 %vm279_vm1, %v2264_v20  ;;  %12867 = vmatprep.mubr.msk.f32.mxu1 %vm279_vm1, %v4368_v21 }
 0x134   : > { %12637 = vmatmul.mubr.msk.f32.gmra.mrb[10].mxu0 %vm279_vm1, %v2265_v22  ;;  %12868 = vmatmul.mubr.msk.f32.gmra.mrb[8].mxu1 %vm279_vm1, %v4369_v23 }
 0x135   : > { %12639 = vmatprep.mubr.msk.f32.mxu0 %vm279_vm1, %v2266_v24  ;;  %12870 = vmatprep.mubr.msk.f32.mxu1 %vm279_vm1, %v4370_v25 }
 0x138   : > { %12640 = vmatmul.mubr.msk.f32.gmra.mrb[12].mxu0 %vm279_vm1, %v2267_v26  ;;  %12871 = vmatmul.mubr.msk.f32.gmra.mrb[10].mxu1 %vm279_vm1, %v4371_v28 }
 0x139   : > { %12642 = vmatprep.mubr.msk.f32.mxu0 %vm279_vm1, %v2268_v30  ;;  %12873 = vmatprep.mubr.msk.f32.mxu1 %vm279_vm1, %v4372_v31 }
 0x13c   : > { %12643 = vmatmul.mubr.msk.f32.gmra.mrb[14].mxu0 %vm279_vm1, %v2269_v32  ;;  %12874 = vmatmul.mubr.msk.f32.gmra.mrb[12].mxu1 %vm279_vm1, %v4373_v33 }
 0x13d   : > { %12876 = vmatprep.mubr.msk.f32.mxu1 %vm279_vm1, %v4374_v34  ;;  %12881 = vmatprep.mubr.msk.f32.mxu0 %vm279_vm1, %v4658_v35 }
 0x140   : > { %12877 = vmatmul.mubr.msk.f32.gmra.mrb[14].mxu1 %vm279_vm1, %v4375_v36  ;;  %12882 = vmatmul.mubr.msk.f32.vlgmr.msra.gmra.mrb[16].mxu0 %vm279_vm1, %v4659_v38 }
 0x141   : > { %12884 = vmatprep.mubr.msk.f32.mxu0 %vm279_vm1, %v4660_v39  ;;  %12888 = vmatpush3.msk.msra.mxu0 %vm529_vm0, %v14850_v3  ;;  %v5517_v3 = vld [vmem:[#allocation2 + $0x126] sm:$0xff] }
 0x142   : > { %12895 = vmatprep.subr.msk.mxu0 %vm529_vm0, %v11283_v40  ;;  %12953 = vmatprep.mubr.msk.f32.mxu1 %vm322_vm3, %v5678_v6 }
 0x144   : > { %12885 = vmatmul.mubr.msk.f32.gmra.mrb[18].mxu0 %vm279_vm1, %v4661_v41  ;;  %12954 = vmatmul.mubr.msk.f32.vlgmr.msra.gmra.mrb[16].mxu1 %vm322_vm3, %v5679_v7 }
 0x145   : > { %12889 = vmatprep.mubr.msk.f32.mxu0 %vm279_vm1, %v4653_v42  ;;  %12978 = vmatpush3.msra.mxu1 %v14971_v9 }
 0x146   : > { %13003 = vmatprep.subr.mxu1 %v14979_v10 }
 0x148   : > { %12890 = vmatmul.mubr.msk.f32.vlgmr.msra.gmra.mrb[16].mxu0 %vm279_vm1, %v4654_v43 }
 0x149   : > { %12892 = vmatprep.mubr.msk.f32.mxu0 %vm279_vm1, %v4655_v44  ;;  %12896 = vmatpush3.msk.msra.mxu0 %vm529_vm0, %v11283_v40 }
 0x14a   : > { %12903 = vmatprep.subr.msk.mxu0 %vm529_vm0, %v11289_v45 }
 0x14c   : > { %12893 = vmatmul.mubr.msk.f32.gmra.mrb[18].mxu0 %vm279_vm1, %v4656_v46 }
 0x14d   : > { %12897 = vmatprep.mubr.msk.f32.mxu0 %vm279_vm1, %v14528_v15  ;;  %v4973_v15 = vld [vmem:[#allocation2 + $0x11a] sm:$0xff] }
 0x150   : > { %12898 = vmatmul.mubr.msk.f32.vlgmr.msra.gmra.mrb[16].mxu0 %vm279_vm1, %v14536_v17  ;;  %v4975_v17 = vld [vmem:[#allocation2 + $0x12a] sm:$0x3f] }
 0x151   : > { %12900 = vmatprep.mubr.msk.f32.mxu0 %vm279_vm1, %v4865_v47  ;;  %12904 = vmatpush3.msk.msra.mxu0 %vm529_vm0, %v11289_v45 }
 0x152   : > { %12911 = vmatprep.subr.msk.mxu0 %vm529_vm0, %v11295_v48 }
 0x154   : > { %12901 = vmatmul.mubr.msk.f32.gmra.mrb[18].mxu0 %vm279_vm1, %v4866_v49 }
 0x155   : > { %12905 = vmatprep.mubr.msk.f32.mxu0 %vm279_vm1, %v4865_v47 }
 0x158   : > { %12906 = vmatmul.mubr.msk.f32.vlgmr.msra.gmra.mrb[16].mxu0 %vm279_vm1, %v4973_v15 }
 0x159   : > { %12908 = vmatprep.mubr.msk.f32.mxu0 %vm279_vm1, %v4974_v50  ;;  %12912 = vmatpush3.msk.msra.mxu0 %vm529_vm0, %v11295_v48 }
 0x15a   : > { %12919 = vmatprep.subr.msk.mxu0 %vm529_vm0, %v11301_v51 }
 0x15c   : > { %12909 = vmatmul.mubr.msk.f32.gmra.mrb[18].mxu0 %vm279_vm1, %v4975_v17 }
 0x15d   : > { %12913 = vmatprep.mubr.msk.f32.mxu0 %vm279_vm1, %v5081_v52 }
 0x160   : > { %12914 = vmatmul.mubr.msk.f32.vlgmr.msra.gmra.mrb[16].mxu0 %vm279_vm1, %v5082_v53 }
 0x161   : > { %12916 = vmatprep.mubr.msk.f32.mxu0 %vm279_vm1, %v5083_v54  ;;  %12920 = vmatpush3.msk.msra.mxu0 %vm529_vm0, %v11301_v51 }
 0x162   : > { %12927 = vmatprep.subr.msk.mxu0 %vm529_vm0, %v11307_v55 }
 0x164   : > { %12917 = vmatmul.mubr.msk.f32.gmra.mrb[18].mxu0 %vm279_vm1, %v5084_v56 }
 0x165   : > { %12921 = vmatprep.mubr.msk.f32.mxu0 %vm279_vm1, %v14706_v27  ;;  %v5300_v27 = vld [vmem:[#allocation2 + $0x12c] sm:$0xff] }
 0x168   : > { %12922 = vmatmul.mubr.msk.f32.vlgmr.msra.gmra.mrb[16].mxu0 %vm279_vm1, %v14714_v29  ;;  %v5302_v29 = vld [vmem:[#allocation2 + $0x13c] sm:$0x3f] }
 0x169   : > { %12924 = vmatprep.mubr.msk.f32.mxu0 %vm279_vm1, %v5192_v57  ;;  %12928 = vmatpush3.msk.msra.mxu0 %vm529_vm0, %v11307_v55 }
 0x16a   : > { %12935 = vmatprep.subr.msk.mxu0 %vm529_vm0, %v11313_v58 }
 0x16c   : > { %12925 = vmatmul.mubr.msk.f32.gmra.mrb[18].mxu0 %vm279_vm1, %v5193_v59 }
 0x16d   : > { %12929 = vmatprep.mubr.msk.f32.mxu0 %vm279_vm1, %v5192_v57 }
 0x170   : > { %12930 = vmatmul.mubr.msk.f32.vlgmr.msra.gmra.mrb[16].mxu0 %vm279_vm1, %v5300_v27 }
 0x171   : > { %12932 = vmatprep.mubr.msk.f32.mxu0 %vm279_vm1, %v5301_v60  ;;  %12936 = vmatpush3.msk.msra.mxu0 %vm529_vm0, %v11313_v58 }
 0x172   : > { %12943 = vmatprep.subr.msk.mxu0 %vm529_vm0, %v11319_v61 }
 0x174   : > { %12933 = vmatmul.mubr.msk.f32.gmra.mrb[18].mxu0 %vm279_vm1, %v5302_v29 }
 0x175   : > { %12937 = vmatprep.mubr.msk.f32.mxu0 %vm279_vm1, %v5408_v62 }
 0x178   : > { %12938 = vmatmul.mubr.msk.f32.vlgmr.msra.gmra.mrb[16].mxu0 %vm279_vm1, %v5409_v63 }
 0x179   : > { %12940 = vmatprep.mubr.msk.f32.mxu0 %vm279_vm1, %v5410_v0  ;;  %12944 = vmatpush3.msk.msra.mxu0 %vm529_vm0, %v11319_v61 }
 0x17a   : > { %13185 = vmatprep.subr.mxu0 %v14734_v37 }
 0x17c   : > { %12941 = vmatmul.mubr.msk.f32.gmra.mrb[18].mxu0 %vm279_vm1, %v5411_v2 }
 0x17d   : > { %12945 = vmatprep.mubr.msk.f32.mxu0 %vm279_vm1, %v5517_v3 }
 0x180   : > { %12946 = vmatmul.mubr.msk.f32.vlgmr.msra.gmra.mrb[16].mxu0 %vm279_vm1, %v5518_v4 }
 0x181   : > { %12948 = vmatprep.mubr.msk.f32.mxu0 %vm279_vm1, %v5519_v5  ;;  %13186 = vmatpush3.msra.mxu0 %v14734_v37  ;;  %v14985_v37 = vld [vmem:[%s15795_s2] ss:$0 sm:$0xff] }
 0x182   : > { %13211 = vmatprep.subr.mxu0 %v14971_v9 }
 0x184   : > { %12949 = vmatmul.mubr.msk.f32.gmra.mrb[18].mxu0 %vm279_vm1, %v5520_v8 }
 0x1f3   : > { %v12623_v13 = vpop.f32.mrb[0].mxu0 }
 0x1f4   : > { %v2491_v11 = vmul.f32 %v12623_v13, %v14985_v37  ;;  %v2389_v14 = vpop.f32.mrb[1].mxu0 }
 0x1f5   : > { %v2490_v16 = vmul.f32 %v14985_v37, %v2389_v14 }
 0x1f6   : > { %v2513_v18 = vadd.f32 %v14990_v12, %v2491_v11 }
 0x1f7   : > { %v2512_v19 = vadd.f32 %v14990_v12, %v2490_v16  ;;  %v12626_v20 = vpop.f32.mrb[2].mxu0  ;;  %v12857_v21 = vpop.f32.mrb[0].mxu1 }
 0x1f8   : > { %v2529_v22 = vmax.f32 %v2513_v18, 0.0  ;;  %v2493_v23 = vmul.f32 %v12626_v20, %v14985_v37  ;;  %v4590_v24 = vmul.f32 %v12857_v21, %v14985_v37  ;;  %v2399_v25 = vpop.f32.mrb[3].mxu0  ;;  %v4494_v26 = vpop.f32.mrb[1].mxu1 }
 0x1f9   : > { %v2528_v28 = vmax.f32 %v2512_v19, 0.0  ;;  %v2492_v30 = vmul.f32 %v14985_v37, %v2399_v25  ;;  %v4589_v31 = vmul.f32 %v14985_v37, %v4494_v26 }
 0x1fa   : > { %2545 = vst.msk [vmem:[#allocation3 + $0x1b] sm:$0xff] %vm322_vm3, %v2529_v22  ;;  %v2515_v32 = vadd.f32 %v14990_v12, %v2493_v23  ;;  %v4606_v33 = vadd.f32 %v14990_v12, %v4590_v24 }
 0x1fb   : > { %2544 = vst.msk [vmem:[#allocation3 + $0x13] sm:$0xff] %vm322_vm3, %v2528_v28  ;;  %v2514_v34 = vadd.f32 %v14990_v12, %v2492_v30  ;;  %v4605_v35 = vadd.f32 %v14990_v12, %v4589_v31  ;;  %v12629_v36 = vpop.f32.mrb[4].mxu0  ;;  %v12860_v38 = vpop.f32.mrb[2].mxu1 }
 0x1fc   : > { %v2531_v39 = vmax.f32 %v2515_v32, 0.0  ;;  %v4622_v40 = vmax.f32 %v4606_v33, 0.0  ;;  %v2495_v41 = vmul.f32 %v12629_v36, %v14985_v37  ;;  %v4592_v42 = vmul.f32 %v12860_v38, %v14985_v37  ;;  %v2409_v43 = vpop.f32.mrb[5].mxu0  ;;  %v4504_v44 = vpop.f32.mrb[3].mxu1 }
 0x1fd   : > { %v2530_v45 = vmax.f32 %v2514_v34, 0.0  ;;  %v4621_v46 = vmax.f32 %v4605_v35, 0.0  ;;  %v2494_v47 = vmul.f32 %v14985_v37, %v2409_v43  ;;  %v4591_v48 = vmul.f32 %v14985_v37, %v4504_v44 }
 0x1fe   : > { %2547 = vst.msk [vmem:[#allocation3 + $0x2b] sm:$0xff] %vm322_vm3, %v2531_v39  ;;  %4638 = vst.msk [vmem:[#allocation3 + $0x9b] sm:$0xff] %vm322_vm3, %v4622_v40  ;;  %v2517_v49 = vadd.f32 %v14990_v12, %v2495_v41  ;;  %v4608_v15 = vadd.f32 %v14990_v12, %v4592_v42 }
 0x1ff   : > { %2546 = vst.msk [vmem:[#allocation3 + $0x23] sm:$0xff] %vm322_vm3, %v2530_v45  ;;  %4637 = vst.msk [vmem:[#allocation3 + $0x93] sm:$0xff] %vm322_vm3, %v4621_v46  ;;  %v2516_v50 = vadd.f32 %v14990_v12, %v2494_v47  ;;  %v4607_v51 = vadd.f32 %v14990_v12, %v4591_v48  ;;  %v12632_v17 = vpop.f32.mrb[6].mxu0  ;;  %v12863_v52 = vpop.f32.mrb[4].mxu1 }
 0x200   : > { %5651 = vst.msk [vmem:[#allocation3 + $0xa1] sm:$0x3] %vm5643_vm4, %v14084_v1  ;;  %v2533_v53 = vmax.f32 %v2517_v49, 0.0  ;;  %v4624_v54 = vmax.f32 %v4608_v15, 0.0  ;;  %v2497_v55 = vmul.f32 %v12632_v17, %v14985_v37  ;;  %v4594_v56 = vmul.f32 %v12863_v52, %v14985_v37  ;;  %v2419_v57 = vpop.f32.mrb[7].mxu0  ;;  %v4514_v58 = vpop.f32.mrb[5].mxu1 }
 0x201   : > { %5644 = vst.msk [vmem:[#allocation3 + $0x23] sm:$0x3] %vm5643_vm4, %v14084_v1  ;;  %v2532_v59 = vmax.f32 %v2516_v50, 0.0  ;;  %v4623_v27 = vmax.f32 %v4607_v51, 0.0  ;;  %v2496_v60 = vmul.f32 %v14985_v37, %v2419_v57  ;;  %v4593_v61 = vmul.f32 %v14985_v37, %v4514_v58 }
 0x202   : > { %2549 = vst.msk [vmem:[#allocation3 + $0x3b] sm:$0xff] %vm322_vm3, %v2533_v53  ;;  %4640 = vst.msk [vmem:[#allocation3 + $0xab] sm:$0xff] %vm322_vm3, %v4624_v54  ;;  %v2519_v29 = vadd.f32 %v14990_v12, %v2497_v55  ;;  %v4610_v62 = vadd.f32 %v14990_v12, %v4594_v56  ;;  %v5680_v63 = vld [vmem:[#allocation3 + $0x11] sm:$0xff]  ;;  %v5681_v0 = vld [vmem:[#allocation3 + $0x19] sm:$0xff] }
 0x203   : > { %2548 = vst.msk [vmem:[#allocation3 + $0x33] sm:$0xff] %vm322_vm3, %v2532_v59  ;;  %4639 = vst.msk [vmem:[#allocation3 + $0xa3] sm:$0xff] %vm322_vm3, %v4623_v27  ;;  %v2518_v2 = vadd.f32 %v14990_v12, %v2496_v60  ;;  %v4609_v3 = vadd.f32 %v14990_v12, %v4593_v61  ;;  %v12635_v4 = vpop.f32.mrb[8].mxu0  ;;  %v12866_v5 = vpop.f32.mrb[6].mxu1  ;;  %12956 = vmatprep.mubr.msk.f32.mxu1 %vm322_vm3, %v5680_v63 }
 0x204   : > { %v2535_v6 = vmax.f32 %v2519_v29, 0.0  ;;  %v4626_v7 = vmax.f32 %v4610_v62, 0.0  ;;  %v2499_v8 = vmul.f32 %v12635_v4, %v14985_v37  ;;  %v4596_v13 = vmul.f32 %v12866_v5, %v14985_v37  ;;  %v2429_v11 = vpop.f32.mrb[9].mxu0  ;;  %v4524_v14 = vpop.f32.mrb[7].mxu1  ;;  %12957 = vmatmul.mubr.msk.f32.gmra.mrb[18].mxu1 %vm322_vm3, %v5681_v0  ;;  %5645 = vst.msk [vmem:[#allocation3 + $0x35] sm:$0x3] %vm5643_vm4, %v14084_v1 }
 0x205   : > { %v2534_v16 = vmax.f32 %v2518_v2, 0.0  ;;  %v4625_v18 = vmax.f32 %v4609_v3, 0.0  ;;  %v2498_v19 = vmul.f32 %v14985_v37, %v2429_v11  ;;  %v4595_v20 = vmul.f32 %v14985_v37, %v4524_v14 }
 0x206   : > { %2551 = vst.msk [vmem:[#allocation3 + $0x4b] sm:$0xff] %vm322_vm3, %v2535_v6  ;;  %4642 = vst.msk [vmem:[#allocation3 + $0xbb] sm:$0xff] %vm322_vm3, %v4626_v7  ;;  %v2521_v21 = vadd.f32 %v14990_v12, %v2499_v8  ;;  %v4612_v22 = vadd.f32 %v14990_v12, %v4596_v13  ;;  %v5683_v36 = vld [vmem:[#allocation3 + $0x29] sm:$0xff] }
 0x207   : > { %2550 = vst.msk [vmem:[#allocation3 + $0x43] sm:$0xff] %vm322_vm3, %v2534_v16  ;;  %4641 = vst.msk [vmem:[#allocation3 + $0xb3] sm:$0xff] %vm322_vm3, %v4625_v18  ;;  %v2520_v23 = vadd.f32 %v14990_v12, %v2498_v19  ;;  %v4611_v24 = vadd.f32 %v14990_v12, %v4595_v20  ;;  %v12638_v25 = vpop.f32.mrb[10].mxu0  ;;  %v12869_v26 = vpop.f32.mrb[8].mxu1 }
 0x208   : > { %v5682_v28 = vld [vmem:[#allocation3 + $0x21] sm:$0xff]  ;;  %v2537_v30 = vmax.f32 %v2521_v21, 0.0  ;;  %v4628_v31 = vmax.f32 %v4612_v22, 0.0  ;;  %v2501_v32 = vmul.f32 %v12638_v25, %v14985_v37  ;;  %v4598_v33 = vmul.f32 %v12869_v26, %v14985_v37  ;;  %v2439_v34 = vpop.f32.mrb[11].mxu0  ;;  %v4534_v35 = vpop.f32.mrb[9].mxu1 }
 0x209   : > { %12959 = vmatprep.mubr.msk.f32.mxu1 %vm322_vm3, %v5682_v28  ;;  %5646 = vst.msk [vmem:[#allocation3 + $0x47] sm:$0x3] %vm5643_vm4, %v14084_v1  ;;  %5652 = vst.msk [vmem:[#allocation3 + $0xb3] sm:$0x3] %vm5643_vm4, %v14084_v1  ;;  %v2536_v38 = vmax.f32 %v2520_v23, 0.0  ;;  %v4627_v39 = vmax.f32 %v4611_v24, 0.0  ;;  %v2500_v40 = vmul.f32 %v14985_v37, %v2439_v34  ;;  %v4597_v41 = vmul.f32 %v14985_v37, %v4534_v35 }
 0x20a   : > { %12960 = vmatmul.mubr.msk.f32.gmra.mrb[20].mxu1 %vm322_vm3, %v5683_v36  ;;  %2553 = vst.msk [vmem:[#allocation3 + $0x5b] sm:$0xff] %vm322_vm3, %v2537_v30  ;;  %4644 = vst.msk [vmem:[#allocation3 + $0xcb] sm:$0xff] %vm322_vm3, %v4628_v31  ;;  %v2523_v42 = vadd.f32 %v14990_v12, %v2501_v32  ;;  %v4614_v43 = vadd.f32 %v14990_v12, %v4598_v33  ;;  %v5685_v53 = vld [vmem:[#allocation3 + $0x39] sm:$0xff] }
 0x20b   : > { %2552 = vst.msk [vmem:[#allocation3 + $0x53] sm:$0xff] %vm322_vm3, %v2536_v38  ;;  %4643 = vst.msk [vmem:[#allocation3 + $0xc3] sm:$0xff] %vm322_vm3, %v4627_v39  ;;  %v2522_v44 = vadd.f32 %v14990_v12, %v2500_v40  ;;  %v4613_v45 = vadd.f32 %v14990_v12, %v4597_v41  ;;  %v12641_v46 = vpop.f32.mrb[12].mxu0  ;;  %v12872_v47 = vpop.f32.mrb[10].mxu1  ;;  %v5684_v48 = vld [vmem:[#allocation3 + $0x31] sm:$0xff]  ;;  %v5661_v40 = vld [vmem:[#allocation3] sm:$0xff] }
 0x20c   : > { %v2539_v49 = vmax.f32 %v2523_v42, 0.0  ;;  %v4630_v15 = vmax.f32 %v4614_v43, 0.0  ;;  %5647 = vst.msk [vmem:[#allocation3 + $0x59] sm:$0x3] %vm5643_vm4, %v14084_v1  ;;  %5653 = vst.msk [vmem:[#allocation3 + $0xc5] sm:$0x3] %vm5643_vm4, %v14084_v1  ;;  %v2503_v50 = vmul.f32 %v12641_v46, %v14985_v37  ;;  %v4600_v51 = vmul.f32 %v12872_v47, %v14985_v37  ;;  %12962 = vmatprep.mubr.msk.f32.mxu1 %vm322_vm3, %v5684_v48 }
 0x20d   : > { %v2449_v17 = vpop.f32.mrb[13].mxu0  ;;  %v4544_v52 = vpop.f32.mrb[11].mxu1  ;;  %v2538_v54 = vmax.f32 %v2522_v44, 0.0  ;;  %v4629_v55 = vmax.f32 %v4613_v45, 0.0  ;;  %v5662_v44 = vld [vmem:[#allocation3 + $0x8] sm:$0xff]  ;;  %v15136_v46 = vld [vmem:[%s15797_s4 + $0x18] sm:$0xff] }
 0x20e   : > { %v2502_v56 = vmul.f32 %v14985_v37, %v2449_v17  ;;  %v4599_v57 = vmul.f32 %v14985_v37, %v4544_v52  ;;  %12963 = vmatmul.mubr.msk.f32.gmra.mrb[22].mxu1 %vm322_vm3, %v5685_v53  ;;  %2555 = vst.msk [vmem:[#allocation3 + $0x6b] sm:$0xff] %vm322_vm3, %v2539_v49  ;;  %4646 = vst.msk [vmem:[#allocation3 + $0xdb] sm:$0xff] %vm322_vm3, %v4630_v15  ;;  %v2525_v58 = vadd.f32 %v14990_v12, %v2503_v50  ;;  %v5687_v6 = vld [vmem:[#allocation3 + $0x49] sm:$0xff]  ;;  %v7767_v48 = vld [vmem:[#allocation3 + $0x99] sm:$0xff] }
 0x20f   : > { %v4616_v59 = vadd.f32 %v14990_v12, %v4600_v51  ;;  %2554 = vst.msk [vmem:[#allocation3 + $0x63] sm:$0xff] %vm322_vm3, %v2538_v54  ;;  %4645 = vst.msk [vmem:[#allocation3 + $0xd3] sm:$0xff] %vm322_vm3, %v4629_v55  ;;  %v12644_v61 = vpop.f32.mrb[14].mxu0  ;;  %v12875_v29 = vpop.f32.mrb[12].mxu1  ;;  %v5663_v47 = vld [vmem:[#allocation3 + $0x10] sm:$0xff]  ;;  %v5664_v49 = vld [vmem:[#allocation3 + $0x18] sm:$0xff] }
 0x210   : > { %5648 = vst.msk [vmem:[#allocation3 + $0x6b] sm:$0x3] %vm5643_vm4, %v14084_v1  ;;  %v2524_v27 = vadd.f32 %v14990_v12, %v2502_v56  ;;  %v4615_v60 = vadd.f32 %v14990_v12, %v4599_v57  ;;  %v5686_v62 = vld [vmem:[#allocation3 + $0x41] sm:$0xff]  ;;  %5654 = vst.msk [vmem:[#allocation3 + $0xd7] sm:$0x3] %vm5643_vm4, %v14084_v1  ;;  %v2541_v63 = vmax.f32 %v2525_v58, 0.0  ;;  %v2505_v2 = vmul.f32 %v12644_v61, %v14985_v37 }
 0x211   : > { %v4632_v0 = vmax.f32 %v4616_v59, 0.0  ;;  %v4602_v3 = vmul.f32 %v12875_v29, %v14985_v37  ;;  %v2459_v4 = vpop.f32.mrb[15].mxu0  ;;  %v4554_v5 = vpop.f32.mrb[13].mxu1  ;;  %12965 = vmatprep.mubr.msk.f32.mxu1 %vm322_vm3, %v5686_v62  ;;  %v7768_v15 = vld [vmem:[#allocation3 + $0xa1] sm:$0xff]  ;;  %v7769_v51 = vld [vmem:[#allocation3 + $0xa9] sm:$0xff]  ;;  %v7771_v53 = vld [vmem:[#allocation3 + $0xb9] sm:$0xff] }
 0x212   : > { %v2540_v7 = vmax.f32 %v2524_v27, 0.0  ;;  %v4631_v8 = vmax.f32 %v4615_v60, 0.0  ;;  %v2504_v13 = vmul.f32 %v14985_v37, %v2459_v4  ;;  %v4601_v11 = vmul.f32 %v14985_v37, %v4554_v5  ;;  %12966 = vmatmul.mubr.msk.f32.gmra.mrb[24].mxu1 %vm322_vm3, %v5687_v6  ;;  %2557 = vst.msk [vmem:[#allocation3 + $0x7b] sm:$0xff] %vm322_vm3, %v2541_v63  ;;  %v5688_v18 = vld [vmem:[#allocation3 + $0x51] sm:$0xff]  ;;  %v5665_v50 = vld [vmem:[#allocation3 + $0x20] sm:$0xff]  ;;  %v5666_v17 = vld [vmem:[#allocation3 + $0x28] sm:$0xff] }
 0x213   : > { %4648 = vst.msk [vmem:[#allocation3 + $0xeb] sm:$0xff] %vm322_vm3, %v4632_v0  ;;  %v2527_v14 = vadd.f32 %v14990_v12, %v2505_v2  ;;  %v4618_v16 = vadd.f32 %v14990_v12, %v4602_v3  ;;  %v12878_v21 = vpop.f32.mrb[14].mxu1  ;;  %12968 = vmatprep.mubr.msk.f32.mxu1 %vm322_vm3, %v5688_v18  ;;  %v5689_v22 = vld [vmem:[#allocation3 + $0x59] sm:$0xff]  ;;  %v5667_v52 = vld [vmem:[#allocation3 + $0x30] sm:$0xff]  ;;  %v7772_v55 = vld [vmem:[#allocation3 + $0xc1] sm:$0xff] }
 0x214   : > { %5649 = vst.msk [vmem:[#allocation3 + $0x7d] sm:$0x3] %vm5643_vm4, %v14084_v1  ;;  %v2526_v19 = vadd.f32 %v14990_v12, %v2504_v13  ;;  %v4617_v20 = vadd.f32 %v14990_v12, %v4601_v11  ;;  %v4604_v25 = vmul.f32 %v12878_v21, %v14985_v37  ;;  %v4564_v26 = vpop.f32.mrb[15].mxu1  ;;  %v5668_v54 = vld [vmem:[#allocation3 + $0x38] sm:$0xff]  ;;  %v5669_v56 = vld [vmem:[#allocation3 + $0x40] sm:$0xff]  ;;  %v7773_v57 = vld [vmem:[#allocation3 + $0xc9] sm:$0xff] }
 0x215   : > { %2556 = vst.msk [vmem:[#allocation3 + $0x73] sm:$0xff] %vm322_vm3, %v2540_v7  ;;  %4647 = vst.msk [vmem:[#allocation3 + $0xe3] sm:$0xff] %vm322_vm3, %v4631_v8  ;;  %v2543_v23 = vmax.f32 %v2527_v14, 0.0  ;;  %v4634_v24 = vmax.f32 %v4618_v16, 0.0  ;;  %v4603_v31 = vmul.f32 %v14985_v37, %v4564_v26  ;;  %v5670_v58 = vld [vmem:[#allocation3 + $0x48] sm:$0xff]  ;;  %v5671_v27 = vld [vmem:[#allocation3 + $0x50] sm:$0xff] }
 0x216   : > { %5655 = vst.msk [vmem:[#allocation3 + $0xe9] sm:$0x3] %vm5643_vm4, %v14084_v1  ;;  %v2542_v28 = vmax.f32 %v2526_v19, 0.0  ;;  %v4633_v30 = vmax.f32 %v4617_v20, 0.0  ;;  %12969 = vmatmul.mubr.msk.f32.gmra.mrb[26].mxu1 %vm322_vm3, %v5689_v22  ;;  %v4620_v32 = vadd.f32 %v14990_v12, %v4604_v25  ;;  %v5690_v33 = vld [vmem:[#allocation3 + $0x61] sm:$0xff]  ;;  %v7775_v60 = vld [vmem:[#allocation3 + $0xd9] sm:$0xff] }
 0x217   : > { %2559 = vst.msk [vmem:[#allocation3 + $0x8b] sm:$0xff] %vm322_vm3, %v2543_v23  ;;  %4650 = vst.msk [vmem:[#allocation3 + $0xfb] sm:$0xff] %vm322_vm3, %v4634_v24  ;;  %v4619_v34 = vadd.f32 %v14990_v12, %v4603_v31  ;;  %12971 = vmatprep.mubr.msk.f32.mxu1 %vm322_vm3, %v5690_v33  ;;  %v5691_v36 = vld [vmem:[#allocation3 + $0x69] sm:$0xff]  ;;  %v7774_v59 = vld [vmem:[#allocation3 + $0xd1] sm:$0xff] }
 0x218   : > { %5650 = vst.msk [vmem:[#allocation3 + $0x8f] sm:$0x3] %vm5643_vm4, %v14084_v1  ;;  %5656 = vst.msk [vmem:[#allocation3 + $0xfb] sm:$0x3] %vm5643_vm4, %v14084_v1  ;;  %v4636_v35 = vmax.f32 %v4620_v32, 0.0  ;;  %v5672_v61 = vld [vmem:[#allocation3 + $0x58] sm:$0xff] }
 0x219   : > { %2558 = vst.msk [vmem:[#allocation3 + $0x83] sm:$0xff] %vm322_vm3, %v2542_v28  ;;  %4649 = vst.msk [vmem:[#allocation3 + $0xf3] sm:$0xff] %vm322_vm3, %v4633_v30  ;;  %v4635_v38 = vmax.f32 %v4619_v34, 0.0  ;;  %v5673_v62 = vld [vmem:[#allocation3 + $0x60] sm:$0xff]  ;;  %v5674_v0 = vld [vmem:[#allocation3 + $0x68] sm:$0xff] }
 0x21a   : > { %12972 = vmatmul.mubr.msk.f32.gmra.mrb[28].mxu1 %vm322_vm3, %v5691_v36  ;;  %4652 = vst.msk [vmem:[#allocation3 + $0x10b] sm:$0xff] %vm322_vm3, %v4636_v35  ;;  %v6082_v5 = vld [vmem:[#allocation3 + $0x2] sm:$0xff]  ;;  %v6083_v8 = vld [vmem:[#allocation3 + $0xa] sm:$0xff]  ;;  %v15177_v14 = vld [vmem:[%s15797_s4 + $0x20] sm:$0xff] }
 0x21b   : > { %5657 = vst.msk [vmem:[#allocation3 + $0x10d] sm:$0x3] %vm5643_vm4, %v14084_v1  ;;  %v15181_v16 = vld [vmem:[#allocation3 + $0x12] sm:$0xff]  ;;  %v15189_v19 = vld [vmem:[#allocation3 + $0x1a] sm:$0xff]  ;;  %v15195_v21 = vld [vmem:[#allocation3 + $0x22] sm:$0xff] }
 0x21c   : > { %v5692_v39 = vld [vmem:[#allocation3 + $0x71] sm:$0xff]  ;;  %4651 = vst.msk [vmem:[#allocation3 + $0x103] sm:$0xff] %vm322_vm3, %v4635_v38  ;;  %v5693_v41 = vld [vmem:[#allocation3 + $0x79] sm:$0xff]  ;;  %v7776_v29 = vld [vmem:[#allocation3 + $0xe1] sm:$0xff] }
 0x21d   : > { %12974 = vmatprep.mubr.msk.f32.mxu1 %vm322_vm3, %v5692_v39  ;;  %v7777_v63 = vld [vmem:[#allocation3 + $0xe9] sm:$0xff]  ;;  %v5676_v6 = vld [vmem:[#allocation3 + $0x78] sm:$0xff]  ;;  %v7751_v20 = vld [vmem:[#allocation3 + $0xa0] sm:$0xff] }
 0x21e   : > { %12975 = vmatmul.mubr.msk.f32.gmra.mrb[30].mxu1 %vm322_vm3, %v5693_v41  ;;  %v7766_v45 = vld [vmem:[#allocation3 + $0x91] sm:$0xff]  ;;  %v15210_v26 = vld [vmem:[#allocation3 + $0x3a] sm:$0xff]  ;;  %v15215_v30 = vld [vmem:[#allocation3 + $0x42] sm:$0xff] }
 0x21f   : > { %12979 = vmatprep.mubr.msk.f32.mxu1 %vm322_vm3, %v5661_v40  ;;  %v5675_v3 = vld [vmem:[#allocation3 + $0x70] sm:$0xff]  ;;  %v7750_v18 = vld [vmem:[#allocation3 + $0x98] sm:$0xff]  ;;  %v7755_v28 = vld [vmem:[#allocation3 + $0xc0] sm:$0xff] }
 0x220   : > { %v7764_v42 = vld [vmem:[#allocation3 + $0x81] sm:$0xff]  ;;  %v7765_v43 = vld [vmem:[#allocation3 + $0x89] sm:$0xff]  ;;  %v7778_v2 = vld [vmem:[#allocation3 + $0xf1] sm:$0xff] }
 0x221   : > { %13187 = vmatprep.mubr.msk.f32.mxu0 %vm322_vm3, %v7764_v42  ;;  %v7779_v4 = vld [vmem:[#allocation3 + $0xf9] sm:$0xff]  ;;  %v7748_v13 = vld [vmem:[#allocation3 + $0x88] sm:$0xff]  ;;  %v7749_v11 = vld [vmem:[#allocation3 + $0x90] sm:$0xff] }
 0x222   : > { %13188 = vmatmul.mubr.msk.f32.vlgmr.msra.gmra.mrb[20].mxu0 %vm322_vm3, %v7765_v43  ;;  %12980 = vmatmul.mubr.msk.f32.vlgmr.msra.gmra.mrb[16].mxu1 %vm322_vm3, %v5662_v44  ;;  %v7747_v7 = vld [vmem:[#allocation3 + $0x80] sm:$0xff]  ;;  %v15200_v22 = vld [vmem:[#allocation3 + $0x2a] sm:$0xff]  ;;  %v15205_v24 = vld [vmem:[#allocation3 + $0x32] sm:$0xff] }
 0x223   : > { %13190 = vmatprep.mubr.msk.f32.mxu0 %vm322_vm3, %v7766_v45  ;;  %13004 = vmatpush3.msra.mxu1 %v14979_v10  ;;  %v7753_v23 = vld [vmem:[#allocation3 + $0xb0] sm:$0xff]  ;;  %v7754_v25 = vld [vmem:[#allocation3 + $0xb8] sm:$0xff]  ;;  %v7756_v31 = vld [vmem:[#allocation3 + $0xc8] sm:$0xff] }
 0x224   : > { %12982 = vmatprep.mubr.msk.f32.mxu1 %vm322_vm3, %v5663_v47  ;;  %13212 = vmatpush3.msra.mxu0 %v14971_v9  ;;  %v7770_v9 = vld [vmem:[#allocation3 + $0xb1] sm:$0xff]  ;;  %v15231_v40 = vld [vmem:[#allocation3 + $0x5a] sm:$0xff]  ;;  %v15237_v43 = vld [vmem:[#allocation3 + $0x62] sm:$0xff] }
 0x225   : > { %13029 = vmatprep.subr.mxu1 %v15136_v46  ;;  %13237 = vmatprep.subr.mxu0 %v14979_v10  ;;  %v15220_v32 = vld [vmem:[#allocation3 + $0x4a] sm:$0xff]  ;;  %v15225_v34 = vld [vmem:[#allocation3 + $0x52] sm:$0xff]  ;;  %v7759_v41 = vld [vmem:[#allocation3 + $0xe0] sm:$0xff] }
 0x226   : > { %13191 = vmatmul.mubr.msk.f32.gmra.mrb[22].mxu0 %vm322_vm3, %v7767_v48  ;;  %12983 = vmatmul.mubr.msk.f32.gmra.mrb[18].mxu1 %vm322_vm3, %v5664_v49  ;;  %v7757_v33 = vld [vmem:[#allocation3 + $0xd0] sm:$0xff]  ;;  %v7758_v36 = vld [vmem:[#allocation3 + $0xd8] sm:$0xff]  ;;  %v7760_v47 = vld [vmem:[#allocation3 + $0xe8] sm:$0xff] }
 0x227   : > { %13193 = vmatprep.mubr.msk.f32.mxu0 %vm322_vm3, %v7768_v15  ;;  %12985 = vmatprep.mubr.msk.f32.mxu1 %vm322_vm3, %v5665_v50  ;;  %v15244_v15 = vld [vmem:[#allocation3 + $0x6a] sm:$0xff] }
 0x228   : > { %v7761_v50 = vld [vmem:[#allocation3 + $0xf0] sm:$0xff] }
 0x22a   : > { %13194 = vmatmul.mubr.msk.f32.gmra.mrb[24].mxu0 %vm322_vm3, %v7769_v51  ;;  %12986 = vmatmul.mubr.msk.f32.gmra.mrb[20].mxu1 %vm322_vm3, %v5666_v17 }
 0x22b   : > { %13196 = vmatprep.mubr.msk.f32.mxu0 %vm322_vm3, %v7770_v9  ;;  %12988 = vmatprep.mubr.msk.f32.mxu1 %vm322_vm3, %v5667_v52  ;;  %v6096_v52 = vld [vmem:[#allocation3 + $0x72] sm:$0xff] }
 0x22e   : > { %13197 = vmatmul.mubr.msk.f32.gmra.mrb[26].mxu0 %vm322_vm3, %v7771_v53  ;;  %12989 = vmatmul.mubr.msk.f32.gmra.mrb[22].mxu1 %vm322_vm3, %v5668_v54 }
 0x22f   : > { %13199 = vmatprep.mubr.msk.f32.mxu0 %vm322_vm3, %v7772_v55  ;;  %12991 = vmatprep.mubr.msk.f32.mxu1 %vm322_vm3, %v5669_v56  ;;  %v7762_v55 = vld [vmem:[#allocation3 + $0xf8] sm:$0xff] }
 0x232   : > { %13200 = vmatmul.mubr.msk.f32.gmra.mrb[28].mxu0 %vm322_vm3, %v7773_v57  ;;  %12992 = vmatmul.mubr.msk.f32.gmra.mrb[24].mxu1 %vm322_vm3, %v5670_v58  ;;  %v6097_v57 = vld [vmem:[#allocation3 + $0x7a] sm:$0xff]  ;;  %v8167_v58 = vld [vmem:[#allocation3 + $0x82] sm:$0xff] }
 0x233   : > { %13202 = vmatprep.mubr.msk.f32.mxu0 %vm322_vm3, %v7774_v59  ;;  %12994 = vmatprep.mubr.msk.f32.mxu1 %vm322_vm3, %v5671_v27  ;;  %v8168_v27 = vld [vmem:[#allocation3 + $0x8a] sm:$0xff] }
 0x236   : > { %13203 = vmatmul.mubr.msk.f32.gmra.mrb[30].mxu0 %vm322_vm3, %v7775_v60  ;;  %12995 = vmatmul.mubr.msk.f32.gmra.mrb[26].mxu1 %vm322_vm3, %v5672_v61  ;;  %v15269_v60 = vld [vmem:[%s15797_s4 + $0x28] sm:$0xff] }
 0x237   : > { %13205 = vmatprep.mubr.msk.f32.mxu0 %vm322_vm3, %v7776_v29  ;;  %12997 = vmatprep.mubr.msk.f32.mxu1 %vm322_vm3, %v5673_v62  ;;  %v8170_v61 = vld [vmem:[#allocation3 + $0x9a] sm:$0xff]  ;;  %v8171_v29 = vld [vmem:[#allocation3 + $0xa2] sm:$0xff]  ;;  %v8172_v62 = vld [vmem:[#allocation3 + $0xaa] sm:$0xff] }
 0x23a   : > { %13206 = vmatmul.mubr.msk.f32.gmra.mrb[32].mxu0 %vm322_vm3, %v7777_v63  ;;  %12998 = vmatmul.mubr.msk.f32.gmra.mrb[28].mxu1 %vm322_vm3, %v5674_v0  ;;  %v8173_v63 = vld [vmem:[#allocation3 + $0xb2] sm:$0xff]  ;;  %v8175_v0 = vld [vmem:[#allocation3 + $0xc2] sm:$0xff] }
 0x23b   : > { %13208 = vmatprep.mubr.msk.f32.mxu0 %vm322_vm3, %v7778_v2  ;;  %13000 = vmatprep.mubr.msk.f32.mxu1 %vm322_vm3, %v5675_v3  ;;  %v8176_v2 = vld [vmem:[#allocation3 + $0xca] sm:$0xff]  ;;  %v8177_v3 = vld [vmem:[#allocation3 + $0xd2] sm:$0xff] }
 0x23e   : > { %13209 = vmatmul.mubr.msk.f32.gmra.mrb[34].mxu0 %vm322_vm3, %v7779_v4  ;;  %13001 = vmatmul.mubr.msk.f32.gmra.mrb[30].mxu1 %vm322_vm3, %v5676_v6  ;;  %v8178_v4 = vld [vmem:[#allocation3 + $0xda] sm:$0xff]  ;;  %v8180_v6 = vld [vmem:[#allocation3 + $0xea] sm:$0xff] }
 0x23f   : > { %13213 = vmatprep.mubr.msk.f32.mxu0 %vm322_vm3, %v7747_v7  ;;  %13005 = vmatprep.mubr.msk.f32.mxu1 %vm322_vm3, %v6082_v5  ;;  %v8179_v5 = vld [vmem:[#allocation3 + $0xe2] sm:$0xff]  ;;  %v8181_v7 = vld [vmem:[#allocation3 + $0xf2] sm:$0xff] }
 0x242   : > { %13214 = vmatmul.mubr.msk.f32.vlgmr.msra.gmra.mrb[20].mxu0 %vm322_vm3, %v7748_v13  ;;  %13006 = vmatmul.mubr.msk.f32.vlgmr.msra.gmra.mrb[16].mxu1 %vm322_vm3, %v6083_v8  ;;  %v8182_v8 = vld [vmem:[#allocation3 + $0xfa] sm:$0xff] }
 0x243   : > { %13216 = vmatprep.mubr.msk.f32.mxu0 %vm322_vm3, %v7749_v11  ;;  %13030 = vmatpush3.msra.mxu1 %v15136_v46  ;;  %v6536_v13 = vld [vmem:[#allocation3 + $0x13] sm:$0xff]  ;;  %v6537_v11 = vld [vmem:[#allocation3 + $0x1b] sm:$0xff] }
 0x244   : > { %13008 = vmatprep.mubr.msk.f32.mxu1 %vm322_vm3, %v15181_v16  ;;  %13238 = vmatpush3.msra.mxu0 %v14979_v10  ;;  %v7752_v10 = vld [vmem:[#allocation3 + $0xa8] sm:$0xff] }
 0x245   : > { %13055 = vmatprep.subr.mxu1 %v15177_v14  ;;  %13263 = vmatprep.subr.mxu0 %v15136_v46 }
 0x246   : > { %13217 = vmatmul.mubr.msk.f32.gmra.mrb[22].mxu0 %vm322_vm3, %v7750_v18  ;;  %13009 = vmatmul.mubr.msk.f32.gmra.mrb[18].mxu1 %vm322_vm3, %v15189_v19  ;;  %v6538_v18 = vld [vmem:[#allocation3 + $0x23] sm:$0xff] }
 0x247   : > { %13219 = vmatprep.mubr.msk.f32.mxu0 %vm322_vm3, %v7751_v20  ;;  %13011 = vmatprep.mubr.msk.f32.mxu1 %vm322_vm3, %v15195_v21  ;;  %v6540_v20 = vld [vmem:[#allocation3 + $0x33] sm:$0xff] }
 0x24a   : > { %13220 = vmatmul.mubr.msk.f32.gmra.mrb[24].mxu0 %vm322_vm3, %v7752_v10  ;;  %13012 = vmatmul.mubr.msk.f32.gmra.mrb[20].mxu1 %vm322_vm3, %v15200_v22  ;;  %v6542_v10 = vld [vmem:[#allocation3 + $0x43] sm:$0xff] }
 0x24b   : > { %13222 = vmatprep.mubr.msk.f32.mxu0 %vm322_vm3, %v7753_v23  ;;  %13014 = vmatprep.mubr.msk.f32.mxu1 %vm322_vm3, %v15205_v24  ;;  %v6544_v23 = vld [vmem:[#allocation3 + $0x53] sm:$0xff] }
 0x24e   : > { %13223 = vmatmul.mubr.msk.f32.gmra.mrb[26].mxu0 %vm322_vm3, %v7754_v25  ;;  %13015 = vmatmul.mubr.msk.f32.gmra.mrb[22].mxu1 %vm322_vm3, %v15210_v26  ;;  %v6546_v25 = vld [vmem:[#allocation3 + $0x63] sm:$0xff] }
 0x24f   : > { %13225 = vmatprep.mubr.msk.f32.mxu0 %vm322_vm3, %v7755_v28  ;;  %13017 = vmatprep.mubr.msk.f32.mxu1 %vm322_vm3, %v15215_v30  ;;  %v6548_v28 = vld [vmem:[#allocation3 + $0x73] sm:$0xff] }
 0x252   : > { %13226 = vmatmul.mubr.msk.f32.gmra.mrb[28].mxu0 %vm322_vm3, %v7756_v31  ;;  %13018 = vmatmul.mubr.msk.f32.gmra.mrb[24].mxu1 %vm322_vm3, %v15220_v32  ;;  %v15351_v31 = vld [vmem:[#allocation3 + $0x102] sm:$0xff] }
 0x253   : > { %13228 = vmatprep.mubr.msk.f32.mxu0 %vm322_vm3, %v7757_v33  ;;  %13020 = vmatprep.mubr.msk.f32.mxu1 %vm322_vm3, %v15225_v34  ;;  %v12947_v35 = vpop.f32.mrb[16].mxu0  ;;  %v15357_v33 = vld [vmem:[#allocation3 + $0x10a] sm:$0xff] }
 0x254   : > { %v5627_v38 = vmul.f32 %v12947_v35, %v14985_v37  ;;  %v5603_v39 = vpop.f32.mrb[17].mxu0  ;;  %v8619_v35 = vld [vmem:[#allocation3 + $0x93] sm:$0xff] }
 0x255   : > { %v5626_v42 = vmul.f32 %v14985_v37, %v5603_v39  ;;  %v6764_v39 = vld [vmem:[#allocation3 + $0x1c] sm:$0xff] }
 0x256   : > { %13229 = vmatmul.mubr.msk.f32.gmra.mrb[30].mxu0 %vm322_vm3, %v7758_v36  ;;  %13021 = vmatmul.mubr.msk.f32.gmra.mrb[26].mxu1 %vm322_vm3, %v15231_v40  ;;  %v5631_v44 = vadd.f32 %v14990_v12, %v5627_v38  ;;  %v6763_v36 = vld [vmem:[#allocation3 + $0x14] sm:$0xff] }
 0x257   : > { %13231 = vmatprep.mubr.msk.f32.mxu0 %vm322_vm3, %v7759_v41  ;;  %13023 = vmatprep.mubr.msk.f32.mxu1 %vm322_vm3, %v15237_v43  ;;  %v5630_v45 = vadd.f32 %v14990_v12, %v5626_v42  ;;  %v12950_v48 = vpop.f32.mrb[18].mxu0  ;;  %v8620_v38 = vld [vmem:[#allocation3 + $0x9b] sm:$0xff]  ;;  %v15368_v41 = vld [vmem:[%s15797_s4 + $0x38] sm:$0xff]  ;;  %v6765_v42 = vld [vmem:[#allocation3 + $0x24] sm:$0xff] }
 0x258   : > { %v5635_v49 = vmax.f32 %v5631_v44, 0.0  ;;  %v5629_v51 = vmul.f32 %v12950_v48, %v14985_v37  ;;  %v5613_v17 = vpop.f32.mrb[19].mxu0  ;;  %v6766_v44 = vld [vmem:[#allocation3 + $0x2c] sm:$0xff]  ;;  %v8624_v48 = vld [vmem:[#allocation3 + $0xbb] sm:$0xff] }
 0x259   : > { %v5634_v9 = vmax.f32 %v5630_v45, 0.0  ;;  %v5628_v53 = vmul.f32 %v14985_v37, %v5613_v17  ;;  %v8623_v45 = vld [vmem:[#allocation3 + $0xb3] sm:$0xff] }
 0x25a   : > { %13232 = vmatmul.mubr.msk.f32.gmra.mrb[32].mxu0 %vm322_vm3, %v7760_v47  ;;  %13024 = vmatmul.mubr.msk.f32.gmra.mrb[28].mxu1 %vm322_vm3, %v15244_v15  ;;  %5639 = vst.msk [vmem:[#allocation3 + $0x11b] sm:$0xff] %vm322_vm3, %v5635_v49  ;;  %v5633_v54 = vadd.f32 %v14990_v12, %v5629_v51  ;;  %v6767_v47 = vld [vmem:[#allocation3 + $0x34] sm:$0xff]  ;;  %v6768_v49 = vld [vmem:[#allocation3 + $0x3c] sm:$0xff]  ;;  %v8626_v51 = vld [vmem:[#allocation3 + $0xcb] sm:$0xff] }
 0x25b   : > { %13234 = vmatprep.mubr.msk.f32.mxu0 %vm322_vm3, %v7761_v50  ;;  %13026 = vmatprep.mubr.msk.f32.mxu1 %vm322_vm3, %v6096_v52  ;;  %5658 = vst.msk [vmem:[#allocation3 + $0x11f] sm:$0x3] %vm5643_vm4, %v14084_v1  ;;  %v5632_v56 = vadd.f32 %v14990_v12, %v5628_v53  ;;  %v8169_v12 = vld [vmem:[#allocation3 + $0x92] sm:$0xff]  ;;  %v6769_v50 = vld [vmem:[#allocation3 + $0x44] sm:$0xff]  ;;  %v8628_v53 = vld [vmem:[#allocation3 + $0xdb] sm:$0xff] }
 0x25c   : > { %5638 = vst.msk [vmem:[#allocation3 + $0x113] sm:$0xff] %vm322_vm3, %v5634_v9  ;;  %v5637_v37 = vmax.f32 %v5633_v54, 0.0  ;;  %v6770_v17 = vld [vmem:[#allocation3 + $0x4c] sm:$0xff]  ;;  %v6772_v54 = vld [vmem:[#allocation3 + $0x5c] sm:$0xff] }
 0x25d   : > { %v5636_v59 = vmax.f32 %v5632_v56, 0.0  ;;  %v8627_v9 = vld [vmem:[#allocation3 + $0xd3] sm:$0xff]  ;;  %v6773_v56 = vld [vmem:[#allocation3 + $0x64] sm:$0xff] }
 0x25e   : > { %13235 = vmatmul.mubr.msk.f32.gmra.mrb[34].mxu0 %vm322_vm3, %v7762_v55  ;;  %13027 = vmatmul.mubr.msk.f32.gmra.mrb[30].mxu1 %vm322_vm3, %v6097_v57  ;;  %5642 = vst.msk [vmem:[#allocation3 + $0x12b] sm:$0x3f] %vm5641_vm5, %v5637_v37  ;;  %v8629_v55 = vld [vmem:[#allocation3 + $0xe3] sm:$0xff]  ;;  %v8631_v37 = vld [vmem:[#allocation3 + $0xf3] sm:$0xff] }
 0x25f   : > { %13239 = vmatprep.mubr.msk.f32.mxu0 %vm322_vm3, %v8167_v58  ;;  %13031 = vmatprep.mubr.msk.f32.mxu1 %vm322_vm3, %v15181_v16  ;;  %5640 = vst.msk [vmem:[#allocation3 + $0x123] sm:$0xff] %vm322_vm3, %v5636_v59  ;;  %v15321_v16 = vld [vmem:[%s15797_s4 + $0x30] sm:$0xff]  ;;  %v6775_v59 = vld [vmem:[#allocation3 + $0x74] sm:$0xff] }
 0x262   : > { %13240 = vmatmul.mubr.msk.f32.vlgmr.msra.gmra.mrb[20].mxu0 %vm322_vm3, %v8168_v27  ;;  %13032 = vmatmul.mubr.msk.f32.vlgmr.msra.gmra.mrb[16].mxu1 %vm322_vm3, %v15189_v19  ;;  %v6539_v19 = vld [vmem:[#allocation3 + $0x2b] sm:$0xff] }
 0x263   : > { %13242 = vmatprep.mubr.msk.f32.mxu0 %vm322_vm3, %v8169_v12  ;;  %13056 = vmatpush3.msra.mxu1 %v15177_v14  ;;  %v8860_v1 = vld [vmem:[#allocation3 + $0x10c] sm:$0xff] }
 0x264   : > { %13034 = vmatprep.mubr.msk.f32.mxu1 %vm322_vm3, %v15195_v21  ;;  %13264 = vmatpush3.msra.mxu0 %v15136_v46  ;;  %v8174_v46 = vld [vmem:[#allocation3 + $0xba] sm:$0xff] }
 0x265   : > { %13081 = vmatprep.subr.mxu1 %v15269_v60  ;;  %13289 = vmatprep.subr.mxu0 %v15177_v14  ;;  %v6541_v21 = vld [vmem:[#allocation3 + $0x3b] sm:$0xff] }
 0x266   : > { %13243 = vmatmul.mubr.msk.f32.gmra.mrb[22].mxu0 %vm322_vm3, %v8170_v61  ;;  %13035 = vmatmul.mubr.msk.f32.gmra.mrb[18].mxu1 %vm322_vm3, %v15200_v22  ;;  %v6543_v22 = vld [vmem:[#allocation3 + $0x4b] sm:$0xff] }
 0x267   : > { %13245 = vmatprep.mubr.msk.f32.mxu0 %vm322_vm3, %v8171_v29  ;;  %13037 = vmatprep.mubr.msk.f32.mxu1 %vm322_vm3, %v15205_v24  ;;  %v6545_v24 = vld [vmem:[#allocation3 + $0x5b] sm:$0xff] }
 0x26a   : > { %13246 = vmatmul.mubr.msk.f32.gmra.mrb[24].mxu0 %vm322_vm3, %v8172_v62  ;;  %13038 = vmatmul.mubr.msk.f32.gmra.mrb[20].mxu1 %vm322_vm3, %v15210_v26  ;;  %v6547_v26 = vld [vmem:[#allocation3 + $0x6b] sm:$0xff] }
 0x26b   : > { %13248 = vmatprep.mubr.msk.f32.mxu0 %vm322_vm3, %v8173_v63  ;;  %13040 = vmatprep.mubr.msk.f32.mxu1 %vm322_vm3, %v15215_v30  ;;  %v6549_v30 = vld [vmem:[#allocation3 + $0x7b] sm:$0xff] }
 0x26e   : > { %13249 = vmatmul.mubr.msk.f32.gmra.mrb[26].mxu0 %vm322_vm3, %v8174_v46  ;;  %13041 = vmatmul.mubr.msk.f32.gmra.mrb[22].mxu1 %vm322_vm3, %v15220_v32  ;;  %v6550_v32 = vld [vmem:[#allocation3 + $0x83] sm:$0xff] }
 0x26f   : > { %13251 = vmatprep.mubr.msk.f32.mxu0 %vm322_vm3, %v8175_v0  ;;  %13043 = vmatprep.mubr.msk.f32.mxu1 %vm322_vm3, %v15225_v34  ;;  %v6551_v34 = vld [vmem:[#allocation3 + $0x8b] sm:$0xff] }
 0x272   : > { %13252 = vmatmul.mubr.msk.f32.gmra.mrb[28].mxu0 %vm322_vm3, %v8176_v2  ;;  %13044 = vmatmul.mubr.msk.f32.gmra.mrb[24].mxu1 %vm322_vm3, %v15231_v40  ;;  %v8621_v40 = vld [vmem:[#allocation3 + $0xa3] sm:$0xff] }
 0x273   : > { %13254 = vmatprep.mubr.msk.f32.mxu0 %vm322_vm3, %v8177_v3  ;;  %13046 = vmatprep.mubr.msk.f32.mxu1 %vm322_vm3, %v15237_v43  ;;  %v8622_v43 = vld [vmem:[#allocation3 + $0xab] sm:$0xff] }
 0x276   : > { %13255 = vmatmul.mubr.msk.f32.gmra.mrb[30].mxu0 %vm322_vm3, %v8178_v4  ;;  %13047 = vmatmul.mubr.msk.f32.gmra.mrb[26].mxu1 %vm322_vm3, %v15244_v15  ;;  %v8625_v15 = vld [vmem:[#allocation3 + $0xc3] sm:$0xff] }
 0x277   : > { %13257 = vmatprep.mubr.msk.f32.mxu0 %vm322_vm3, %v8179_v5  ;;  %13049 = vmatprep.mubr.msk.f32.mxu1 %vm322_vm3, %v6096_v52  ;;  %v6771_v52 = vld [vmem:[#allocation3 + $0x54] sm:$0xff] }
 0x27a   : > { %13258 = vmatmul.mubr.msk.f32.gmra.mrb[32].mxu0 %vm322_vm3, %v8180_v6  ;;  %13050 = vmatmul.mubr.msk.f32.gmra.mrb[28].mxu1 %vm322_vm3, %v6097_v57  ;;  %v8630_v57 = vld [vmem:[#allocation3 + $0xeb] sm:$0xff] }
 0x27b   : > { %13260 = vmatprep.mubr.msk.f32.mxu0 %vm322_vm3, %v8181_v7  ;;  %13052 = vmatprep.mubr.msk.f32.mxu1 %vm322_vm3, %v8167_v58  ;;  %v6774_v58 = vld [vmem:[#allocation3 + $0x6c] sm:$0xff] }
 0x27e   : > { %13261 = vmatmul.mubr.msk.f32.gmra.mrb[34].mxu0 %vm322_vm3, %v8182_v8  ;;  %13053 = vmatmul.mubr.msk.f32.gmra.mrb[30].mxu1 %vm322_vm3, %v8168_v27  ;;  %v8632_v27 = vld [vmem:[#allocation3 + $0xfb] sm:$0xff] }
 0x27f   : > { %13265 = vmatprep.mubr.msk.f32.mxu0 %vm322_vm3, %v8169_v12  ;;  %13057 = vmatprep.mubr.msk.f32.mxu1 %vm322_vm3, %v6536_v13  ;;  %v6776_v12 = vld [vmem:[#allocation3 + $0x7c] sm:$0xff]  ;;  %v8853_v13 = vld [vmem:[#allocation3 + $0xd4] sm:$0xff] }
 0x282   : > { %13266 = vmatmul.mubr.msk.f32.vlgmr.msra.gmra.mrb[20].mxu0 %vm322_vm3, %v8170_v61  ;;  %13058 = vmatmul.mubr.msk.f32.vlgmr.msra.gmra.mrb[16].mxu1 %vm322_vm3, %v6537_v11  ;;  %v8633_v61 = vld [vmem:[#allocation3 + $0x103] sm:$0xff] }
 0x283   : > { %13268 = vmatprep.mubr.msk.f32.mxu0 %vm322_vm3, %v8171_v29  ;;  %13082 = vmatpush3.msra.mxu1 %v15269_v60  ;;  %v6777_v29 = vld [vmem:[#allocation3 + $0x84] sm:$0xff]  ;;  %v8854_v11 = vld [vmem:[#allocation3 + $0xdc] sm:$0xff] }
 0x284   : > { %13060 = vmatprep.mubr.msk.f32.mxu1 %vm322_vm3, %v6538_v18  ;;  %13290 = vmatpush3.msra.mxu0 %v15177_v14  ;;  %v8855_v18 = vld [vmem:[#allocation3 + $0xe4] sm:$0xff] }
 0x285   : > { %13107 = vmatprep.subr.mxu1 %v15321_v16  ;;  %13315 = vmatprep.subr.mxu0 %v15269_v60 }
 0x286   : > { %13269 = vmatmul.mubr.msk.f32.gmra.mrb[22].mxu0 %vm322_vm3, %v8172_v62  ;;  %13061 = vmatmul.mubr.msk.f32.gmra.mrb[18].mxu1 %vm322_vm3, %v6539_v19  ;;  %v8634_v62 = vld [vmem:[#allocation3 + $0x10b] sm:$0xff] }
 0x287   : > { %13271 = vmatprep.mubr.msk.f32.mxu0 %vm322_vm3, %v8173_v63  ;;  %13063 = vmatprep.mubr.msk.f32.mxu1 %vm322_vm3, %v6540_v20  ;;  %v6778_v63 = vld [vmem:[#allocation3 + $0x8c] sm:$0xff]  ;;  %v8857_v20 = vld [vmem:[#allocation3 + $0xf4] sm:$0xff] }
 0x288   : > { %v8856_v19 = vld [vmem:[#allocation3 + $0xec] sm:$0xff] }
 0x28a   : > { %13272 = vmatmul.mubr.msk.f32.gmra.mrb[24].mxu0 %vm322_vm3, %v8174_v46  ;;  %13064 = vmatmul.mubr.msk.f32.gmra.mrb[20].mxu1 %vm322_vm3, %v6541_v21  ;;  %v8845_v46 = vld [vmem:[#allocation3 + $0x94] sm:$0xff]  ;;  %v8858_v21 = vld [vmem:[#allocation3 + $0xfc] sm:$0xff] }
 0x28b   : > { %13274 = vmatprep.mubr.msk.f32.mxu0 %vm322_vm3, %v8175_v0  ;;  %13066 = vmatprep.mubr.msk.f32.mxu1 %vm322_vm3, %v6542_v10  ;;  %v8846_v0 = vld [vmem:[#allocation3 + $0x9c] sm:$0xff]  ;;  %v8859_v10 = vld [vmem:[#allocation3 + $0x104] sm:$0xff] }
 0x28e   : > { %13275 = vmatmul.mubr.msk.f32.gmra.mrb[26].mxu0 %vm322_vm3, %v8176_v2  ;;  %13067 = vmatmul.mubr.msk.f32.gmra.mrb[22].mxu1 %vm322_vm3, %v6543_v22  ;;  %v8847_v2 = vld [vmem:[#allocation3 + $0xa4] sm:$0xff] }
 0x28f   : > { %13277 = vmatprep.mubr.msk.f32.mxu0 %vm322_vm3, %v8177_v3  ;;  %13069 = vmatprep.mubr.msk.f32.mxu1 %vm322_vm3, %v6544_v23  ;;  %v15409_v3 = vld [vmem:[%s15797_s4 + $0x40] sm:$0xff]  ;;  %v7217_v22 = vld [vmem:[#allocation3 + $0x25] sm:$0xff]  ;;  %v7218_v23 = vld [vmem:[#allocation3 + $0x2d] sm:$0xff] }
 0x292   : > { %13278 = vmatmul.mubr.msk.f32.gmra.mrb[28].mxu0 %vm322_vm3, %v8178_v4  ;;  %13070 = vmatmul.mubr.msk.f32.gmra.mrb[24].mxu1 %vm322_vm3, %v6545_v24  ;;  %v8848_v4 = vld [vmem:[#allocation3 + $0xac] sm:$0xff]  ;;  %v11631_v24 = vld [vmem:[%s15797_s4 + $0x8] sm:$0xff] }
 0x293   : > { %13280 = vmatprep.mubr.msk.f32.mxu0 %vm322_vm3, %v8179_v5  ;;  %13072 = vmatprep.mubr.msk.f32.mxu1 %vm322_vm3, %v6546_v25  ;;  %v8849_v5 = vld [vmem:[#allocation3 + $0xb4] sm:$0xff] }
 0x294   : > { %v7219_v25 = vld [vmem:[#allocation3 + $0x35] sm:$0xff] }
 0x296   : > { %13281 = vmatmul.mubr.msk.f32.gmra.mrb[30].mxu0 %vm322_vm3, %v8180_v6  ;;  %13073 = vmatmul.mubr.msk.f32.gmra.mrb[26].mxu1 %vm322_vm3, %v6547_v26  ;;  %v8850_v6 = vld [vmem:[#allocation3 + $0xbc] sm:$0xff] }
 0x297   : > { %13283 = vmatprep.mubr.msk.f32.mxu0 %vm322_vm3, %v8181_v7  ;;  %13075 = vmatprep.mubr.msk.f32.mxu1 %vm322_vm3, %v6548_v28  ;;  %v8851_v7 = vld [vmem:[#allocation3 + $0xc4] sm:$0xff] }
 0x298   : > { %v7220_v26 = vld [vmem:[#allocation3 + $0x3d] sm:$0xff]  ;;  %v7221_v28 = vld [vmem:[#allocation3 + $0x45] sm:$0xff] }
 0x29a   : > { %13284 = vmatmul.mubr.msk.f32.gmra.mrb[32].mxu0 %vm322_vm3, %v8182_v8  ;;  %13076 = vmatmul.mubr.msk.f32.gmra.mrb[28].mxu1 %vm322_vm3, %v6549_v30  ;;  %v8852_v8 = vld [vmem:[#allocation3 + $0xcc] sm:$0xff] }
 0x29b   : > { %13286 = vmatprep.mubr.msk.f32.mxu0 %vm322_vm3, %v15351_v31  ;;  %13078 = vmatprep.mubr.msk.f32.mxu1 %vm322_vm3, %v6550_v32  ;;  %v7222_v30 = vld [vmem:[#allocation3 + $0x4d] sm:$0xff]  ;;  %v7223_v32 = vld [vmem:[#allocation3 + $0x55] sm:$0xff] }
 0x29e   : > { %13287 = vmatmul.mubr.msk.f32.gmra.mrb[34].mxu0 %vm322_vm3, %v15357_v33  ;;  %13079 = vmatmul.mubr.msk.f32.gmra.mrb[30].mxu1 %vm322_vm3, %v6551_v34  ;;  %v7224_v34 = vld [vmem:[#allocation3 + $0x5d] sm:$0xff] }
 0x29f   : > { %13291 = vmatprep.mubr.msk.f32.mxu0 %vm322_vm3, %v8619_v35  ;;  %13083 = vmatprep.mubr.msk.f32.mxu1 %vm322_vm3, %v6763_v36  ;;  %v7225_v35 = vld [vmem:[#allocation3 + $0x65] sm:$0xff]  ;;  %v7226_v36 = vld [vmem:[#allocation3 + $0x6d] sm:$0xff] }
 0x2a2   : > { %13292 = vmatmul.mubr.msk.f32.vlgmr.msra.gmra.mrb[20].mxu0 %vm322_vm3, %v8620_v38  ;;  %13084 = vmatmul.mubr.msk.f32.vlgmr.msra.gmra.mrb[16].mxu1 %vm322_vm3, %v6764_v39  ;;  %v7227_v38 = vld [vmem:[#allocation3 + $0x75] sm:$0xff]  ;;  %v7228_v39 = vld [vmem:[#allocation3 + $0x7d] sm:$0xff] }
 0x2a3   : > { %13294 = vmatprep.mubr.msk.f32.mxu0 %vm322_vm3, %v8621_v40  ;;  %13108 = vmatpush3.msra.mxu1 %v15321_v16  ;;  %v7229_v40 = vld [vmem:[#allocation3 + $0x85] sm:$0xff] }
 0x2a4   : > { %13086 = vmatprep.mubr.msk.f32.mxu1 %vm322_vm3, %v6765_v42  ;;  %13316 = vmatpush3.msra.mxu0 %v15269_v60 }
 0x2a5   : > { %13133 = vmatprep.subr.mxu1 %v15368_v41  ;;  %13341 = vmatprep.subr.mxu0 %v15321_v16 }
 0x2a6   : > { %13295 = vmatmul.mubr.msk.f32.gmra.mrb[22].mxu0 %vm322_vm3, %v8622_v43  ;;  %13087 = vmatmul.mubr.msk.f32.gmra.mrb[18].mxu1 %vm322_vm3, %v6766_v44  ;;  %v15478_v43 = vld [vmem:[#allocation3 + $0x114] sm:$0xff] }
 0x2a7   : > { %13297 = vmatprep.mubr.msk.f32.mxu0 %vm322_vm3, %v8623_v45  ;;  %13089 = vmatprep.mubr.msk.f32.mxu1 %vm322_vm3, %v6767_v47  ;;  %v15484_v45 = vld [vmem:[#allocation3 + $0x11c] sm:$0xff] }
 0x2aa   : > { %13298 = vmatmul.mubr.msk.f32.gmra.mrb[24].mxu0 %vm322_vm3, %v8624_v48  ;;  %13090 = vmatmul.mubr.msk.f32.gmra.mrb[20].mxu1 %vm322_vm3, %v6768_v49  ;;  %v9297_v48 = vld [vmem:[#allocation3 + $0xa5] sm:$0xff] }
 0x2ab   : > { %13300 = vmatprep.mubr.msk.f32.mxu0 %vm322_vm3, %v8625_v15  ;;  %13092 = vmatprep.mubr.msk.f32.mxu1 %vm322_vm3, %v6769_v50  ;;  %v9298_v15 = vld [vmem:[#allocation3 + $0xad] sm:$0xff] }
 0x2ae   : > { %13301 = vmatmul.mubr.msk.f32.gmra.mrb[26].mxu0 %vm322_vm3, %v8626_v51  ;;  %13093 = vmatmul.mubr.msk.f32.gmra.mrb[22].mxu1 %vm322_vm3, %v6770_v17  ;;  %v9299_v51 = vld [vmem:[#allocation3 + $0xb5] sm:$0xff] }
 0x2af   : > { %13303 = vmatprep.mubr.msk.f32.mxu0 %vm322_vm3, %v8627_v9  ;;  %13095 = vmatprep.mubr.msk.f32.mxu1 %vm322_vm3, %v6771_v52  ;;  %v7446_v9 = vld [vmem:[#allocation3 + $0x36] sm:$0xff] }
 0x2b2   : > { %13304 = vmatmul.mubr.msk.f32.gmra.mrb[28].mxu0 %vm322_vm3, %v8628_v53  ;;  %13096 = vmatmul.mubr.msk.f32.gmra.mrb[24].mxu1 %vm322_vm3, %v6772_v54  ;;  %v7447_v53 = vld [vmem:[#allocation3 + $0x3e] sm:$0xff] }
 0x2b3   : > { %13306 = vmatprep.mubr.msk.f32.mxu0 %vm322_vm3, %v8629_v55  ;;  %13098 = vmatprep.mubr.msk.f32.mxu1 %vm322_vm3, %v6773_v56  ;;  %v7448_v55 = vld [vmem:[#allocation3 + $0x46] sm:$0xff] }
 0x2b6   : > { %13307 = vmatmul.mubr.msk.f32.gmra.mrb[30].mxu0 %vm322_vm3, %v8630_v57  ;;  %13099 = vmatmul.mubr.msk.f32.gmra.mrb[26].mxu1 %vm322_vm3, %v6774_v58  ;;  %v7449_v57 = vld [vmem:[#allocation3 + $0x4e] sm:$0xff] }
 0x2b7   : > { %13309 = vmatprep.mubr.msk.f32.mxu0 %vm322_vm3, %v8631_v37  ;;  %13101 = vmatprep.mubr.msk.f32.mxu1 %vm322_vm3, %v6775_v59  ;;  %v7450_v37 = vld [vmem:[#allocation3 + $0x56] sm:$0xff] }
 0x2ba   : > { %13310 = vmatmul.mubr.msk.f32.gmra.mrb[32].mxu0 %vm322_vm3, %v8632_v27  ;;  %13102 = vmatmul.mubr.msk.f32.gmra.mrb[28].mxu1 %vm322_vm3, %v6776_v12  ;;  %v7451_v27 = vld [vmem:[#allocation3 + $0x5e] sm:$0xff] }
 0x2bb   : > { %13312 = vmatprep.mubr.msk.f32.mxu0 %vm322_vm3, %v8633_v61  ;;  %13104 = vmatprep.mubr.msk.f32.mxu1 %vm322_vm3, %v6777_v29  ;;  %v7452_v61 = vld [vmem:[#allocation3 + $0x66] sm:$0xff] }
 0x2be   : > { %13313 = vmatmul.mubr.msk.f32.gmra.mrb[34].mxu0 %vm322_vm3, %v8634_v62  ;;  %13105 = vmatmul.mubr.msk.f32.gmra.mrb[30].mxu1 %vm322_vm3, %v6778_v63  ;;  %v7453_v62 = vld [vmem:[#allocation3 + $0x6e] sm:$0xff] }
 0x2bf   : > { %13317 = vmatprep.mubr.msk.f32.mxu0 %vm322_vm3, %v8845_v46  ;;  %13109 = vmatprep.mubr.msk.f32.mxu1 %vm322_vm3, %v6765_v42  ;;  %v7230_v42 = vld [vmem:[#allocation3 + $0x8d] sm:$0xff] }
 0x2c2   : > { %13318 = vmatmul.mubr.msk.f32.vlgmr.msra.gmra.mrb[20].mxu0 %vm322_vm3, %v8846_v0  ;;  %13110 = vmatmul.mubr.msk.f32.vlgmr.msra.gmra.mrb[16].mxu1 %vm322_vm3, %v6766_v44  ;;  %v7231_v44 = vld [vmem:[#allocation3 + $0x95] sm:$0xff] }
 0x2c3   : > { %13320 = vmatprep.mubr.msk.f32.mxu0 %vm322_vm3, %v8847_v2  ;;  %13134 = vmatpush3.msra.mxu1 %v15368_v41 }
 0x2c4   : > { %13112 = vmatprep.mubr.msk.f32.mxu1 %vm322_vm3, %v6767_v47  ;;  %13342 = vmatpush3.msra.mxu0 %v15321_v16  ;;  %v7232_v47 = vld [vmem:[#allocation3 + $0x9d] sm:$0xff] }
 0x2c5   : > { %13159 = vmatprep.subr.mxu1 %v15409_v3  ;;  %13367 = vmatprep.subr.mxu0 %v15368_v41 }
 0x2c6   : > { %13321 = vmatmul.mubr.msk.f32.gmra.mrb[22].mxu0 %vm322_vm3, %v8848_v4  ;;  %13113 = vmatmul.mubr.msk.f32.gmra.mrb[18].mxu1 %vm322_vm3, %v6768_v49  ;;  %v7444_v49 = vld [vmem:[#allocation3 + $0x26] sm:$0xff] }
 0x2c7   : > { %13323 = vmatprep.mubr.msk.f32.mxu0 %vm322_vm3, %v8849_v5  ;;  %13115 = vmatprep.mubr.msk.f32.mxu1 %vm322_vm3, %v6769_v50  ;;  %v7445_v50 = vld [vmem:[#allocation3 + $0x2e] sm:$0xff] }
 0x2ca   : > { %13324 = vmatmul.mubr.msk.f32.gmra.mrb[24].mxu0 %vm322_vm3, %v8850_v6  ;;  %13116 = vmatmul.mubr.msk.f32.gmra.mrb[20].mxu1 %vm322_vm3, %v6770_v17  ;;  %v15495_v17 = vld [vmem:[%s15797_s4] sm:$0xff] }
 0x2cb   : > { %13326 = vmatprep.mubr.msk.f32.mxu0 %vm322_vm3, %v8851_v7  ;;  %13118 = vmatprep.mubr.msk.f32.mxu1 %vm322_vm3, %v6771_v52  ;;  %v9300_v52 = vld [vmem:[#allocation3 + $0xbd] sm:$0xff] }
 0x2ce   : > { %13327 = vmatmul.mubr.msk.f32.gmra.mrb[26].mxu0 %vm322_vm3, %v8852_v8  ;;  %13119 = vmatmul.mubr.msk.f32.gmra.mrb[22].mxu1 %vm322_vm3, %v6772_v54  ;;  %v9301_v54 = vld [vmem:[#allocation3 + $0xc5] sm:$0xff] }
 0x2cf   : > { %13329 = vmatprep.mubr.msk.f32.mxu0 %vm322_vm3, %v8853_v13  ;;  %13121 = vmatprep.mubr.msk.f32.mxu1 %vm322_vm3, %v6773_v56  ;;  %v9302_v56 = vld [vmem:[#allocation3 + $0xcd] sm:$0xff] }
 0x2d2   : > { %13330 = vmatmul.mubr.msk.f32.gmra.mrb[28].mxu0 %vm322_vm3, %v8854_v11  ;;  %13122 = vmatmul.mubr.msk.f32.gmra.mrb[24].mxu1 %vm322_vm3, %v6774_v58  ;;  %v9303_v58 = vld [vmem:[#allocation3 + $0xd5] sm:$0xff] }
 0x2d3   : > { %13332 = vmatprep.mubr.msk.f32.mxu0 %vm322_vm3, %v8855_v18  ;;  %13124 = vmatprep.mubr.msk.f32.mxu1 %vm322_vm3, %v6775_v59  ;;  %v9304_v59 = vld [vmem:[#allocation3 + $0xdd] sm:$0xff] }
 0x2d6   : > { %13333 = vmatmul.mubr.msk.f32.gmra.mrb[30].mxu0 %vm322_vm3, %v8856_v19  ;;  %13125 = vmatmul.mubr.msk.f32.gmra.mrb[26].mxu1 %vm322_vm3, %v6776_v12  ;;  %v9305_v12 = vld [vmem:[#allocation3 + $0xe5] sm:$0xff] }
 0x2d7   : > { %13335 = vmatprep.mubr.msk.f32.mxu0 %vm322_vm3, %v8857_v20  ;;  %13127 = vmatprep.mubr.msk.f32.mxu1 %vm322_vm3, %v6777_v29  ;;  %v9306_v29 = vld [vmem:[#allocation3 + $0xed] sm:$0xff] }
 0x2da   : > { %13336 = vmatmul.mubr.msk.f32.gmra.mrb[32].mxu0 %vm322_vm3, %v8858_v21  ;;  %13128 = vmatmul.mubr.msk.f32.gmra.mrb[28].mxu1 %vm322_vm3, %v6778_v63  ;;  %v9307_v63 = vld [vmem:[#allocation3 + $0xf5] sm:$0xff] }
 0x2db   : > { %13338 = vmatprep.mubr.msk.f32.mxu0 %vm322_vm3, %v8859_v10  ;;  %13130 = vmatprep.mubr.msk.f32.mxu1 %vm322_vm3, %v8845_v46  ;;  %v7454_v46 = vld [vmem:[#allocation3 + $0x76] sm:$0xff] }
 0x2de   : > { %13339 = vmatmul.mubr.msk.f32.gmra.mrb[34].mxu0 %vm322_vm3, %v8860_v1  ;;  %13131 = vmatmul.mubr.msk.f32.gmra.mrb[30].mxu1 %vm322_vm3, %v8846_v0  ;;  %v9308_v0 = vld [vmem:[#allocation3 + $0xfd] sm:$0xff] }
 0x2df   : > { %13343 = vmatprep.mubr.msk.f32.mxu0 %vm322_vm3, %v8847_v2  ;;  %13135 = vmatprep.mubr.msk.f32.mxu1 %vm322_vm3, %v7217_v22  ;;  %v7455_v2 = vld [vmem:[#allocation3 + $0x7e] sm:$0xff]  ;;  %v11640_v22 = vld [vmem:[%s15797_s4 + $0x10] sm:$0xff] }
 0x2e2   : > { %13344 = vmatmul.mubr.msk.f32.vlgmr.msra.gmra.mrb[20].mxu0 %vm322_vm3, %v8848_v4  ;;  %13136 = vmatmul.mubr.msk.f32.vlgmr.msra.gmra.mrb[16].mxu1 %vm322_vm3, %v7218_v23  ;;  %v9309_v4 = vld [vmem:[#allocation3 + $0x105] sm:$0xff]  ;;  %v9820_v23 = vld [vmem:[#allocation3 + $0x111] sm:$0xff] }
 0x2e3   : > { %13346 = vmatprep.mubr.msk.f32.mxu0 %vm322_vm3, %v8849_v5  ;;  %13160 = vmatpush3.msra.mxu1 %v15409_v3  ;;  %v7456_v5 = vld [vmem:[#allocation3 + $0x86] sm:$0xff] }
 0x2e4   : > { %13138 = vmatprep.mubr.msk.f32.mxu1 %vm322_vm3, %v7219_v25  ;;  %13368 = vmatpush3.msra.mxu0 %v15368_v41  ;;  %v9527_v25 = vld [vmem:[#allocation3 + $0xc6] sm:$0xff] }
 0x2e5   : > { %13419 = vmatprep.subr.mxu1 %v11631_v24  ;;  %13393 = vmatprep.subr.mxu0 %v15409_v3 }
 0x2e6   : > { %13347 = vmatmul.mubr.msk.f32.gmra.mrb[22].mxu0 %vm322_vm3, %v8850_v6  ;;  %13139 = vmatmul.mubr.msk.f32.gmra.mrb[18].mxu1 %vm322_vm3, %v7220_v26  ;;  %v9310_v6 = vld [vmem:[#allocation3 + $0x10d] sm:$0xff]  ;;  %v9821_v26 = vld [vmem:[#allocation3 + $0x119] sm:$0x3f] }
 0x2e7   : > { %13349 = vmatprep.mubr.msk.f32.mxu0 %vm322_vm3, %v8851_v7  ;;  %13141 = vmatprep.mubr.msk.f32.mxu1 %vm322_vm3, %v7221_v28  ;;  %v7457_v7 = vld [vmem:[#allocation3 + $0x8e] sm:$0xff]  ;;  %v9813_v28 = vld [vmem:[#allocation3 + $0x100] sm:$0xff] }
 0x2ea   : > { %13350 = vmatmul.mubr.msk.f32.gmra.mrb[24].mxu0 %vm322_vm3, %v8852_v8  ;;  %13142 = vmatmul.mubr.msk.f32.gmra.mrb[20].mxu1 %vm322_vm3, %v7222_v30  ;;  %v9311_v8 = vld [vmem:[#allocation3 + $0x115] sm:$0xff] }
 0x2eb   : > { %13352 = vmatprep.mubr.msk.f32.mxu0 %vm322_vm3, %v8853_v13  ;;  %13144 = vmatprep.mubr.msk.f32.mxu1 %vm322_vm3, %v7223_v32  ;;  %v7458_v13 = vld [vmem:[#allocation3 + $0x96] sm:$0xff]  ;;  %v9528_v30 = vld [vmem:[#allocation3 + $0xce] sm:$0xff] }
 0x2ec   : > { %v9529_v32 = vld [vmem:[#allocation3 + $0xd6] sm:$0xff] }
 0x2ee   : > { %13353 = vmatmul.mubr.msk.f32.gmra.mrb[26].mxu0 %vm322_vm3, %v8854_v11  ;;  %13145 = vmatmul.mubr.msk.f32.gmra.mrb[22].mxu1 %vm322_vm3, %v7224_v34  ;;  %v9312_v11 = vld [vmem:[#allocation3 + $0x11d] sm:$0xff]  ;;  %v9814_v34 = vld [vmem:[#allocation3 + $0x108] sm:$0xff] }
 0x2ef   : > { %13355 = vmatprep.mubr.msk.f32.mxu0 %vm322_vm3, %v8855_v18  ;;  %13147 = vmatprep.mubr.msk.f32.mxu1 %vm322_vm3, %v7225_v35  ;;  %v7459_v18 = vld [vmem:[#allocation3 + $0x9e] sm:$0xff]  ;;  %v11645_v35 = vld [vmem:[%s15797_s4 + $0x18] sm:$0xff] }
 0x2f2   : > { %13356 = vmatmul.mubr.msk.f32.gmra.mrb[28].mxu0 %vm322_vm3, %v8856_v19  ;;  %13148 = vmatmul.mubr.msk.f32.gmra.mrb[24].mxu1 %vm322_vm3, %v7226_v36  ;;  %v9523_v19 = vld [vmem:[#allocation3 + $0xa6] sm:$0xff]  ;;  %v9815_v36 = vld [vmem:[#allocation3 + $0x110] sm:$0xff] }
 0x2f3   : > { %13358 = vmatprep.mubr.msk.f32.mxu0 %vm322_vm3, %v8857_v20  ;;  %13150 = vmatprep.mubr.msk.f32.mxu1 %vm322_vm3, %v7227_v38  ;;  %v9818_v20 = vld [vmem:[#allocation3 + $0x101] sm:$0xff] }
 0x2f4   : > { %v9530_v38 = vld [vmem:[#allocation3 + $0xde] sm:$0xff] }
 0x2f6   : > { %13359 = vmatmul.mubr.msk.f32.gmra.mrb[30].mxu0 %vm322_vm3, %v8858_v21  ;;  %13151 = vmatmul.mubr.msk.f32.gmra.mrb[26].mxu1 %vm322_vm3, %v7228_v39  ;;  %v9524_v21 = vld [vmem:[#allocation3 + $0xae] sm:$0xff]  ;;  %v9531_v39 = vld [vmem:[#allocation3 + $0xe6] sm:$0xff] }
 0x2f7   : > { %13361 = vmatprep.mubr.msk.f32.mxu0 %vm322_vm3, %v8859_v10  ;;  %13153 = vmatprep.mubr.msk.f32.mxu1 %vm322_vm3, %v7229_v40  ;;  %v9525_v10 = vld [vmem:[#allocation3 + $0xb6] sm:$0xff] }
 0x2f8   : > { %v9816_v40 = vld [vmem:[#allocation3 + $0x118] sm:$0x3f] }
 0x2fa   : > { %13362 = vmatmul.mubr.msk.f32.gmra.mrb[32].mxu0 %vm322_vm3, %v8860_v1  ;;  %13154 = vmatmul.mubr.msk.f32.gmra.mrb[28].mxu1 %vm322_vm3, %v7230_v42  ;;  %v9819_v1 = vld [vmem:[#allocation3 + $0x109] sm:$0xff] }
 0x2fb   : > { %13364 = vmatprep.mubr.msk.f32.mxu0 %vm322_vm3, %v15478_v43  ;;  %13156 = vmatprep.mubr.msk.f32.mxu1 %vm322_vm3, %v7231_v44  ;;  %v9532_v42 = vld [vmem:[#allocation3 + $0xee] sm:$0xff]  ;;  %v9533_v44 = vld [vmem:[#allocation3 + $0xf6] sm:$0xff] }
 0x2fe   : > { %13365 = vmatmul.mubr.msk.f32.gmra.mrb[34].mxu0 %vm322_vm3, %v15484_v45  ;;  %13157 = vmatmul.mubr.msk.f32.gmra.mrb[30].mxu1 %vm322_vm3, %v7232_v47  ;;  %v10019_v47 = vld [vmem:[#allocation3 + $0x112] sm:$0xff] }
 0x2ff   : > { %13369 = vmatprep.mubr.msk.f32.mxu0 %vm322_vm3, %v9297_v48  ;;  %13161 = vmatprep.mubr.msk.f32.mxu1 %vm322_vm3, %v7444_v49  ;;  %v9534_v48 = vld [vmem:[#allocation3 + $0xfe] sm:$0xff]  ;;  %v9535_v49 = vld [vmem:[#allocation3 + $0x106] sm:$0xff] }
 0x302   : > { %13370 = vmatmul.mubr.msk.f32.vlgmr.msra.gmra.mrb[20].mxu0 %vm322_vm3, %v9298_v15  ;;  %13162 = vmatmul.mubr.msk.f32.vlgmr.msra.gmra.mrb[16].mxu1 %vm322_vm3, %v7445_v50  ;;  %v9536_v15 = vld [vmem:[#allocation3 + $0x10e] sm:$0xff]  ;;  %v10124_v50 = vld [vmem:[#allocation3 + $0x11a] sm:$0xff] }
 0x303   : > { %13372 = vmatprep.mubr.msk.f32.mxu0 %vm322_vm3, %v9299_v51  ;;  %13420 = vmatpush3.msra.mxu1 %v11631_v24  ;;  %v9526_v24 = vld [vmem:[#allocation3 + $0xbe] sm:$0xff] }
 0x304   : > { %13164 = vmatprep.mubr.msk.f32.mxu1 %vm322_vm3, %v7446_v9  ;;  %13394 = vmatpush3.msra.mxu0 %v15409_v3  ;;  %v10125_v51 = vld [vmem:[#allocation3 + $0x122] sm:$0xff]  ;;  %v10126_v9 = vld [vmem:[#allocation3 + $0x12a] sm:$0x3f] }
 0x305   : > { %13427 = vmatprep.subr.mxu1 %v15495_v17 }
 0x306   : > { %13373 = vmatmul.mubr.msk.f32.gmra.mrb[22].mxu0 %vm322_vm3, %v9300_v52  ;;  %13165 = vmatmul.mubr.msk.f32.gmra.mrb[18].mxu1 %vm322_vm3, %v7447_v53  ;;  %v10229_v52 = vld [vmem:[#allocation3 + $0x113] sm:$0xff]  ;;  %v10230_v53 = vld [vmem:[#allocation3 + $0x11b] sm:$0xff] }
 0x307   : > { %13375 = vmatprep.mubr.msk.f32.mxu0 %vm322_vm3, %v9301_v54  ;;  %13167 = vmatprep.mubr.msk.f32.mxu1 %vm322_vm3, %v7448_v55  ;;  %v10231_v54 = vld [vmem:[#allocation3 + $0x123] sm:$0xff] }
 0x308   : > { %v10337_v55 = vld [vmem:[#allocation3 + $0x124] sm:$0xff] }
 0x30a   : > { %13376 = vmatmul.mubr.msk.f32.gmra.mrb[24].mxu0 %vm322_vm3, %v9302_v56  ;;  %13168 = vmatmul.mubr.msk.f32.gmra.mrb[20].mxu1 %vm322_vm3, %v7449_v57  ;;  %v10443_v56 = vld [vmem:[#allocation3 + $0x134] sm:$0xff]  ;;  %v10442_v57 = vld [vmem:[#allocation3 + $0x12c] sm:$0xff] }
 0x30b   : > { %13378 = vmatprep.mubr.msk.f32.mxu0 %vm322_vm3, %v9303_v58  ;;  %13170 = vmatprep.mubr.msk.f32.mxu1 %vm322_vm3, %v7450_v37  ;;  %v10548_v58 = vld [vmem:[#allocation3 + $0x12d] sm:$0xff]  ;;  %v10550_v37 = vld [vmem:[#allocation3 + $0x13d] sm:$0x3f] }
 0x30e   : > { %13379 = vmatmul.mubr.msk.f32.gmra.mrb[26].mxu0 %vm322_vm3, %v9304_v59  ;;  %13171 = vmatmul.mubr.msk.f32.gmra.mrb[22].mxu1 %vm322_vm3, %v7451_v27  ;;  %v10655_v59 = vld [vmem:[#allocation3 + $0x136] sm:$0xff]  ;;  %v10654_v27 = vld [vmem:[#allocation3 + $0x12e] sm:$0xff] }
 0x30f   : > { %13381 = vmatprep.mubr.msk.f32.mxu0 %vm322_vm3, %v9305_v12  ;;  %13173 = vmatprep.mubr.msk.f32.mxu1 %vm322_vm3, %v7452_v61  ;;  %v10656_v12 = vld [vmem:[#allocation3 + $0x13e] sm:$0x3f]  ;;  %v15609_v61 = vld [vmem:[%s15799_s6] ss:$0 sm:$0xff] }
 0x312   : > { %13382 = vmatmul.mubr.msk.f32.gmra.mrb[28].mxu0 %vm322_vm3, %v9306_v29  ;;  %13174 = vmatmul.mubr.msk.f32.gmra.mrb[24].mxu1 %vm322_vm3, %v7453_v62 }
 0x313   : > { %13384 = vmatprep.mubr.msk.f32.mxu0 %vm322_vm3, %v9307_v63  ;;  %13176 = vmatprep.mubr.msk.f32.mxu1 %vm322_vm3, %v7454_v46 }
 0x316   : > { %13385 = vmatmul.mubr.msk.f32.gmra.mrb[30].mxu0 %vm322_vm3, %v9308_v0  ;;  %13177 = vmatmul.mubr.msk.f32.gmra.mrb[26].mxu1 %vm322_vm3, %v7455_v2 }
 0x317   : > { %13387 = vmatprep.mubr.msk.f32.mxu0 %vm322_vm3, %v9309_v4  ;;  %13179 = vmatprep.mubr.msk.f32.mxu1 %vm322_vm3, %v7456_v5 }
 0x31a   : > { %13388 = vmatmul.mubr.msk.f32.gmra.mrb[32].mxu0 %vm322_vm3, %v9310_v6  ;;  %13180 = vmatmul.mubr.msk.f32.gmra.mrb[28].mxu1 %vm322_vm3, %v7457_v7 }
 0x31b   : > { %13390 = vmatprep.mubr.msk.f32.mxu0 %vm322_vm3, %v9311_v8  ;;  %13182 = vmatprep.mubr.msk.f32.mxu1 %vm322_vm3, %v7458_v13 }
 0x31e   : > { %13391 = vmatmul.mubr.msk.f32.gmra.mrb[34].mxu0 %vm322_vm3, %v9312_v11  ;;  %13183 = vmatmul.mubr.msk.f32.gmra.mrb[30].mxu1 %vm322_vm3, %v7459_v18 }
 0x31f   : > { %13395 = vmatprep.mubr.msk.f32.mxu0 %vm322_vm3, %v9523_v19  ;;  %13421 = vmatprep.mubr.msk.f32.mxu1 %vm322_vm3, %v9818_v20 }
 0x322   : > { %13396 = vmatmul.mubr.msk.f32.vlgmr.msra.gmra.mrb[20].mxu0 %vm322_vm3, %v9524_v21  ;;  %13422 = vmatmul.mubr.msk.f32.vlgmr.msra.gmra.mrb[32].mxu1 %vm322_vm3, %v9819_v1 }
 0x323   : > { %13398 = vmatprep.mubr.msk.f32.mxu0 %vm322_vm3, %v9525_v10  ;;  %13428 = vmatpush3.msra.mxu1 %v15495_v17  ;;  %v9538_v17 = vld [vmem:[#allocation3 + $0x11e] sm:$0xff] }
 0x324   : > { %13424 = vmatprep.mubr.msk.f32.mxu1 %vm322_vm3, %v9820_v23  ;;  %13435 = vmatprep.subr.mxu1 %v11640_v22 }
 0x326   : > { %13399 = vmatmul.mubr.msk.f32.gmra.mrb[22].mxu0 %vm322_vm3, %v9526_v24  ;;  %13425 = vmatmul.mubr.msk.f32.gmra.mrb[34].mxu1 %vm322_vm3, %v9821_v26 }
 0x327   : > { %13401 = vmatprep.mubr.msk.f32.mxu0 %vm322_vm3, %v9527_v25  ;;  %13429 = vmatprep.mubr.msk.f32.mxu1 %vm322_vm3, %v9813_v28 }
 0x32a   : > { %13402 = vmatmul.mubr.msk.f32.gmra.mrb[24].mxu0 %vm322_vm3, %v9528_v30  ;;  %13430 = vmatmul.mubr.msk.f32.vlgmr.msra.gmra.mrb[32].mxu1 %vm322_vm3, %v9814_v34 }
 0x32b   : > { %13404 = vmatprep.mubr.msk.f32.mxu0 %vm322_vm3, %v9529_v32  ;;  %13436 = vmatpush3.msra.mxu1 %v11640_v22 }
 0x32c   : > { %13432 = vmatprep.mubr.msk.f32.mxu1 %vm322_vm3, %v9815_v36  ;;  %13443 = vmatprep.subr.mxu1 %v11645_v35 }
 0x32e   : > { %13405 = vmatmul.mubr.msk.f32.gmra.mrb[26].mxu0 %vm322_vm3, %v9530_v38  ;;  %13433 = vmatmul.mubr.msk.f32.gmra.mrb[34].mxu1 %vm322_vm3, %v9816_v40 }
 0x32f   : > { %13407 = vmatprep.mubr.msk.f32.mxu0 %vm322_vm3, %v9531_v39  ;;  %13437 = vmatprep.mubr.msk.f32.mxu1 %vm322_vm3, %v15351_v31  ;;  %v10020_v31 = vld [vmem:[#allocation3 + $0x11a] sm:$0x3f] }
 0x332   : > { %13408 = vmatmul.mubr.msk.f32.gmra.mrb[28].mxu0 %vm322_vm3, %v9532_v42  ;;  %13438 = vmatmul.mubr.msk.f32.vlgmr.msra.gmra.mrb[32].mxu1 %vm322_vm3, %v15357_v33  ;;  %v9537_v33 = vld [vmem:[#allocation3 + $0x116] sm:$0xff] }
 0x333   : > { %13410 = vmatprep.mubr.msk.f32.mxu0 %vm322_vm3, %v9533_v44  ;;  %13444 = vmatpush3.msra.mxu1 %v11645_v35 }
 0x334   : > { %13440 = vmatprep.mubr.msk.f32.mxu1 %vm322_vm3, %v10019_v47  ;;  %13451 = vmatprep.subr.mxu1 %v15177_v14 }
 0x336   : > { %13411 = vmatmul.mubr.msk.f32.gmra.mrb[30].mxu0 %vm322_vm3, %v9534_v48  ;;  %13441 = vmatmul.mubr.msk.f32.gmra.mrb[34].mxu1 %vm322_vm3, %v10020_v31 }
 0x337   : > { %13413 = vmatprep.mubr.msk.f32.mxu0 %vm322_vm3, %v9535_v49  ;;  %13445 = vmatprep.mubr.msk.f32.mxu1 %vm322_vm3, %v10019_v47 }
 0x33a   : > { %13414 = vmatmul.mubr.msk.f32.gmra.mrb[32].mxu0 %vm322_vm3, %v9536_v15  ;;  %13446 = vmatmul.mubr.msk.f32.vlgmr.msra.gmra.mrb[32].mxu1 %vm322_vm3, %v10124_v50 }
 0x33b   : > { %13416 = vmatprep.mubr.msk.f32.mxu0 %vm322_vm3, %v9537_v33  ;;  %13452 = vmatpush3.msra.mxu1 %v15177_v14  ;;  %v10232_v14 = vld [vmem:[#allocation3 + $0x12b] sm:$0x3f] }
 0x33c   : > { %13448 = vmatprep.mubr.msk.f32.mxu1 %vm322_vm3, %v10125_v51  ;;  %13459 = vmatprep.subr.mxu1 %v15269_v60 }
 0x33e   : > { %13417 = vmatmul.mubr.msk.f32.gmra.mrb[34].mxu0 %vm322_vm3, %v9538_v17  ;;  %13449 = vmatmul.mubr.msk.f32.gmra.mrb[34].mxu1 %vm322_vm3, %v10126_v9 }
 0x33f   : > { %13453 = vmatprep.mubr.msk.f32.mxu1 %vm322_vm3, %v10229_v52 }
 0x342   : > { %13454 = vmatmul.mubr.msk.f32.vlgmr.msra.gmra.mrb[32].mxu1 %vm322_vm3, %v10230_v53 }
 0x343   : > { %13460 = vmatpush3.msra.mxu1 %v15269_v60  ;;  %13456 = vmatprep.mubr.msk.f32.mxu1 %vm322_vm3, %v10231_v54  ;;  %v10338_v60 = vld [vmem:[#allocation3 + $0x12c] sm:$0x3f] }
 0x344   : > { %13467 = vmatprep.subr.mxu1 %v15321_v16 }
 0x346   : > { %13457 = vmatmul.mubr.msk.f32.gmra.mrb[34].mxu1 %vm322_vm3, %v10232_v14 }
 0x347   : > { %13461 = vmatprep.mubr.msk.f32.mxu1 %vm322_vm3, %v15478_v43  ;;  %v10444_v43 = vld [vmem:[#allocation3 + $0x13c] sm:$0x3f] }
 0x34a   : > { %13462 = vmatmul.mubr.msk.f32.vlgmr.msra.gmra.mrb[32].mxu1 %vm322_vm3, %v15484_v45  ;;  %v10549_v45 = vld [vmem:[#allocation3 + $0x135] sm:$0xff] }
 0x34b   : > { %13468 = vmatpush3.msra.mxu1 %v15321_v16  ;;  %13464 = vmatprep.mubr.msk.f32.mxu1 %vm322_vm3, %v10337_v55  ;;  %v10547_v16 = vld [vmem:[#allocation3 + $0x125] sm:$0xff] }
 0x34c   : > { %13475 = vmatprep.subr.mxu1 %v15368_v41 }
 0x34e   : > { %13465 = vmatmul.mubr.msk.f32.gmra.mrb[34].mxu1 %vm322_vm3, %v10338_v60 }
 0x34f   : > { %13469 = vmatprep.mubr.msk.f32.mxu1 %vm322_vm3, %v10337_v55 }
 0x352   : > { %13470 = vmatmul.mubr.msk.f32.vlgmr.msra.gmra.mrb[32].mxu1 %vm322_vm3, %v10442_v57 }
 0x353   : > { %13476 = vmatpush3.msra.mxu1 %v15368_v41  ;;  %13472 = vmatprep.mubr.msk.f32.mxu1 %vm322_vm3, %v10443_v56  ;;  %v10653_v41 = vld [vmem:[#allocation3 + $0x126] sm:$0xff] }
 0x354   : > { %13483 = vmatprep.subr.mxu1 %v15409_v3 }
 0x356   : > { %13473 = vmatmul.mubr.msk.f32.gmra.mrb[34].mxu1 %vm322_vm3, %v10444_v43 }
 0x357   : > { %13477 = vmatprep.mubr.msk.f32.mxu1 %vm322_vm3, %v10547_v16 }
 0x35a   : > { %13478 = vmatmul.mubr.msk.f32.vlgmr.msra.gmra.mrb[32].mxu1 %vm322_vm3, %v10548_v58 }
 0x35b   : > { %13484 = vmatpush3.msra.mxu1 %v15409_v3  ;;  %13480 = vmatprep.mubr.msk.f32.mxu1 %vm322_vm3, %v10549_v45  ;;  %v15604_v3 = vld [vmem:[%s15798_s5] ss:$0 sm:$0xff] }
 0x35e   : > { %13481 = vmatmul.mubr.msk.f32.gmra.mrb[34].mxu1 %vm322_vm3, %v10550_v37 }
 0x35f   : > { %13485 = vmatprep.mubr.msk.f32.mxu1 %vm322_vm3, %v10653_v41 }
 0x362   : > { %13486 = vmatmul.mubr.msk.f32.vlgmr.msra.gmra.mrb[32].mxu1 %vm322_vm3, %v10654_v27 }
 0x363   : > { %13488 = vmatprep.mubr.msk.f32.mxu1 %vm322_vm3, %v10655_v59 }
 0x366   : > { %13489 = vmatmul.mubr.msk.f32.gmra.mrb[34].mxu1 %vm322_vm3, %v10656_v12 }
 0x3d5   : > { %v13163_v29 = vpop.f32.mrb[16].mxu1 }
 0x3d6   : > { %v7678_v62 = vmul.f32 %v13163_v29, %v15604_v3  ;;  %v7576_v63 = vpop.f32.mrb[17].mxu1 }
 0x3d7   : > { %v7677_v46 = vmul.f32 %v15604_v3, %v7576_v63 }
 0x3d8   : > { %v7700_v0 = vadd.f32 %v15609_v61, %v7678_v62 }
 0x3d9   : > { %v7699_v2 = vadd.f32 %v15609_v61, %v7677_v46  ;;  %v13166_v4 = vpop.f32.mrb[18].mxu1 }
 0x3da   : > { %v7716_v5 = vmax.f32 %v7700_v0, 0.0  ;;  %v7680_v6 = vmul.f32 %v13166_v4, %v15604_v3  ;;  %v7586_v7 = vpop.f32.mrb[19].mxu1 }
 0x3db   : > { %v7715_v8 = vmax.f32 %v7699_v2, 0.0  ;;  %v7679_v13 = vmul.f32 %v15604_v3, %v7586_v7 }
 0x3dc   : > { %7732 = vst.msk [vmem:[#allocation4 + $0x8] sm:$0xff] %vm322_vm3, %v7716_v5  ;;  %v7702_v11 = vadd.f32 %v15609_v61, %v7680_v6 }
 0x3dd   : > { %7731 = vst.msk [vmem:[#allocation4] sm:$0xff] %vm322_vm3, %v7715_v8  ;;  %v7701_v18 = vadd.f32 %v15609_v61, %v7679_v13  ;;  %v13169_v19 = vpop.f32.mrb[20].mxu1 }
 0x3de   : > { %v7718_v20 = vmax.f32 %v7702_v11, 0.0  ;;  %v7682_v21 = vmul.f32 %v13169_v19, %v15604_v3  ;;  %v7596_v10 = vpop.f32.mrb[21].mxu1 }
 0x3df   : > { %v7717_v1 = vmax.f32 %v7701_v18, 0.0  ;;  %v7681_v22 = vmul.f32 %v15604_v3, %v7596_v10 }
 0x3e0   : > { %7734 = vst.msk [vmem:[#allocation4 + $0x18] sm:$0xff] %vm322_vm3, %v7718_v20  ;;  %v7704_v23 = vadd.f32 %v15609_v61, %v7682_v21 }
 0x3e1   : > { %7733 = vst.msk [vmem:[#allocation4 + $0x10] sm:$0xff] %vm322_vm3, %v7717_v1  ;;  %v7703_v24 = vadd.f32 %v15609_v61, %v7681_v22  ;;  %v13172_v25 = vpop.f32.mrb[22].mxu1 }
 0x3e2   : > { %v7720_v26 = vmax.f32 %v7704_v23, 0.0  ;;  %v7684_v28 = vmul.f32 %v13172_v25, %v15604_v3  ;;  %v7606_v30 = vpop.f32.mrb[23].mxu1 }
 0x3e3   : > { %v10776_v32 = vld [vmem:[#allocation4 + $0x8] sm:$0xff]  ;;  %v7719_v34 = vmax.f32 %v7703_v24, 0.0  ;;  %v7683_v35 = vmul.f32 %v15604_v3, %v7606_v30 }
 0x3e4   : > { %10778 = vst.msk [vmem:[%s15630_s19 + $0x8] sm:$0xff] %vm322_vm3, %v10776_v32  ;;  %v10775_v36 = vld [vmem:[#allocation4] sm:$0xff]  ;;  %7736 = vst.msk [vmem:[#allocation4 + $0x28] sm:$0xff] %vm322_vm3, %v7720_v26  ;;  %v7706_v38 = vadd.f32 %v15609_v61, %v7684_v28 }
 0x3e5   : > { %10777 = vst.msk [vmem:[%s15630_s19] sm:$0xff] %vm322_vm3, %v10775_v36  ;;  %7735 = vst.msk [vmem:[#allocation4 + $0x20] sm:$0xff] %vm322_vm3, %v7719_v34  ;;  %v7705_v39 = vadd.f32 %v15609_v61, %v7683_v35  ;;  %v13175_v40 = vpop.f32.mrb[24].mxu1 }
 0x3e6   : > { %v7722_v42 = vmax.f32 %v7706_v38, 0.0  ;;  %v7686_v44 = vmul.f32 %v13175_v40, %v15604_v3  ;;  %v7616_v47 = vpop.f32.mrb[25].mxu1 }
 0x3e7   : > { %v7721_v48 = vmax.f32 %v7705_v39, 0.0  ;;  %v7685_v49 = vmul.f32 %v15604_v3, %v7616_v47 }
 0x3e8   : > { %v10779_v31 = vld [vmem:[#allocation4 + $0x12] sm:$0xff]  ;;  %7738 = vst.msk [vmem:[#allocation4 + $0x38] sm:$0xff] %vm322_vm3, %v7722_v42  ;;  %v7708_v15 = vadd.f32 %v15609_v61, %v7686_v44 }
 0x3e9   : > { %11675 = vst.msk [vmem:[%s15630_s19 + $0x10] sm:$0xff] %vm322_vm3, %v10779_v31  ;;  %7737 = vst.msk [vmem:[#allocation4 + $0x30] sm:$0xff] %vm322_vm3, %v7721_v48  ;;  %v7707_v33 = vadd.f32 %v15609_v61, %v7685_v49  ;;  %v13178_v50 = vpop.f32.mrb[26].mxu1 }
 0x3ea   : > { %v7724_v51 = vmax.f32 %v7708_v15, 0.0  ;;  %v7688_v17 = vmul.f32 %v13178_v50, %v15604_v3  ;;  %v7626_v9 = vpop.f32.mrb[27].mxu1 }
 0x3eb   : > { %v7723_v52 = vmax.f32 %v7707_v33, 0.0  ;;  %v7687_v53 = vmul.f32 %v15604_v3, %v7626_v9 }
 0x3ec   : > { %v10780_v54 = vld [vmem:[#allocation4 + $0x1a] sm:$0xff]  ;;  %v10784_v14 = vld [vmem:[#allocation4 + $0x24] sm:$0xff]  ;;  %7740 = vst.msk [vmem:[#allocation4 + $0x48] sm:$0xff] %vm322_vm3, %v7724_v51  ;;  %v7710_v55 = vadd.f32 %v15609_v61, %v7688_v17 }
 0x3ed   : > { %11676 = vst.msk [vmem:[%s15630_s19 + $0x18] sm:$0xff] %vm322_vm3, %v10780_v54  ;;  %11677 = vst.msk [vmem:[%s15630_s19 + $0x20] sm:$0xff] %vm322_vm3, %v10784_v14  ;;  %v7709_v60 = vadd.f32 %v15609_v61, %v7687_v53  ;;  %v13181_v56 = vpop.f32.mrb[28].mxu1 }
 0x3ee   : > { %7739 = vst.msk [vmem:[#allocation4 + $0x40] sm:$0xff] %vm322_vm3, %v7723_v52  ;;  %v7726_v57 = vmax.f32 %v7710_v55, 0.0  ;;  %v7690_v43 = vmul.f32 %v13181_v56, %v15604_v3  ;;  %v7636_v16 = vpop.f32.mrb[29].mxu1 }
 0x3ef   : > { %v7725_v45 = vmax.f32 %v7709_v60, 0.0  ;;  %v7689_v58 = vmul.f32 %v15604_v3, %v7636_v16 }
 0x3f0   : > { %v10785_v37 = vld [vmem:[#allocation4 + $0x2c] sm:$0xff]  ;;  %v10789_v41 = vld [vmem:[#allocation4 + $0x36] sm:$0xff]  ;;  %7742 = vst.msk [vmem:[#allocation4 + $0x58] sm:$0xff] %vm322_vm3, %v7726_v57  ;;  %v7712_v59 = vadd.f32 %v15609_v61, %v7690_v43 }
 0x3f1   : > { %11678 = vst.msk [vmem:[%s15630_s19 + $0x28] sm:$0xff] %vm322_vm3, %v10785_v37  ;;  %11679 = vst.msk [vmem:[%s15630_s19 + $0x30] sm:$0xff] %vm322_vm3, %v10789_v41  ;;  %v7711_v27 = vadd.f32 %v15609_v61, %v7689_v58  ;;  %v13184_v12 = vpop.f32.mrb[30].mxu1 }
 0x3f2   : > { %7741 = vst.msk [vmem:[#allocation4 + $0x50] sm:$0xff] %vm322_vm3, %v7725_v45  ;;  %v7728_v29 = vmax.f32 %v7712_v59, 0.0  ;;  %v7692_v62 = vmul.f32 %v13184_v12, %v15604_v3  ;;  %v7646_v63 = vpop.f32.mrb[31].mxu1 }
 0x3f3   : > { %v10794_v46 = vld [vmem:[#allocation4 + $0x48] sm:$0xff]  ;;  %v7727_v0 = vmax.f32 %v7711_v27, 0.0  ;;  %v7691_v2 = vmul.f32 %v15604_v3, %v7646_v63 }
 0x3f4   : > { %11681 = vst.msk [vmem:[%s15630_s19 + $0x40] sm:$0xff] %vm322_vm3, %v10794_v46  ;;  %7744 = vst.msk [vmem:[#allocation4 + $0x68] sm:$0xff] %vm322_vm3, %v7728_v29  ;;  %v7714_v5 = vadd.f32 %v15609_v61, %v7692_v62 }
 0x3f5   : > { %v10790_v4 = vld [vmem:[#allocation4 + $0x3e] sm:$0xff]  ;;  %v13397_v6 = vpop.f32.mrb[20].mxu0  ;;  %7743 = vst.msk [vmem:[#allocation4 + $0x60] sm:$0xff] %vm322_vm3, %v7727_v0  ;;  %v7713_v7 = vadd.f32 %v15609_v61, %v7691_v2 }
 0x3f6   : > { %11680 = vst.msk [vmem:[%s15630_s19 + $0x38] sm:$0xff] %vm322_vm3, %v10790_v4  ;;  %v9750_v8 = vmul.f32 %v13397_v6, %v15604_v3  ;;  %v9654_v13 = vpop.f32.mrb[21].mxu0  ;;  %v7730_v11 = vmax.f32 %v7714_v5, 0.0 }
 0x3f7   : > { %v9749_v18 = vmul.f32 %v15604_v3, %v9654_v13  ;;  %v7729_v19 = vmax.f32 %v7713_v7, 0.0 }
 0x3f8   : > { %v9766_v20 = vadd.f32 %v15609_v61, %v9750_v8  ;;  %7746 = vst.msk [vmem:[#allocation4 + $0x78] sm:$0xff] %vm322_vm3, %v7730_v11 }
 0x3f9   : > { %v10795_v21 = vld [vmem:[#allocation4 + $0x50] sm:$0xff]  ;;  %v9765_v10 = vadd.f32 %v15609_v61, %v9749_v18  ;;  %v13400_v1 = vpop.f32.mrb[22].mxu0  ;;  %7745 = vst.msk [vmem:[#allocation4 + $0x70] sm:$0xff] %vm322_vm3, %v7729_v19 }
 0x3fa   : > { %11682 = vst.msk [vmem:[%s15630_s19 + $0x48] sm:$0xff] %vm322_vm3, %v10795_v21  ;;  %v9782_v22 = vmax.f32 %v9766_v20, 0.0  ;;  %v9752_v23 = vmul.f32 %v13400_v1, %v15604_v3  ;;  %v9664_v24 = vpop.f32.mrb[23].mxu0 }
 0x3fb   : > { %v9781_v25 = vmax.f32 %v9765_v10, 0.0  ;;  %v9751_v26 = vmul.f32 %v15604_v3, %v9664_v24 }
 0x3fc   : > { %9798 = vst.msk [vmem:[#allocation4 + $0x88] sm:$0xff] %vm322_vm3, %v9782_v22  ;;  %v9768_v28 = vadd.f32 %v15609_v61, %v9752_v23  ;;  %v10799_v30 = vld [vmem:[#allocation4 + $0x5a] sm:$0xff]  ;;  %v10800_v32 = vld [vmem:[#allocation4 + $0x62] sm:$0xff] }
 0x3fd   : > { %9797 = vst.msk [vmem:[#allocation4 + $0x80] sm:$0xff] %vm322_vm3, %v9781_v25  ;;  %v9767_v34 = vadd.f32 %v15609_v61, %v9751_v26  ;;  %v13403_v35 = vpop.f32.mrb[24].mxu0  ;;  %11683 = vst.msk [vmem:[%s15630_s19 + $0x50] sm:$0xff] %vm322_vm3, %v10799_v30 }
 0x3fe   : > { %11684 = vst.msk [vmem:[%s15630_s19 + $0x58] sm:$0xff] %vm322_vm3, %v10800_v32  ;;  %v9784_v36 = vmax.f32 %v9768_v28, 0.0  ;;  %v9754_v38 = vmul.f32 %v13403_v35, %v15604_v3  ;;  %v9674_v39 = vpop.f32.mrb[25].mxu0 }
 0x3ff   : > { %v9783_v40 = vmax.f32 %v9767_v34, 0.0  ;;  %v9753_v42 = vmul.f32 %v15604_v3, %v9674_v39 }
 0x400   : > { %9800 = vst.msk [vmem:[#allocation4 + $0x98] sm:$0xff] %vm322_vm3, %v9784_v36  ;;  %v9770_v44 = vadd.f32 %v15609_v61, %v9754_v38  ;;  %v10804_v47 = vld [vmem:[#allocation4 + $0x6c] sm:$0xff]  ;;  %v10805_v48 = vld [vmem:[#allocation4 + $0x74] sm:$0xff] }
 0x401   : > { %9799 = vst.msk [vmem:[#allocation4 + $0x90] sm:$0xff] %vm322_vm3, %v9783_v40  ;;  %v9769_v49 = vadd.f32 %v15609_v61, %v9753_v42  ;;  %v13406_v31 = vpop.f32.mrb[26].mxu0  ;;  %11685 = vst.msk [vmem:[%s15630_s19 + $0x60] sm:$0xff] %vm322_vm3, %v10804_v47 }
 0x402   : > { %11686 = vst.msk [vmem:[%s15630_s19 + $0x68] sm:$0xff] %vm322_vm3, %v10805_v48  ;;  %v9786_v15 = vmax.f32 %v9770_v44, 0.0  ;;  %v9756_v33 = vmul.f32 %v13406_v31, %v15604_v3  ;;  %v9684_v50 = vpop.f32.mrb[27].mxu0 }
 0x403   : > { %v9785_v51 = vmax.f32 %v9769_v49, 0.0  ;;  %v9755_v17 = vmul.f32 %v15604_v3, %v9684_v50 }
 0x404   : > { %v10809_v9 = vld [vmem:[#allocation4 + $0x7e] sm:$0xff]  ;;  %v10810_v52 = vld [vmem:[#allocation4 + $0x86] sm:$0xff]  ;;  %9802 = vst.msk [vmem:[#allocation4 + $0xa8] sm:$0xff] %vm322_vm3, %v9786_v15  ;;  %v9772_v53 = vadd.f32 %v15609_v61, %v9756_v33 }
 0x405   : > { %11687 = vst.msk [vmem:[%s15630_s19 + $0x70] sm:$0xff] %vm322_vm3, %v10809_v9  ;;  %11688 = vst.msk [vmem:[%s15630_s19 + $0x78] sm:$0xff] %vm322_vm3, %v10810_v52  ;;  %v9771_v54 = vadd.f32 %v15609_v61, %v9755_v17  ;;  %v13409_v14 = vpop.f32.mrb[28].mxu0 }
 0x406   : > { %9801 = vst.msk [vmem:[#allocation4 + $0xa0] sm:$0xff] %vm322_vm3, %v9785_v51  ;;  %v9788_v55 = vmax.f32 %v9772_v53, 0.0  ;;  %v9758_v60 = vmul.f32 %v13409_v14, %v15604_v3  ;;  %v9694_v56 = vpop.f32.mrb[29].mxu0 }
 0x407   : > { %v10815_v57 = vld [vmem:[#allocation4 + $0x98] sm:$0xff]  ;;  %v9787_v43 = vmax.f32 %v9771_v54, 0.0  ;;  %v9757_v16 = vmul.f32 %v15604_v3, %v9694_v56 }
 0x408   : > { %11690 = vst.msk [vmem:[%s15630_s19 + $0x88] sm:$0xff] %vm322_vm3, %v10815_v57  ;;  %v10814_v45 = vld [vmem:[#allocation4 + $0x90] sm:$0xff]  ;;  %9804 = vst.msk [vmem:[#allocation4 + $0xb8] sm:$0xff] %vm322_vm3, %v9788_v55  ;;  %v9774_v58 = vadd.f32 %v15609_v61, %v9758_v60 }
 0x409   : > { %11689 = vst.msk [vmem:[%s15630_s19 + $0x80] sm:$0xff] %vm322_vm3, %v10814_v45  ;;  %9803 = vst.msk [vmem:[#allocation4 + $0xb0] sm:$0xff] %vm322_vm3, %v9787_v43  ;;  %v9773_v37 = vadd.f32 %v15609_v61, %v9757_v16  ;;  %v13412_v41 = vpop.f32.mrb[30].mxu0 }
 0x40a   : > { %v9790_v59 = vmax.f32 %v9774_v58, 0.0  ;;  %v9760_v27 = vmul.f32 %v13412_v41, %v15604_v3  ;;  %v9704_v12 = vpop.f32.mrb[31].mxu0 }
 0x40b   : > { %v9789_v29 = vmax.f32 %v9773_v37, 0.0  ;;  %v9759_v62 = vmul.f32 %v15604_v3, %v9704_v12 }
 0x40c   : > { %9806 = vst.msk [vmem:[#allocation4 + $0xc8] sm:$0xff] %vm322_vm3, %v9790_v59  ;;  %v9776_v46 = vadd.f32 %v15609_v61, %v9760_v27 }
 0x40d   : > { %v10819_v63 = vld [vmem:[#allocation4 + $0xa2] sm:$0xff]  ;;  %9805 = vst.msk [vmem:[#allocation4 + $0xc0] sm:$0xff] %vm322_vm3, %v9789_v29  ;;  %v9775_v0 = vadd.f32 %v15609_v61, %v9759_v62  ;;  %v13415_v2 = vpop.f32.mrb[32].mxu0 }
 0x40e   : > { %11691 = vst.msk [vmem:[%s15630_s19 + $0x90] sm:$0xff] %vm322_vm3, %v10819_v63  ;;  %v9792_v4 = vmax.f32 %v9776_v46, 0.0  ;;  %v9762_v5 = vmul.f32 %v13415_v2, %v15604_v3  ;;  %v9714_v6 = vpop.f32.mrb[33].mxu0 }
 0x40f   : > { %v9791_v7 = vmax.f32 %v9775_v0, 0.0  ;;  %v9761_v8 = vmul.f32 %v15604_v3, %v9714_v6 }
 0x410   : > { %v10820_v13 = vld [vmem:[#allocation4 + $0xaa] sm:$0xff]  ;;  %v10824_v11 = vld [vmem:[#allocation4 + $0xb4] sm:$0xff]  ;;  %9808 = vst.msk [vmem:[#allocation4 + $0xd8] sm:$0xff] %vm322_vm3, %v9792_v4  ;;  %v9778_v18 = vadd.f32 %v15609_v61, %v9762_v5 }
 0x411   : > { %11692 = vst.msk [vmem:[%s15630_s19 + $0x98] sm:$0xff] %vm322_vm3, %v10820_v13  ;;  %11693 = vst.msk [vmem:[%s15630_s19 + $0xa0] sm:$0xff] %vm322_vm3, %v10824_v11  ;;  %v9777_v19 = vadd.f32 %v15609_v61, %v9761_v8  ;;  %v13418_v20 = vpop.f32.mrb[34].mxu0 }
 0x412   : > { %9807 = vst.msk [vmem:[#allocation4 + $0xd0] sm:$0xff] %vm322_vm3, %v9791_v7  ;;  %v9794_v21 = vmax.f32 %v9778_v18, 0.0  ;;  %v9764_v10 = vmul.f32 %v13418_v20, %v15604_v3  ;;  %v9724_v1 = vpop.f32.mrb[35].mxu0 }
 0x413   : > { %v9793_v22 = vmax.f32 %v9777_v19, 0.0  ;;  %v9763_v23 = vmul.f32 %v15604_v3, %v9724_v1 }
 0x414   : > { %v10825_v24 = vld [vmem:[#allocation4 + $0xbc] sm:$0xff]  ;;  %v10829_v25 = vld [vmem:[#allocation4 + $0xc6] sm:$0xff]  ;;  %9810 = vst.msk [vmem:[#allocation4 + $0xe8] sm:$0xff] %vm322_vm3, %v9794_v21  ;;  %v9780_v26 = vadd.f32 %v15609_v61, %v9764_v10 }
 0x415   : > { %11694 = vst.msk [vmem:[%s15630_s19 + $0xa8] sm:$0xff] %vm322_vm3, %v10825_v24  ;;  %11695 = vst.msk [vmem:[%s15630_s19 + $0xb0] sm:$0xff] %vm322_vm3, %v10829_v25  ;;  %v9779_v28 = vadd.f32 %v15609_v61, %v9763_v23 }
 0x416   : > { %9809 = vst.msk [vmem:[#allocation4 + $0xe0] sm:$0xff] %vm322_vm3, %v9793_v22  ;;  %v9796_v30 = vmax.f32 %v9780_v26, 0.0 }
 0x417   : > { %v10834_v32 = vld [vmem:[#allocation4 + $0xd8] sm:$0xff]  ;;  %v9795_v34 = vmax.f32 %v9779_v28, 0.0 }
 0x418   : > { %11697 = vst.msk [vmem:[%s15630_s19 + $0xc0] sm:$0xff] %vm322_vm3, %v10834_v32  ;;  %9812 = vst.msk [vmem:[#allocation4 + $0xf8] sm:$0xff] %vm322_vm3, %v9796_v30 }
 0x419   : > { %v10830_v35 = vld [vmem:[#allocation4 + $0xce] sm:$0xff]  ;;  %9811 = vst.msk [vmem:[#allocation4 + $0xf0] sm:$0xff] %vm322_vm3, %v9795_v34 }
 0x41a   : > { %11696 = vst.msk [vmem:[%s15630_s19 + $0xb8] sm:$0xff] %vm322_vm3, %v10830_v35 }
 0x41d   : > { %v10835_v36 = vld [vmem:[#allocation4 + $0xe0] sm:$0xff] }
 0x41e   : > { %11698 = vst.msk [vmem:[%s15630_s19 + $0xc8] sm:$0xff] %vm322_vm3, %v10835_v36 }
 0x420   : > { %v10839_v38 = vld [vmem:[#allocation4 + $0xea] sm:$0xff]  ;;  %v10840_v39 = vld [vmem:[#allocation4 + $0xf2] sm:$0xff] }
 0x421   : > { %11699 = vst.msk [vmem:[%s15630_s19 + $0xd0] sm:$0xff] %vm322_vm3, %v10839_v38  ;;  %11700 = vst.msk [vmem:[%s15630_s19 + $0xd8] sm:$0xff] %vm322_vm3, %v10840_v39 }
 0x435   : > { %v13487_v40 = vpop.f32.mrb[32].mxu1 }
 0x436   : > { %v10760_v42 = vmul.f32 %v13487_v40, %v15604_v3  ;;  %v10736_v44 = vpop.f32.mrb[33].mxu1 }
 0x437   : > { %v10759_v47 = vmul.f32 %v15604_v3, %v10736_v44 }
 0x438   : > { %v10764_v48 = vadd.f32 %v15609_v61, %v10760_v42 }
 0x439   : > { %v10763_v49 = vadd.f32 %v15609_v61, %v10759_v47  ;;  %v13490_v31 = vpop.f32.mrb[34].mxu1 }
 0x43a   : > { %v10768_v15 = vmax.f32 %v10764_v48, 0.0  ;;  %v10762_v33 = vmul.f32 %v13490_v31, %v15604_v3  ;;  %v10746_v50 = vpop.f32.mrb[35].mxu1 }
 0x43b   : > { %v10767_v51 = vmax.f32 %v10763_v49, 0.0  ;;  %v10761_v17 = vmul.f32 %v15604_v3, %v10746_v50 }
 0x43c   : > { %10772 = vst.msk [vmem:[#allocation4 + $0x108] sm:$0xff] %vm322_vm3, %v10768_v15  ;;  %v10766_v9 = vadd.f32 %v15609_v61, %v10762_v33 }
 0x43d   : > { %10771 = vst.msk [vmem:[#allocation4 + $0x100] sm:$0xff] %vm322_vm3, %v10767_v51  ;;  %v10765_v52 = vadd.f32 %v15609_v61, %v10761_v17 }
 0x43e   : > { %v10770_v53 = vmax.f32 %v10766_v9, 0.0 }
 0x43f   : > { %v10769_v54 = vmax.f32 %v10765_v52, 0.0 }
 0x440   : > { %10774 = vst.msk [vmem:[#allocation4 + $0x118] sm:$0x3f] %vm5641_vm5, %v10770_v53 }
 0x441   : > { %10773 = vst.msk [vmem:[#allocation4 + $0x110] sm:$0xff] %vm322_vm3, %v10769_v54 }
 0x444   : > { %v10844_v14 = vld [vmem:[#allocation4 + $0xfc] sm:$0xff]  ;;  %v10845_v55 = vld [vmem:[#allocation4 + $0x104] sm:$0xff] }
 0x445   : > { %11701 = vst.msk [vmem:[%s15630_s19 + $0xe0] sm:$0xff] %vm322_vm3, %v10844_v14  ;;  %11702 = vst.msk [vmem:[%s15630_s19 + $0xe8] sm:$0xff] %vm322_vm3, %v10845_v55 }
 0x448   : > { %v10849_v3 = vld [vmem:[#allocation4 + $0x10e] sm:$0xff]  ;;  %v10850_v60 = vld [vmem:[#allocation4 + $0x116] sm:$0xff] }
 0x449   : > { %11703 = vst.msk [vmem:[%s15630_s19 + $0xf0] sm:$0xff] %vm322_vm3, %v10849_v3  ;;  %11704 = vst.msk [vmem:[%s15630_s19 + $0xf8] sm:$0xff] %vm322_vm3, %v10850_v60 }
 0x44a PF: > { %s17_s24 = sadd.s32 1, %s14082_s24  }
 0x44b   : > { %p14_p4 = scmp.ge.s32.totalorder %s17_s24, 4  }
 0x44d   :  { %16 = sbr.rel (!%p14_p4) target bundleno = 1 (0x1), region = 124 }

</bundles_post_ra>
